<compile_context>
chip_gen: v5e
topology: v5e:2x2
jax: 0.10.0
libtpu: 0.0.40
codegen_flags: <defaults>
</compile_context>

<pallas_src>
import jax
import jax.numpy as jnp
from jax import lax
from jax.experimental import pallas as pl
from jax.experimental.pallas import tpu as pltpu


_FULL_UNROLL_MAX_T = 32   # fully unroll the serial recurrence below this T


# --------------------------------------------------------------------------
# Pallas kernel
# --------------------------------------------------------------------------
def make_slstm_kernel(T, D, H):
    """Builds the sLSTM kernel for fixed (T, D, H)."""
    H2 = 2 * H   # fused hidden width (fwd | bwd)
    H6 = 6 * H   # sigmoid block width (i, f, o interleaved by direction)
    H8 = 8 * H   # fused gate width   (i_f i_b | f_f f_b | o_f o_b | g_f g_b)

    def run_layer(xg_ref, w_rec, h_ref, hr_ref=None):
        """One fused bidirectional LSTM layer.

        xg_ref : (T, 8H) VMEM scratch holding the precomputed, bias-added
                 input projections; row t already combines fwd@t and bwd@T-1-t
                 (the backward projection was computed from reversed inputs),
                 so the loop reads a single row per step.
        w_rec  : (2H, 8H) block-diagonal recurrent weights.
        h_ref  : (T, 2H) scratch; fwd hidden at [t, 0:H], bwd at [T-1-t, H:2H].
        hr_ref : optional (T, 2H) scratch holding the time-reversed copy of
                 h_ref (written during the same loop), used as the backward
                 direction's input for the next layer.
        """
        def step(t, carry):
            h, c = carry
            xg = xg_ref[pl.ds(t, 1), :]                            # (1, 8H)
            gates = xg + jnp.dot(h, w_rec, preferred_element_type=jnp.float32)
            sig = jax.nn.sigmoid(gates[:, 0:H6])    # contiguous i|f|o block
            i_g = sig[:, 0:H2]
            f_g = sig[:, H2:2 * H2]
            o_g = sig[:, 2 * H2:H6]
            g_g = jnp.tanh(gates[:, H6:H8])
            c = f_g * c + i_g * g_g
            h = o_g * jnp.tanh(c)
            rt = T - 1 - t
            # fwd hidden belongs to time t, bwd hidden to time T-1-t.
            h_ref[pl.ds(t, 1), pl.ds(0, H)] = h[:, 0:H]
            h_ref[pl.ds(rt, 1), pl.ds(H, H)] = h[:, H:H2]
            if hr_ref is not None:
                # Time-reversed copy (hr[s] == h[T-1-s]); stores are off the
                # h/c dependency chain and reuse store-slot slack.
                hr_ref[pl.ds(rt, 1), pl.ds(0, H)] = h[:, 0:H]
                hr_ref[pl.ds(t, 1), pl.ds(H, H)] = h[:, H:H2]
            return h, c

        init = (jnp.zeros((1, H2), jnp.float32),
                jnp.zeros((1, H2), jnp.float32))
        if T <= _FULL_UNROLL_MAX_T:
            carry = init
            for t in range(T):          # full unroll: T is compile-time small
                carry = step(t, carry)
        else:
            # Bounded unroll keeps LLO visibility with flat vreg pressure.
            lax.fori_loop(0, T, step, init, unroll=8)

    def kernel(x2_ref, w0_ref, wrec0_ref, b0_ref,
               w1f_ref, w1b_ref, wrec1_ref, b1_ref,
               wout_ref, bout_ref,
               scores_ref,
               xg_scr, h0_scr, h0r_scr, h1_scr):
        # ---- Layer 0: one hoisted MXU matmul; x2 = [x | reverse(x)] so the
        #      backward columns come out already aligned to the loop step.
        xg_scr[...] = (jnp.dot(x2_ref[...], w0_ref[...],
                               preferred_element_type=jnp.float32)
                       + b0_ref[...])                              # (T, 8H)
        run_layer(xg_scr, wrec0_ref[...], h0_scr, h0r_scr)

        # ---- Layer 1: input is [h0_fwd | h0_bwd] (natural order for the fwd
        #      direction, time-reversed copy for the bwd direction).
        xg_scr[...] = (jnp.dot(h0_scr[...], w1f_ref[...],
                               preferred_element_type=jnp.float32)
                       + jnp.dot(h0r_scr[...], w1b_ref[...],
                                 preferred_element_type=jnp.float32)
                       + b1_ref[...])                              # (T, 8H)
        run_layer(xg_scr, wrec1_ref[...], h1_scr)

        # ---- Final Linear(2H -> 1) + Sigmoid ----
        logits = (jnp.dot(h1_scr[...], wout_ref[...],
                          preferred_element_type=jnp.float32)
                  + bout_ref[...])                                 # (T, 1)
        scores_ref[...] = jax.nn.sigmoid(logits)

    return kernel


# --------------------------------------------------------------------------
# Wrapper: weight plumbing (interleaved fused layout, gate order i,f,o,g)
# --------------------------------------------------------------------------
def _reorder_gate_cols(w_t, H):
    """(in, 4H) with gate column blocks [i,f,g,o] -> [i,f,o,g]."""
    return jnp.concatenate(
        [w_t[:, 0:2 * H], w_t[:, 3 * H:4 * H], w_t[:, 2 * H:3 * H]], axis=1)


def _reorder_gate_bias(b, H):
    """(4H,) ordered [i,f,g,o] -> [i,f,o,g]."""
    return jnp.concatenate([b[0:2 * H], b[3 * H:4 * H], b[2 * H:3 * H]])


def _interleave_dir(w_t, direction, H):
    """w_t: (in, 4H) with gate blocks [i,f,o,g].  Returns (in, 8H) with gate k
    of this direction at columns [(2k+direction)*H : (2k+direction+1)*H]; the
    other direction's columns are zero (so per-direction projections add
    lane-wise with no masking)."""
    in_dim = w_t.shape[0]
    r = w_t.reshape(in_dim, 4, 1, H)
    z = jnp.zeros_like(r)
    parts = (r, z) if direction == 0 else (z, r)
    return jnp.concatenate(parts, axis=2).reshape(in_dim, 8 * H)


def _interleave_bias(b, direction, H):
    r = b.reshape(4, 1, H)
    z = jnp.zeros_like(r)
    parts = (r, z) if direction == 0 else (z, r)
    return jnp.concatenate(parts, axis=1).reshape(1, 8 * H)


def _prep_layer(fwd, bwd, H):
    w_ih_f, w_hh_f, b_ih_f, b_hh_f = fwd
    w_ih_b, w_hh_b, b_ih_b, b_hh_b = bwd

    def prep_w(w):                     # (4H, in) -> (in, 4H) cols [i,f,o,g]
        return _reorder_gate_cols(jnp.transpose(w), H)

    wx_f = _interleave_dir(prep_w(w_ih_f), 0, H)                 # (in, 8H)
    wx_b = _interleave_dir(prep_w(w_ih_b), 1, H)                 # (in, 8H)
    # Block-diagonal recurrent weight: rows [0:H]=fwd h, rows [H:2H]=bwd h.
    w_rec = jnp.concatenate(
        [_interleave_dir(prep_w(w_hh_f), 0, H),
         _interleave_dir(prep_w(w_hh_b), 1, H)], axis=0)         # (2H, 8H)
    bias = (_interleave_bias(_reorder_gate_bias(b_ih_f + b_hh_f, H), 0, H)
            + _interleave_bias(_reorder_gate_bias(b_ih_b + b_hh_b, H), 1, H))
    return wx_f, wx_b, w_rec, bias


def slstm_forward(features, params):
    """features: (T, 1, D) like the PyTorch module; returns (T, 1) scores."""
    x = features[:, 0, :].astype(jnp.float32)     # squeeze batch dim -> (T, D)
    T, D = x.shape
    H = params["hidden_size"]
    H2, H8 = 2 * H, 8 * H

    wx0f, wx0b, wrec0, b0 = _prep_layer(params["l0_fwd"], params["l0_bwd"], H)
    wx1f, wx1b, wrec1, b1 = _prep_layer(params["l1_fwd"], params["l1_bwd"], H)
    # Layer-0: stack [fwd; bwd] input weights so x2 = [x | reverse(x)] needs a
    # single (T, 2D) @ (2D, 8H) matmul.
    w0 = jnp.concatenate([wx0f, wx0b], axis=0)               # (2D, 8H)
    wout = jnp.transpose(params["w_out"])                    # (2H, 1)
    bout = params["b_out"].reshape(1, 1)                     # (1, 1)

    # Wrapper-side (XLA) time reversal of the raw input for the bwd direction.
    x2 = jnp.concatenate([x, x[::-1]], axis=1)               # (T, 2D)

    args = (x2, w0, wrec0, b0, wx1f, wx1b, wrec1, b1, wout, bout)

    # Advisory cost estimate for the surrounding XLA schedule.
    flops = (2 * T * (2 * D) * H8              # layer-0 input projection
             + 2 * 2 * T * H2 * H8             # layer-1 input projections
             + 2 * T * 2 * H2 * H8             # recurrent matmuls (2 layers)
             + 2 * T * H2                      # output linear
             + 2 * T * 8 * H2)                 # cell-update elementwise (approx)
    transcendentals = 2 * T * 10 * H + T
    bytes_accessed = 4 * (sum(int(a.size) for a in args) + T)

    kernel = make_slstm_kernel(T, D, H)
    scores = pl.pallas_call(
        kernel,
        out_shape=jax.ShapeDtypeStruct((T, 1), jnp.float32),
        in_specs=[pl.BlockSpec(memory_space=pltpu.MemorySpace.VMEM)] * len(args),
        out_specs=pl.BlockSpec(memory_space=pltpu.MemorySpace.VMEM),
        scratch_shapes=[
            pltpu.VMEM((T, H8), jnp.float32),   # staged input projections
            pltpu.VMEM((T, H2), jnp.float32),   # layer-0 hidden   [fwd | bwd]
            pltpu.VMEM((T, H2), jnp.float32),   # layer-0 hidden, time-reversed
            pltpu.VMEM((T, H2), jnp.float32),   # layer-1 hidden   [fwd | bwd]
        ],
        cost_estimate=pl.CostEstimate(
            flops=flops,
            transcendentals=transcendentals,
            bytes_accessed=bytes_accessed),
    )(*args)
    return scores


# --------------------------------------------------------------------------
# Pure-JAX reference (matches PyTorch nn.LSTM gate order i, f, g, o)
# --------------------------------------------------------------------------
def _lstm_dir_ref(x, w_ih, w_hh, b_ih, b_hh, reverse):
    H = w_hh.shape[1]
    xs = x[::-1] if reverse else x

    def step(carry, x_t):
        h, c = carry
        gates = w_ih @ x_t + w_hh @ h + b_ih + b_hh
        i, f, g, o = jnp.split(gates, 4)
        i = jax.nn.sigmoid(i)
        f = jax.nn.sigmoid(f)
        g = jnp.tanh(g)
        o = jax.nn.sigmoid(o)
        c = f * c + i * g
        h = o * jnp.tanh(c)
        return (h, c), h

    (_, _), hs = lax.scan(step, (jnp.zeros(H), jnp.zeros(H)), xs)
    return hs[::-1] if reverse else hs


def slstm_reference(features, params):
    x = features[:, 0, :].astype(jnp.float32)
    h0f = _lstm_dir_ref(x, *params["l0_fwd"], reverse=False)
    h0b = _lstm_dir_ref(x, *params["l0_bwd"], reverse=True)
    l0 = jnp.concatenate([h0f, h0b], axis=-1)
    h1f = _lstm_dir_ref(l0, *params["l1_fwd"], reverse=False)
    h1b = _lstm_dir_ref(l0, *params["l1_bwd"], reverse=True)
    l1 = jnp.concatenate([h1f, h1b], axis=-1)
    logits = l1 @ params["w_out"].T + params["b_out"]
    return jax.nn.sigmoid(logits)


# --------------------------------------------------------------------------
# Deterministic parameter init (PyTorch default: U(-1/sqrt(H), 1/sqrt(H)))
# --------------------------------------------------------------------------
def init_params(key, input_size, hidden_size):
    H = hidden_size
    bound = 1.0 / jnp.sqrt(jnp.float32(H))

    def uni(key, shape):
        return jax.random.uniform(key, shape, jnp.float32, -bound, bound)

    keys = jax.random.split(key, 20)
    k = iter(keys)

    def layer_dir(in_dim):
        return (uni(next(k), (4 * H, in_dim)),   # w_ih
                uni(next(k), (4 * H, H)),        # w_hh
                uni(next(k), (4 * H,)),          # b_ih
                uni(next(k), (4 * H,)))          # b_hh

    params = {
        "hidden_size": H,
        "l0_fwd": layer_dir(input_size),
        "l0_bwd": layer_dir(input_size),
        "l1_fwd": layer_dir(2 * H),
        "l1_bwd": layer_dir(2 * H),
        "w_out": uni(next(k), (1, 2 * H)),
        "b_out": uni(next(k), (1,)),
    }
    # TODO(synk): self.lstm.flatten_parameters() is a CUDA memory-layout hint
    # with no semantic effect; intentionally not modeled.
    return params


# --------------------------------------------------------------------------
if __name__ == "__main__":
    SEQ_LEN = 8
    INPUT_SIZE = 16
    HIDDEN_SIZE = 32

    root = jax.random.PRNGKey(0)
    k_param, k_data = jax.random.split(root)
    params = init_params(k_param, INPUT_SIZE, HIDDEN_SIZE)

    # features: (seq_len, batch=1, input_size), like the PyTorch module.
    features = jax.random.normal(k_data, (SEQ_LEN, 1, INPUT_SIZE), jnp.float32)

    scores = slstm_forward(features, params)
    scores = jax.block_until_ready(scores)

    ref = jax.block_until_ready(slstm_reference(features, params))
    assert scores.shape == (SEQ_LEN, 1), scores.shape
    assert jnp.allclose(scores, ref, atol=1e-5, rtol=1e-5), (
        f"max abs err = {jnp.max(jnp.abs(scores - ref))}")

    print("KERNEL_OK")
</pallas_src>

<mosaic_0001>
module attributes {stable_mosaic.version = 11 : i64} {
  func.func @kernel(%arg0: memref<8x32xf32, #tpu.memory_space<vmem>>, %arg1: memref<32x256xf32, #tpu.memory_space<vmem>>, %arg2: memref<64x256xf32, #tpu.memory_space<vmem>>, %arg3: memref<1x256xf32, #tpu.memory_space<vmem>>, %arg4: memref<64x256xf32, #tpu.memory_space<vmem>>, %arg5: memref<64x256xf32, #tpu.memory_space<vmem>>, %arg6: memref<64x256xf32, #tpu.memory_space<vmem>>, %arg7: memref<1x256xf32, #tpu.memory_space<vmem>>, %arg8: memref<64x1xf32, #tpu.memory_space<vmem>>, %arg9: memref<1x1xf32, #tpu.memory_space<vmem>>, %arg10: memref<8x1xf32, #tpu.memory_space<vmem>>, %arg11: memref<8x256xf32, #tpu.memory_space<vmem>>, %arg12: memref<8x64xf32, #tpu.memory_space<vmem>>, %arg13: memref<8x64xf32, #tpu.memory_space<vmem>>, %arg14: memref<8x64xf32, #tpu.memory_space<vmem>>) attributes {dimension_semantics = [], scalar_prefetch = 0 : i64, scratch_operands = 4 : i64, tpu.core_type = #tpu.core_type<tc>} {
    %c0 = arith.constant 0 : index
    %c0_0 = arith.constant 0 : index
    %0 = vector.load %arg0[%c0, %c0_0] : memref<8x32xf32, #tpu.memory_space<vmem>>, vector<8x32xf32>
    %c0_1 = arith.constant 0 : index
    %c0_2 = arith.constant 0 : index
    %1 = vector.load %arg1[%c0_1, %c0_2] : memref<32x256xf32, #tpu.memory_space<vmem>>, vector<32x256xf32>
    %cst = arith.constant dense<0.000000e+00> : vector<8x256xf32>
    %2 = tpu.matmul %0, %1, %cst {dimension_numbers = #tpu.dot_dimension_numbers<[1], [0], [0], [1], [0, 0, 1, 1], [], []>} : vector<8x32xf32>, vector<32x256xf32>, vector<8x256xf32> -> vector<8x256xf32>
    %c0_3 = arith.constant 0 : index
    %c0_4 = arith.constant 0 : index
    %3 = vector.load %arg3[%c0_3, %c0_4] : memref<1x256xf32, #tpu.memory_space<vmem>>, vector<1x256xf32>
    %4 = vector.broadcast %3 : vector<1x256xf32> to vector<8x256xf32>
    %5 = arith.addf %2, %4 : vector<8x256xf32>
    %c0_5 = arith.constant 0 : index
    %c0_6 = arith.constant 0 : index
    %6 = vector.load %arg11[%c0_5, %c0_6] : memref<8x256xf32, #tpu.memory_space<vmem>>, vector<8x256xf32>
    tpu.vector_store %arg11[%c0_5, %c0_6], %5 {strides = array<i32>} : memref<8x256xf32, #tpu.memory_space<vmem>>, vector<8x256xf32>,
    %c0_7 = arith.constant 0 : index
    %c0_8 = arith.constant 0 : index
    %7 = vector.load %arg2[%c0_7, %c0_8] : memref<64x256xf32, #tpu.memory_space<vmem>>, vector<64x256xf32>
    %cst_9 = arith.constant 0.000000e+00 : f32
    %8 = vector.broadcast %cst_9 : f32 to vector<1x64xf32>
    %cst_10 = arith.constant 0.000000e+00 : f32
    %9 = vector.broadcast %cst_10 : f32 to vector<1x64xf32>
    %c0_11 = arith.constant 0 : index
    %c0_12 = arith.constant 0 : index
    %10 = vector.load %arg11[%c0_11, %c0_12] : memref<8x256xf32, #tpu.memory_space<vmem>>, vector<1x256xf32>
    %cst_13 = arith.constant dense<0.000000e+00> : vector<1x256xf32>
    %11 = tpu.matmul %8, %7, %cst_13 {dimension_numbers = #tpu.dot_dimension_numbers<[1], [0], [0], [1], [0, 0, 1, 1], [], []>} : vector<1x64xf32>, vector<64x256xf32>, vector<1x256xf32> -> vector<1x256xf32>
    %12 = arith.addf %10, %11 : vector<1x256xf32>
    %13 = vector.extract_strided_slice %12 {offsets = [0, 0], sizes = [1, 192], strides = [1, 1]} : vector<1x256xf32> to vector<1x192xf32>
    %14 = arith.negf %13 : vector<1x192xf32>
    %15 = math.exp %14 : vector<1x192xf32>
    %cst_14 = arith.constant 1.000000e+00 : f32
    %16 = vector.broadcast %cst_14 : f32 to vector<1x192xf32>
    %17 = arith.addf %16, %15 : vector<1x192xf32>
    %18 = arith.divf %16, %17 : vector<1x192xf32>
    %19 = vector.extract_strided_slice %18 {offsets = [0, 0], sizes = [1, 64], strides = [1, 1]} : vector<1x192xf32> to vector<1x64xf32>
    %20 = vector.extract_strided_slice %18 {offsets = [0, 64], sizes = [1, 64], strides = [1, 1]} : vector<1x192xf32> to vector<1x64xf32>
    %21 = vector.extract_strided_slice %18 {offsets = [0, 128], sizes = [1, 64], strides = [1, 1]} : vector<1x192xf32> to vector<1x64xf32>
    %22 = vector.extract_strided_slice %12 {offsets = [0, 192], sizes = [1, 64], strides = [1, 1]} : vector<1x256xf32> to vector<1x64xf32>
    %23 = math.tanh %22 : vector<1x64xf32>
    %24 = arith.mulf %20, %9 : vector<1x64xf32>
    %25 = arith.mulf %19, %23 : vector<1x64xf32>
    %26 = arith.addf %24, %25 : vector<1x64xf32>
    %27 = math.tanh %26 : vector<1x64xf32>
    %28 = arith.mulf %21, %27 : vector<1x64xf32>
    %29 = vector.extract_strided_slice %28 {offsets = [0, 0], sizes = [1, 32], strides = [1, 1]} : vector<1x64xf32> to vector<1x32xf32>
    %c0_15 = arith.constant 0 : index
    %c0_16 = arith.constant 0 : index
    %30 = vector.load %arg12[%c0_15, %c0_16] : memref<8x64xf32, #tpu.memory_space<vmem>>, vector<1x32xf32>
    tpu.vector_store %arg12[%c0_15, %c0_16], %29 {strides = array<i32>} : memref<8x64xf32, #tpu.memory_space<vmem>>, vector<1x32xf32>,
    %31 = vector.extract_strided_slice %28 {offsets = [0, 32], sizes = [1, 32], strides = [1, 1]} : vector<1x64xf32> to vector<1x32xf32>
    %c7 = arith.constant 7 : index
    %c32 = arith.constant 32 : index
    %32 = vector.load %arg12[%c7, %c32] : memref<8x64xf32, #tpu.memory_space<vmem>>, vector<1x32xf32>
    tpu.vector_store %arg12[%c7, %c32], %31 {strides = array<i32>} : memref<8x64xf32, #tpu.memory_space<vmem>>, vector<1x32xf32>,
    %33 = vector.extract_strided_slice %28 {offsets = [0, 0], sizes = [1, 32], strides = [1, 1]} : vector<1x64xf32> to vector<1x32xf32>
    %c7_17 = arith.constant 7 : index
    %c0_18 = arith.constant 0 : index
    %34 = vector.load %arg13[%c7_17, %c0_18] : memref<8x64xf32, #tpu.memory_space<vmem>>, vector<1x32xf32>
    tpu.vector_store %arg13[%c7_17, %c0_18], %33 {strides = array<i32>} : memref<8x64xf32, #tpu.memory_space<vmem>>, vector<1x32xf32>,
    %35 = vector.extract_strided_slice %28 {offsets = [0, 32], sizes = [1, 32], strides = [1, 1]} : vector<1x64xf32> to vector<1x32xf32>
    %c0_19 = arith.constant 0 : index
    %c32_20 = arith.constant 32 : index
    %36 = vector.load %arg13[%c0_19, %c32_20] : memref<8x64xf32, #tpu.memory_space<vmem>>, vector<1x32xf32>
    tpu.vector_store %arg13[%c0_19, %c32_20], %35 {strides = array<i32>} : memref<8x64xf32, #tpu.memory_space<vmem>>, vector<1x32xf32>,
    %c1 = arith.constant 1 : index
    %c0_21 = arith.constant 0 : index
    %37 = vector.load %arg11[%c1, %c0_21] : memref<8x256xf32, #tpu.memory_space<vmem>>, vector<1x256xf32>
    %cst_22 = arith.constant dense<0.000000e+00> : vector<1x256xf32>
    %38 = tpu.matmul %28, %7, %cst_22 {dimension_numbers = #tpu.dot_dimension_numbers<[1], [0], [0], [1], [0, 0, 1, 1], [], []>} : vector<1x64xf32>, vector<64x256xf32>, vector<1x256xf32> -> vector<1x256xf32>
    %39 = arith.addf %37, %38 : vector<1x256xf32>
    %40 = vector.extract_strided_slice %39 {offsets = [0, 0], sizes = [1, 192], strides = [1, 1]} : vector<1x256xf32> to vector<1x192xf32>
    %41 = arith.negf %40 : vector<1x192xf32>
    %42 = math.exp %41 : vector<1x192xf32>
    %cst_23 = arith.constant 1.000000e+00 : f32
    %43 = vector.broadcast %cst_23 : f32 to vector<1x192xf32>
    %44 = arith.addf %43, %42 : vector<1x192xf32>
    %45 = arith.divf %43, %44 : vector<1x192xf32>
    %46 = vector.extract_strided_slice %45 {offsets = [0, 0], sizes = [1, 64], strides = [1, 1]} : vector<1x192xf32> to vector<1x64xf32>
    %47 = vector.extract_strided_slice %45 {offsets = [0, 64], sizes = [1, 64], strides = [1, 1]} : vector<1x192xf32> to vector<1x64xf32>
    %48 = vector.extract_strided_slice %45 {offsets = [0, 128], sizes = [1, 64], strides = [1, 1]} : vector<1x192xf32> to vector<1x64xf32>
    %49 = vector.extract_strided_slice %39 {offsets = [0, 192], sizes = [1, 64], strides = [1, 1]} : vector<1x256xf32> to vector<1x64xf32>
    %50 = math.tanh %49 : vector<1x64xf32>
    %51 = arith.mulf %47, %26 : vector<1x64xf32>
    %52 = arith.mulf %46, %50 : vector<1x64xf32>
    %53 = arith.addf %51, %52 : vector<1x64xf32>
    %54 = math.tanh %53 : vector<1x64xf32>
    %55 = arith.mulf %48, %54 : vector<1x64xf32>
    %56 = vector.extract_strided_slice %55 {offsets = [0, 0], sizes = [1, 32], strides = [1, 1]} : vector<1x64xf32> to vector<1x32xf32>
    %c1_24 = arith.constant 1 : index
    %c0_25 = arith.constant 0 : index
    %57 = vector.load %arg12[%c1_24, %c0_25] : memref<8x64xf32, #tpu.memory_space<vmem>>, vector<1x32xf32>
    tpu.vector_store %arg12[%c1_24, %c0_25], %56 {strides = array<i32>} : memref<8x64xf32, #tpu.memory_space<vmem>>, vector<1x32xf32>,
    %58 = vector.extract_strided_slice %55 {offsets = [0, 32], sizes = [1, 32], strides = [1, 1]} : vector<1x64xf32> to vector<1x32xf32>
    %c6 = arith.constant 6 : index
    %c32_26 = arith.constant 32 : index
    %59 = vector.load %arg12[%c6, %c32_26] : memref<8x64xf32, #tpu.memory_space<vmem>>, vector<1x32xf32>
    tpu.vector_store %arg12[%c6, %c32_26], %58 {strides = array<i32>} : memref<8x64xf32, #tpu.memory_space<vmem>>, vector<1x32xf32>,
    %60 = vector.extract_strided_slice %55 {offsets = [0, 0], sizes = [1, 32], strides = [1, 1]} : vector<1x64xf32> to vector<1x32xf32>
    %c6_27 = arith.constant 6 : index
    %c0_28 = arith.constant 0 : index
    %61 = vector.load %arg13[%c6_27, %c0_28] : memref<8x64xf32, #tpu.memory_space<vmem>>, vector<1x32xf32>
    tpu.vector_store %arg13[%c6_27, %c0_28], %60 {strides = array<i32>} : memref<8x64xf32, #tpu.memory_space<vmem>>, vector<1x32xf32>,
    %62 = vector.extract_strided_slice %55 {offsets = [0, 32], sizes = [1, 32], strides = [1, 1]} : vector<1x64xf32> to vector<1x32xf32>
    %c1_29 = arith.constant 1 : index
    %c32_30 = arith.constant 32 : index
    %63 = vector.load %arg13[%c1_29, %c32_30] : memref<8x64xf32, #tpu.memory_space<vmem>>, vector<1x32xf32>
    tpu.vector_store %arg13[%c1_29, %c32_30], %62 {strides = array<i32>} : memref<8x64xf32, #tpu.memory_space<vmem>>, vector<1x32xf32>,
    %c2 = arith.constant 2 : index
    %c0_31 = arith.constant 0 : index
    %64 = vector.load %arg11[%c2, %c0_31] : memref<8x256xf32, #tpu.memory_space<vmem>>, vector<1x256xf32>
    %cst_32 = arith.constant dense<0.000000e+00> : vector<1x256xf32>
    %65 = tpu.matmul %55, %7, %cst_32 {dimension_numbers = #tpu.dot_dimension_numbers<[1], [0], [0], [1], [0, 0, 1, 1], [], []>} : vector<1x64xf32>, vector<64x256xf32>, vector<1x256xf32> -> vector<1x256xf32>
    %66 = arith.addf %64, %65 : vector<1x256xf32>
    %67 = vector.extract_strided_slice %66 {offsets = [0, 0], sizes = [1, 192], strides = [1, 1]} : vector<1x256xf32> to vector<1x192xf32>
    %68 = arith.negf %67 : vector<1x192xf32>
    %69 = math.exp %68 : vector<1x192xf32>
    %cst_33 = arith.constant 1.000000e+00 : f32
    %70 = vector.broadcast %cst_33 : f32 to vector<1x192xf32>
    %71 = arith.addf %70, %69 : vector<1x192xf32>
    %72 = arith.divf %70, %71 : vector<1x192xf32>
    %73 = vector.extract_strided_slice %72 {offsets = [0, 0], sizes = [1, 64], strides = [1, 1]} : vector<1x192xf32> to vector<1x64xf32>
    %74 = vector.extract_strided_slice %72 {offsets = [0, 64], sizes = [1, 64], strides = [1, 1]} : vector<1x192xf32> to vector<1x64xf32>
    %75 = vector.extract_strided_slice %72 {offsets = [0, 128], sizes = [1, 64], strides = [1, 1]} : vector<1x192xf32> to vector<1x64xf32>
    %76 = vector.extract_strided_slice %66 {offsets = [0, 192], sizes = [1, 64], strides = [1, 1]} : vector<1x256xf32> to vector<1x64xf32>
    %77 = math.tanh %76 : vector<1x64xf32>
    %78 = arith.mulf %74, %53 : vector<1x64xf32>
    %79 = arith.mulf %73, %77 : vector<1x64xf32>
    %80 = arith.addf %78, %79 : vector<1x64xf32>
    %81 = math.tanh %80 : vector<1x64xf32>
    %82 = arith.mulf %75, %81 : vector<1x64xf32>
    %83 = vector.extract_strided_slice %82 {offsets = [0, 0], sizes = [1, 32], strides = [1, 1]} : vector<1x64xf32> to vector<1x32xf32>
    %c2_34 = arith.constant 2 : index
    %c0_35 = arith.constant 0 : index
    %84 = vector.load %arg12[%c2_34, %c0_35] : memref<8x64xf32, #tpu.memory_space<vmem>>, vector<1x32xf32>
    tpu.vector_store %arg12[%c2_34, %c0_35], %83 {strides = array<i32>} : memref<8x64xf32, #tpu.memory_space<vmem>>, vector<1x32xf32>,
    %85 = vector.extract_strided_slice %82 {offsets = [0, 32], sizes = [1, 32], strides = [1, 1]} : vector<1x64xf32> to vector<1x32xf32>
    %c5 = arith.constant 5 : index
    %c32_36 = arith.constant 32 : index
    %86 = vector.load %arg12[%c5, %c32_36] : memref<8x64xf32, #tpu.memory_space<vmem>>, vector<1x32xf32>
    tpu.vector_store %arg12[%c5, %c32_36], %85 {strides = array<i32>} : memref<8x64xf32, #tpu.memory_space<vmem>>, vector<1x32xf32>,
    %87 = vector.extract_strided_slice %82 {offsets = [0, 0], sizes = [1, 32], strides = [1, 1]} : vector<1x64xf32> to vector<1x32xf32>
    %c5_37 = arith.constant 5 : index
    %c0_38 = arith.constant 0 : index
    %88 = vector.load %arg13[%c5_37, %c0_38] : memref<8x64xf32, #tpu.memory_space<vmem>>, vector<1x32xf32>
    tpu.vector_store %arg13[%c5_37, %c0_38], %87 {strides = array<i32>} : memref<8x64xf32, #tpu.memory_space<vmem>>, vector<1x32xf32>,
    %89 = vector.extract_strided_slice %82 {offsets = [0, 32], sizes = [1, 32], strides = [1, 1]} : vector<1x64xf32> to vector<1x32xf32>
    %c2_39 = arith.constant 2 : index
    %c32_40 = arith.constant 32 : index
    %90 = vector.load %arg13[%c2_39, %c32_40] : memref<8x64xf32, #tpu.memory_space<vmem>>, vector<1x32xf32>
    tpu.vector_store %arg13[%c2_39, %c32_40], %89 {strides = array<i32>} : memref<8x64xf32, #tpu.memory_space<vmem>>, vector<1x32xf32>,
    %c3 = arith.constant 3 : index
    %c0_41 = arith.constant 0 : index
    %91 = vector.load %arg11[%c3, %c0_41] : memref<8x256xf32, #tpu.memory_space<vmem>>, vector<1x256xf32>
    %cst_42 = arith.constant dense<0.000000e+00> : vector<1x256xf32>
    %92 = tpu.matmul %82, %7, %cst_42 {dimension_numbers = #tpu.dot_dimension_numbers<[1], [0], [0], [1], [0, 0, 1, 1], [], []>} : vector<1x64xf32>, vector<64x256xf32>, vector<1x256xf32> -> vector<1x256xf32>
    %93 = arith.addf %91, %92 : vector<1x256xf32>
    %94 = vector.extract_strided_slice %93 {offsets = [0, 0], sizes = [1, 192], strides = [1, 1]} : vector<1x256xf32> to vector<1x192xf32>
    %95 = arith.negf %94 : vector<1x192xf32>
    %96 = math.exp %95 : vector<1x192xf32>
    %cst_43 = arith.constant 1.000000e+00 : f32
    %97 = vector.broadcast %cst_43 : f32 to vector<1x192xf32>
    %98 = arith.addf %97, %96 : vector<1x192xf32>
    %99 = arith.divf %97, %98 : vector<1x192xf32>
    %100 = vector.extract_strided_slice %99 {offsets = [0, 0], sizes = [1, 64], strides = [1, 1]} : vector<1x192xf32> to vector<1x64xf32>
    %101 = vector.extract_strided_slice %99 {offsets = [0, 64], sizes = [1, 64], strides = [1, 1]} : vector<1x192xf32> to vector<1x64xf32>
    %102 = vector.extract_strided_slice %99 {offsets = [0, 128], sizes = [1, 64], strides = [1, 1]} : vector<1x192xf32> to vector<1x64xf32>
    %103 = vector.extract_strided_slice %93 {offsets = [0, 192], sizes = [1, 64], strides = [1, 1]} : vector<1x256xf32> to vector<1x64xf32>
    %104 = math.tanh %103 : vector<1x64xf32>
    %105 = arith.mulf %101, %80 : vector<1x64xf32>
    %106 = arith.mulf %100, %104 : vector<1x64xf32>
    %107 = arith.addf %105, %106 : vector<1x64xf32>
    %108 = math.tanh %107 : vector<1x64xf32>
    %109 = arith.mulf %102, %108 : vector<1x64xf32>
    %110 = vector.extract_strided_slice %109 {offsets = [0, 0], sizes = [1, 32], strides = [1, 1]} : vector<1x64xf32> to vector<1x32xf32>
    %c3_44 = arith.constant 3 : index
    %c0_45 = arith.constant 0 : index
    %111 = vector.load %arg12[%c3_44, %c0_45] : memref<8x64xf32, #tpu.memory_space<vmem>>, vector<1x32xf32>
    tpu.vector_store %arg12[%c3_44, %c0_45], %110 {strides = array<i32>} : memref<8x64xf32, #tpu.memory_space<vmem>>, vector<1x32xf32>,
    %112 = vector.extract_strided_slice %109 {offsets = [0, 32], sizes = [1, 32], strides = [1, 1]} : vector<1x64xf32> to vector<1x32xf32>
    %c4 = arith.constant 4 : index
    %c32_46 = arith.constant 32 : index
    %113 = vector.load %arg12[%c4, %c32_46] : memref<8x64xf32, #tpu.memory_space<vmem>>, vector<1x32xf32>
    tpu.vector_store %arg12[%c4, %c32_46], %112 {strides = array<i32>} : memref<8x64xf32, #tpu.memory_space<vmem>>, vector<1x32xf32>,
    %114 = vector.extract_strided_slice %109 {offsets = [0, 0], sizes = [1, 32], strides = [1, 1]} : vector<1x64xf32> to vector<1x32xf32>
    %c4_47 = arith.constant 4 : index
    %c0_48 = arith.constant 0 : index
    %115 = vector.load %arg13[%c4_47, %c0_48] : memref<8x64xf32, #tpu.memory_space<vmem>>, vector<1x32xf32>
    tpu.vector_store %arg13[%c4_47, %c0_48], %114 {strides = array<i32>} : memref<8x64xf32, #tpu.memory_space<vmem>>, vector<1x32xf32>,
    %116 = vector.extract_strided_slice %109 {offsets = [0, 32], sizes = [1, 32], strides = [1, 1]} : vector<1x64xf32> to vector<1x32xf32>
    %c3_49 = arith.constant 3 : index
    %c32_50 = arith.constant 32 : index
    %117 = vector.load %arg13[%c3_49, %c32_50] : memref<8x64xf32, #tpu.memory_space<vmem>>, vector<1x32xf32>
    tpu.vector_store %arg13[%c3_49, %c32_50], %116 {strides = array<i32>} : memref<8x64xf32, #tpu.memory_space<vmem>>, vector<1x32xf32>,
    %c4_51 = arith.constant 4 : index
    %c0_52 = arith.constant 0 : index
    %118 = vector.load %arg11[%c4_51, %c0_52] : memref<8x256xf32, #tpu.memory_space<vmem>>, vector<1x256xf32>
    %cst_53 = arith.constant dense<0.000000e+00> : vector<1x256xf32>
    %119 = tpu.matmul %109, %7, %cst_53 {dimension_numbers = #tpu.dot_dimension_numbers<[1], [0], [0], [1], [0, 0, 1, 1], [], []>} : vector<1x64xf32>, vector<64x256xf32>, vector<1x256xf32> -> vector<1x256xf32>
    %120 = arith.addf %118, %119 : vector<1x256xf32>
    %121 = vector.extract_strided_slice %120 {offsets = [0, 0], sizes = [1, 192], strides = [1, 1]} : vector<1x256xf32> to vector<1x192xf32>
    %122 = arith.negf %121 : vector<1x192xf32>
    %123 = math.exp %122 : vector<1x192xf32>
    %cst_54 = arith.constant 1.000000e+00 : f32
    %124 = vector.broadcast %cst_54 : f32 to vector<1x192xf32>
    %125 = arith.addf %124, %123 : vector<1x192xf32>
    %126 = arith.divf %124, %125 : vector<1x192xf32>
    %127 = vector.extract_strided_slice %126 {offsets = [0, 0], sizes = [1, 64], strides = [1, 1]} : vector<1x192xf32> to vector<1x64xf32>
    %128 = vector.extract_strided_slice %126 {offsets = [0, 64], sizes = [1, 64], strides = [1, 1]} : vector<1x192xf32> to vector<1x64xf32>
    %129 = vector.extract_strided_slice %126 {offsets = [0, 128], sizes = [1, 64], strides = [1, 1]} : vector<1x192xf32> to vector<1x64xf32>
    %130 = vector.extract_strided_slice %120 {offsets = [0, 192], sizes = [1, 64], strides = [1, 1]} : vector<1x256xf32> to vector<1x64xf32>
    %131 = math.tanh %130 : vector<1x64xf32>
    %132 = arith.mulf %128, %107 : vector<1x64xf32>
    %133 = arith.mulf %127, %131 : vector<1x64xf32>
    %134 = arith.addf %132, %133 : vector<1x64xf32>
    %135 = math.tanh %134 : vector<1x64xf32>
    %136 = arith.mulf %129, %135 : vector<1x64xf32>
    %137 = vector.extract_strided_slice %136 {offsets = [0, 0], sizes = [1, 32], strides = [1, 1]} : vector<1x64xf32> to vector<1x32xf32>
    %c4_55 = arith.constant 4 : index
    %c0_56 = arith.constant 0 : index
    %138 = vector.load %arg12[%c4_55, %c0_56] : memref<8x64xf32, #tpu.memory_space<vmem>>, vector<1x32xf32>
    tpu.vector_store %arg12[%c4_55, %c0_56], %137 {strides = array<i32>} : memref<8x64xf32, #tpu.memory_space<vmem>>, vector<1x32xf32>,
    %139 = vector.extract_strided_slice %136 {offsets = [0, 32], sizes = [1, 32], strides = [1, 1]} : vector<1x64xf32> to vector<1x32xf32>
    %c3_57 = arith.constant 3 : index
    %c32_58 = arith.constant 32 : index
    %140 = vector.load %arg12[%c3_57, %c32_58] : memref<8x64xf32, #tpu.memory_space<vmem>>, vector<1x32xf32>
    tpu.vector_store %arg12[%c3_57, %c32_58], %139 {strides = array<i32>} : memref<8x64xf32, #tpu.memory_space<vmem>>, vector<1x32xf32>,
    %141 = vector.extract_strided_slice %136 {offsets = [0, 0], sizes = [1, 32], strides = [1, 1]} : vector<1x64xf32> to vector<1x32xf32>
    %c3_59 = arith.constant 3 : index
    %c0_60 = arith.constant 0 : index
    %142 = vector.load %arg13[%c3_59, %c0_60] : memref<8x64xf32, #tpu.memory_space<vmem>>, vector<1x32xf32>
    tpu.vector_store %arg13[%c3_59, %c0_60], %141 {strides = array<i32>} : memref<8x64xf32, #tpu.memory_space<vmem>>, vector<1x32xf32>,
    %143 = vector.extract_strided_slice %136 {offsets = [0, 32], sizes = [1, 32], strides = [1, 1]} : vector<1x64xf32> to vector<1x32xf32>
    %c4_61 = arith.constant 4 : index
    %c32_62 = arith.constant 32 : index
    %144 = vector.load %arg13[%c4_61, %c32_62] : memref<8x64xf32, #tpu.memory_space<vmem>>, vector<1x32xf32>
    tpu.vector_store %arg13[%c4_61, %c32_62], %143 {strides = array<i32>} : memref<8x64xf32, #tpu.memory_space<vmem>>, vector<1x32xf32>,
    %c5_63 = arith.constant 5 : index
    %c0_64 = arith.constant 0 : index
    %145 = vector.load %arg11[%c5_63, %c0_64] : memref<8x256xf32, #tpu.memory_space<vmem>>, vector<1x256xf32>
    %cst_65 = arith.constant dense<0.000000e+00> : vector<1x256xf32>
    %146 = tpu.matmul %136, %7, %cst_65 {dimension_numbers = #tpu.dot_dimension_numbers<[1], [0], [0], [1], [0, 0, 1, 1], [], []>} : vector<1x64xf32>, vector<64x256xf32>, vector<1x256xf32> -> vector<1x256xf32>
    %147 = arith.addf %145, %146 : vector<1x256xf32>
    %148 = vector.extract_strided_slice %147 {offsets = [0, 0], sizes = [1, 192], strides = [1, 1]} : vector<1x256xf32> to vector<1x192xf32>
    %149 = arith.negf %148 : vector<1x192xf32>
    %150 = math.exp %149 : vector<1x192xf32>
    %cst_66 = arith.constant 1.000000e+00 : f32
    %151 = vector.broadcast %cst_66 : f32 to vector<1x192xf32>
    %152 = arith.addf %151, %150 : vector<1x192xf32>
    %153 = arith.divf %151, %152 : vector<1x192xf32>
    %154 = vector.extract_strided_slice %153 {offsets = [0, 0], sizes = [1, 64], strides = [1, 1]} : vector<1x192xf32> to vector<1x64xf32>
    %155 = vector.extract_strided_slice %153 {offsets = [0, 64], sizes = [1, 64], strides = [1, 1]} : vector<1x192xf32> to vector<1x64xf32>
    %156 = vector.extract_strided_slice %153 {offsets = [0, 128], sizes = [1, 64], strides = [1, 1]} : vector<1x192xf32> to vector<1x64xf32>
    %157 = vector.extract_strided_slice %147 {offsets = [0, 192], sizes = [1, 64], strides = [1, 1]} : vector<1x256xf32> to vector<1x64xf32>
    %158 = math.tanh %157 : vector<1x64xf32>
    %159 = arith.mulf %155, %134 : vector<1x64xf32>
    %160 = arith.mulf %154, %158 : vector<1x64xf32>
    %161 = arith.addf %159, %160 : vector<1x64xf32>
    %162 = math.tanh %161 : vector<1x64xf32>
    %163 = arith.mulf %156, %162 : vector<1x64xf32>
    %164 = vector.extract_strided_slice %163 {offsets = [0, 0], sizes = [1, 32], strides = [1, 1]} : vector<1x64xf32> to vector<1x32xf32>
    %c5_67 = arith.constant 5 : index
    %c0_68 = arith.constant 0 : index
    %165 = vector.load %arg12[%c5_67, %c0_68] : memref<8x64xf32, #tpu.memory_space<vmem>>, vector<1x32xf32>
    tpu.vector_store %arg12[%c5_67, %c0_68], %164 {strides = array<i32>} : memref<8x64xf32, #tpu.memory_space<vmem>>, vector<1x32xf32>,
    %166 = vector.extract_strided_slice %163 {offsets = [0, 32], sizes = [1, 32], strides = [1, 1]} : vector<1x64xf32> to vector<1x32xf32>
    %c2_69 = arith.constant 2 : index
    %c32_70 = arith.constant 32 : index
    %167 = vector.load %arg12[%c2_69, %c32_70] : memref<8x64xf32, #tpu.memory_space<vmem>>, vector<1x32xf32>
    tpu.vector_store %arg12[%c2_69, %c32_70], %166 {strides = array<i32>} : memref<8x64xf32, #tpu.memory_space<vmem>>, vector<1x32xf32>,
    %168 = vector.extract_strided_slice %163 {offsets = [0, 0], sizes = [1, 32], strides = [1, 1]} : vector<1x64xf32> to vector<1x32xf32>
    %c2_71 = arith.constant 2 : index
    %c0_72 = arith.constant 0 : index
    %169 = vector.load %arg13[%c2_71, %c0_72] : memref<8x64xf32, #tpu.memory_space<vmem>>, vector<1x32xf32>
    tpu.vector_store %arg13[%c2_71, %c0_72], %168 {strides = array<i32>} : memref<8x64xf32, #tpu.memory_space<vmem>>, vector<1x32xf32>,
    %170 = vector.extract_strided_slice %163 {offsets = [0, 32], sizes = [1, 32], strides = [1, 1]} : vector<1x64xf32> to vector<1x32xf32>
    %c5_73 = arith.constant 5 : index
    %c32_74 = arith.constant 32 : index
    %171 = vector.load %arg13[%c5_73, %c32_74] : memref<8x64xf32, #tpu.memory_space<vmem>>, vector<1x32xf32>
    tpu.vector_store %arg13[%c5_73, %c32_74], %170 {strides = array<i32>} : memref<8x64xf32, #tpu.memory_space<vmem>>, vector<1x32xf32>,
    %c6_75 = arith.constant 6 : index
    %c0_76 = arith.constant 0 : index
    %172 = vector.load %arg11[%c6_75, %c0_76] : memref<8x256xf32, #tpu.memory_space<vmem>>, vector<1x256xf32>
    %cst_77 = arith.constant dense<0.000000e+00> : vector<1x256xf32>
    %173 = tpu.matmul %163, %7, %cst_77 {dimension_numbers = #tpu.dot_dimension_numbers<[1], [0], [0], [1], [0, 0, 1, 1], [], []>} : vector<1x64xf32>, vector<64x256xf32>, vector<1x256xf32> -> vector<1x256xf32>
    %174 = arith.addf %172, %173 : vector<1x256xf32>
    %175 = vector.extract_strided_slice %174 {offsets = [0, 0], sizes = [1, 192], strides = [1, 1]} : vector<1x256xf32> to vector<1x192xf32>
    %176 = arith.negf %175 : vector<1x192xf32>
    %177 = math.exp %176 : vector<1x192xf32>
    %cst_78 = arith.constant 1.000000e+00 : f32
    %178 = vector.broadcast %cst_78 : f32 to vector<1x192xf32>
    %179 = arith.addf %178, %177 : vector<1x192xf32>
    %180 = arith.divf %178, %179 : vector<1x192xf32>
    %181 = vector.extract_strided_slice %180 {offsets = [0, 0], sizes = [1, 64], strides = [1, 1]} : vector<1x192xf32> to vector<1x64xf32>
    %182 = vector.extract_strided_slice %180 {offsets = [0, 64], sizes = [1, 64], strides = [1, 1]} : vector<1x192xf32> to vector<1x64xf32>
    %183 = vector.extract_strided_slice %180 {offsets = [0, 128], sizes = [1, 64], strides = [1, 1]} : vector<1x192xf32> to vector<1x64xf32>
    %184 = vector.extract_strided_slice %174 {offsets = [0, 192], sizes = [1, 64], strides = [1, 1]} : vector<1x256xf32> to vector<1x64xf32>
    %185 = math.tanh %184 : vector<1x64xf32>
    %186 = arith.mulf %182, %161 : vector<1x64xf32>
    %187 = arith.mulf %181, %185 : vector<1x64xf32>
    %188 = arith.addf %186, %187 : vector<1x64xf32>
    %189 = math.tanh %188 : vector<1x64xf32>
    %190 = arith.mulf %183, %189 : vector<1x64xf32>
    %191 = vector.extract_strided_slice %190 {offsets = [0, 0], sizes = [1, 32], strides = [1, 1]} : vector<1x64xf32> to vector<1x32xf32>
    %c6_79 = arith.constant 6 : index
    %c0_80 = arith.constant 0 : index
    %192 = vector.load %arg12[%c6_79, %c0_80] : memref<8x64xf32, #tpu.memory_space<vmem>>, vector<1x32xf32>
    tpu.vector_store %arg12[%c6_79, %c0_80], %191 {strides = array<i32>} : memref<8x64xf32, #tpu.memory_space<vmem>>, vector<1x32xf32>,
    %193 = vector.extract_strided_slice %190 {offsets = [0, 32], sizes = [1, 32], strides = [1, 1]} : vector<1x64xf32> to vector<1x32xf32>
    %c1_81 = arith.constant 1 : index
    %c32_82 = arith.constant 32 : index
    %194 = vector.load %arg12[%c1_81, %c32_82] : memref<8x64xf32, #tpu.memory_space<vmem>>, vector<1x32xf32>
    tpu.vector_store %arg12[%c1_81, %c32_82], %193 {strides = array<i32>} : memref<8x64xf32, #tpu.memory_space<vmem>>, vector<1x32xf32>,
    %195 = vector.extract_strided_slice %190 {offsets = [0, 0], sizes = [1, 32], strides = [1, 1]} : vector<1x64xf32> to vector<1x32xf32>
    %c1_83 = arith.constant 1 : index
    %c0_84 = arith.constant 0 : index
    %196 = vector.load %arg13[%c1_83, %c0_84] : memref<8x64xf32, #tpu.memory_space<vmem>>, vector<1x32xf32>
    tpu.vector_store %arg13[%c1_83, %c0_84], %195 {strides = array<i32>} : memref<8x64xf32, #tpu.memory_space<vmem>>, vector<1x32xf32>,
    %197 = vector.extract_strided_slice %190 {offsets = [0, 32], sizes = [1, 32], strides = [1, 1]} : vector<1x64xf32> to vector<1x32xf32>
    %c6_85 = arith.constant 6 : index
    %c32_86 = arith.constant 32 : index
    %198 = vector.load %arg13[%c6_85, %c32_86] : memref<8x64xf32, #tpu.memory_space<vmem>>, vector<1x32xf32>
    tpu.vector_store %arg13[%c6_85, %c32_86], %197 {strides = array<i32>} : memref<8x64xf32, #tpu.memory_space<vmem>>, vector<1x32xf32>,
    %c7_87 = arith.constant 7 : index
    %c0_88 = arith.constant 0 : index
    %199 = vector.load %arg11[%c7_87, %c0_88] : memref<8x256xf32, #tpu.memory_space<vmem>>, vector<1x256xf32>
    %cst_89 = arith.constant dense<0.000000e+00> : vector<1x256xf32>
    %200 = tpu.matmul %190, %7, %cst_89 {dimension_numbers = #tpu.dot_dimension_numbers<[1], [0], [0], [1], [0, 0, 1, 1], [], []>} : vector<1x64xf32>, vector<64x256xf32>, vector<1x256xf32> -> vector<1x256xf32>
    %201 = arith.addf %199, %200 : vector<1x256xf32>
    %202 = vector.extract_strided_slice %201 {offsets = [0, 0], sizes = [1, 192], strides = [1, 1]} : vector<1x256xf32> to vector<1x192xf32>
    %203 = arith.negf %202 : vector<1x192xf32>
    %204 = math.exp %203 : vector<1x192xf32>
    %cst_90 = arith.constant 1.000000e+00 : f32
    %205 = vector.broadcast %cst_90 : f32 to vector<1x192xf32>
    %206 = arith.addf %205, %204 : vector<1x192xf32>
    %207 = arith.divf %205, %206 : vector<1x192xf32>
    %208 = vector.extract_strided_slice %207 {offsets = [0, 0], sizes = [1, 64], strides = [1, 1]} : vector<1x192xf32> to vector<1x64xf32>
    %209 = vector.extract_strided_slice %207 {offsets = [0, 64], sizes = [1, 64], strides = [1, 1]} : vector<1x192xf32> to vector<1x64xf32>
    %210 = vector.extract_strided_slice %207 {offsets = [0, 128], sizes = [1, 64], strides = [1, 1]} : vector<1x192xf32> to vector<1x64xf32>
    %211 = vector.extract_strided_slice %201 {offsets = [0, 192], sizes = [1, 64], strides = [1, 1]} : vector<1x256xf32> to vector<1x64xf32>
    %212 = math.tanh %211 : vector<1x64xf32>
    %213 = arith.mulf %209, %188 : vector<1x64xf32>
    %214 = arith.mulf %208, %212 : vector<1x64xf32>
    %215 = arith.addf %213, %214 : vector<1x64xf32>
    %216 = math.tanh %215 : vector<1x64xf32>
    %217 = arith.mulf %210, %216 : vector<1x64xf32>
    %218 = vector.extract_strided_slice %217 {offsets = [0, 0], sizes = [1, 32], strides = [1, 1]} : vector<1x64xf32> to vector<1x32xf32>
    %c7_91 = arith.constant 7 : index
    %c0_92 = arith.constant 0 : index
    %219 = vector.load %arg12[%c7_91, %c0_92] : memref<8x64xf32, #tpu.memory_space<vmem>>, vector<1x32xf32>
    tpu.vector_store %arg12[%c7_91, %c0_92], %218 {strides = array<i32>} : memref<8x64xf32, #tpu.memory_space<vmem>>, vector<1x32xf32>,
    %220 = vector.extract_strided_slice %217 {offsets = [0, 32], sizes = [1, 32], strides = [1, 1]} : vector<1x64xf32> to vector<1x32xf32>
    %c0_93 = arith.constant 0 : index
    %c32_94 = arith.constant 32 : index
    %221 = vector.load %arg12[%c0_93, %c32_94] : memref<8x64xf32, #tpu.memory_space<vmem>>, vector<1x32xf32>
    tpu.vector_store %arg12[%c0_93, %c32_94], %220 {strides = array<i32>} : memref<8x64xf32, #tpu.memory_space<vmem>>, vector<1x32xf32>,
    %222 = vector.extract_strided_slice %217 {offsets = [0, 0], sizes = [1, 32], strides = [1, 1]} : vector<1x64xf32> to vector<1x32xf32>
    %c0_95 = arith.constant 0 : index
    %c0_96 = arith.constant 0 : index
    %223 = vector.load %arg13[%c0_95, %c0_96] : memref<8x64xf32, #tpu.memory_space<vmem>>, vector<1x32xf32>
    tpu.vector_store %arg13[%c0_95, %c0_96], %222 {strides = array<i32>} : memref<8x64xf32, #tpu.memory_space<vmem>>, vector<1x32xf32>,
    %224 = vector.extract_strided_slice %217 {offsets = [0, 32], sizes = [1, 32], strides = [1, 1]} : vector<1x64xf32> to vector<1x32xf32>
    %c7_97 = arith.constant 7 : index
    %c32_98 = arith.constant 32 : index
    %225 = vector.load %arg13[%c7_97, %c32_98] : memref<8x64xf32, #tpu.memory_space<vmem>>, vector<1x32xf32>
    tpu.vector_store %arg13[%c7_97, %c32_98], %224 {strides = array<i32>} : memref<8x64xf32, #tpu.memory_space<vmem>>, vector<1x32xf32>,
    %c0_99 = arith.constant 0 : index
    %c0_100 = arith.constant 0 : index
    %226 = vector.load %arg12[%c0_99, %c0_100] : memref<8x64xf32, #tpu.memory_space<vmem>>, vector<8x64xf32>
    %c0_101 = arith.constant 0 : index
    %c0_102 = arith.constant 0 : index
    %227 = vector.load %arg4[%c0_101, %c0_102] : memref<64x256xf32, #tpu.memory_space<vmem>>, vector<64x256xf32>
    %cst_103 = arith.constant dense<0.000000e+00> : vector<8x256xf32>
    %228 = tpu.matmul %226, %227, %cst_103 {dimension_numbers = #tpu.dot_dimension_numbers<[1], [0], [0], [1], [0, 0, 1, 1], [], []>} : vector<8x64xf32>, vector<64x256xf32>, vector<8x256xf32> -> vector<8x256xf32>
    %c0_104 = arith.constant 0 : index
    %c0_105 = arith.constant 0 : index
    %229 = vector.load %arg13[%c0_104, %c0_105] : memref<8x64xf32, #tpu.memory_space<vmem>>, vector<8x64xf32>
    %c0_106 = arith.constant 0 : index
    %c0_107 = arith.constant 0 : index
    %230 = vector.load %arg5[%c0_106, %c0_107] : memref<64x256xf32, #tpu.memory_space<vmem>>, vector<64x256xf32>
    %cst_108 = arith.constant dense<0.000000e+00> : vector<8x256xf32>
    %231 = tpu.matmul %229, %230, %cst_108 {dimension_numbers = #tpu.dot_dimension_numbers<[1], [0], [0], [1], [0, 0, 1, 1], [], []>} : vector<8x64xf32>, vector<64x256xf32>, vector<8x256xf32> -> vector<8x256xf32>
    %232 = arith.addf %228, %231 : vector<8x256xf32>
    %c0_109 = arith.constant 0 : index
    %c0_110 = arith.constant 0 : index
    %233 = vector.load %arg7[%c0_109, %c0_110] : memref<1x256xf32, #tpu.memory_space<vmem>>, vector<1x256xf32>
    %234 = vector.broadcast %233 : vector<1x256xf32> to vector<8x256xf32>
    %235 = arith.addf %232, %234 : vector<8x256xf32>
    %c0_111 = arith.constant 0 : index
    %c0_112 = arith.constant 0 : index
    %236 = vector.load %arg11[%c0_111, %c0_112] : memref<8x256xf32, #tpu.memory_space<vmem>>, vector<8x256xf32>
    tpu.vector_store %arg11[%c0_111, %c0_112], %235 {strides = array<i32>} : memref<8x256xf32, #tpu.memory_space<vmem>>, vector<8x256xf32>,
    %c0_113 = arith.constant 0 : index
    %c0_114 = arith.constant 0 : index
    %237 = vector.load %arg6[%c0_113, %c0_114] : memref<64x256xf32, #tpu.memory_space<vmem>>, vector<64x256xf32>
    %cst_115 = arith.constant 0.000000e+00 : f32
    %238 = vector.broadcast %cst_115 : f32 to vector<1x64xf32>
    %cst_116 = arith.constant 0.000000e+00 : f32
    %239 = vector.broadcast %cst_116 : f32 to vector<1x64xf32>
    %c0_117 = arith.constant 0 : index
    %c0_118 = arith.constant 0 : index
    %240 = vector.load %arg11[%c0_117, %c0_118] : memref<8x256xf32, #tpu.memory_space<vmem>>, vector<1x256xf32>
    %cst_119 = arith.constant dense<0.000000e+00> : vector<1x256xf32>
    %241 = tpu.matmul %238, %237, %cst_119 {dimension_numbers = #tpu.dot_dimension_numbers<[1], [0], [0], [1], [0, 0, 1, 1], [], []>} : vector<1x64xf32>, vector<64x256xf32>, vector<1x256xf32> -> vector<1x256xf32>
    %242 = arith.addf %240, %241 : vector<1x256xf32>
    %243 = vector.extract_strided_slice %242 {offsets = [0, 0], sizes = [1, 192], strides = [1, 1]} : vector<1x256xf32> to vector<1x192xf32>
    %244 = arith.negf %243 : vector<1x192xf32>
    %245 = math.exp %244 : vector<1x192xf32>
    %cst_120 = arith.constant 1.000000e+00 : f32
    %246 = vector.broadcast %cst_120 : f32 to vector<1x192xf32>
    %247 = arith.addf %246, %245 : vector<1x192xf32>
    %248 = arith.divf %246, %247 : vector<1x192xf32>
    %249 = vector.extract_strided_slice %248 {offsets = [0, 0], sizes = [1, 64], strides = [1, 1]} : vector<1x192xf32> to vector<1x64xf32>
    %250 = vector.extract_strided_slice %248 {offsets = [0, 64], sizes = [1, 64], strides = [1, 1]} : vector<1x192xf32> to vector<1x64xf32>
    %251 = vector.extract_strided_slice %248 {offsets = [0, 128], sizes = [1, 64], strides = [1, 1]} : vector<1x192xf32> to vector<1x64xf32>
    %252 = vector.extract_strided_slice %242 {offsets = [0, 192], sizes = [1, 64], strides = [1, 1]} : vector<1x256xf32> to vector<1x64xf32>
    %253 = math.tanh %252 : vector<1x64xf32>
    %254 = arith.mulf %250, %239 : vector<1x64xf32>
    %255 = arith.mulf %249, %253 : vector<1x64xf32>
    %256 = arith.addf %254, %255 : vector<1x64xf32>
    %257 = math.tanh %256 : vector<1x64xf32>
    %258 = arith.mulf %251, %257 : vector<1x64xf32>
    %259 = vector.extract_strided_slice %258 {offsets = [0, 0], sizes = [1, 32], strides = [1, 1]} : vector<1x64xf32> to vector<1x32xf32>
    %c0_121 = arith.constant 0 : index
    %c0_122 = arith.constant 0 : index
    %260 = vector.load %arg14[%c0_121, %c0_122] : memref<8x64xf32, #tpu.memory_space<vmem>>, vector<1x32xf32>
    tpu.vector_store %arg14[%c0_121, %c0_122], %259 {strides = array<i32>} : memref<8x64xf32, #tpu.memory_space<vmem>>, vector<1x32xf32>,
    %261 = vector.extract_strided_slice %258 {offsets = [0, 32], sizes = [1, 32], strides = [1, 1]} : vector<1x64xf32> to vector<1x32xf32>
    %c7_123 = arith.constant 7 : index
    %c32_124 = arith.constant 32 : index
    %262 = vector.load %arg14[%c7_123, %c32_124] : memref<8x64xf32, #tpu.memory_space<vmem>>, vector<1x32xf32>
    tpu.vector_store %arg14[%c7_123, %c32_124], %261 {strides = array<i32>} : memref<8x64xf32, #tpu.memory_space<vmem>>, vector<1x32xf32>,
    %c1_125 = arith.constant 1 : index
    %c0_126 = arith.constant 0 : index
    %263 = vector.load %arg11[%c1_125, %c0_126] : memref<8x256xf32, #tpu.memory_space<vmem>>, vector<1x256xf32>
    %cst_127 = arith.constant dense<0.000000e+00> : vector<1x256xf32>
    %264 = tpu.matmul %258, %237, %cst_127 {dimension_numbers = #tpu.dot_dimension_numbers<[1], [0], [0], [1], [0, 0, 1, 1], [], []>} : vector<1x64xf32>, vector<64x256xf32>, vector<1x256xf32> -> vector<1x256xf32>
    %265 = arith.addf %263, %264 : vector<1x256xf32>
    %266 = vector.extract_strided_slice %265 {offsets = [0, 0], sizes = [1, 192], strides = [1, 1]} : vector<1x256xf32> to vector<1x192xf32>
    %267 = arith.negf %266 : vector<1x192xf32>
    %268 = math.exp %267 : vector<1x192xf32>
    %cst_128 = arith.constant 1.000000e+00 : f32
    %269 = vector.broadcast %cst_128 : f32 to vector<1x192xf32>
    %270 = arith.addf %269, %268 : vector<1x192xf32>
    %271 = arith.divf %269, %270 : vector<1x192xf32>
    %272 = vector.extract_strided_slice %271 {offsets = [0, 0], sizes = [1, 64], strides = [1, 1]} : vector<1x192xf32> to vector<1x64xf32>
    %273 = vector.extract_strided_slice %271 {offsets = [0, 64], sizes = [1, 64], strides = [1, 1]} : vector<1x192xf32> to vector<1x64xf32>
    %274 = vector.extract_strided_slice %271 {offsets = [0, 128], sizes = [1, 64], strides = [1, 1]} : vector<1x192xf32> to vector<1x64xf32>
    %275 = vector.extract_strided_slice %265 {offsets = [0, 192], sizes = [1, 64], strides = [1, 1]} : vector<1x256xf32> to vector<1x64xf32>
    %276 = math.tanh %275 : vector<1x64xf32>
    %277 = arith.mulf %273, %256 : vector<1x64xf32>
    %278 = arith.mulf %272, %276 : vector<1x64xf32>
    %279 = arith.addf %277, %278 : vector<1x64xf32>
    %280 = math.tanh %279 : vector<1x64xf32>
    %281 = arith.mulf %274, %280 : vector<1x64xf32>
    %282 = vector.extract_strided_slice %281 {offsets = [0, 0], sizes = [1, 32], strides = [1, 1]} : vector<1x64xf32> to vector<1x32xf32>
    %c1_129 = arith.constant 1 : index
    %c0_130 = arith.constant 0 : index
    %283 = vector.load %arg14[%c1_129, %c0_130] : memref<8x64xf32, #tpu.memory_space<vmem>>, vector<1x32xf32>
    tpu.vector_store %arg14[%c1_129, %c0_130], %282 {strides = array<i32>} : memref<8x64xf32, #tpu.memory_space<vmem>>, vector<1x32xf32>,
    %284 = vector.extract_strided_slice %281 {offsets = [0, 32], sizes = [1, 32], strides = [1, 1]} : vector<1x64xf32> to vector<1x32xf32>
    %c6_131 = arith.constant 6 : index
    %c32_132 = arith.constant 32 : index
    %285 = vector.load %arg14[%c6_131, %c32_132] : memref<8x64xf32, #tpu.memory_space<vmem>>, vector<1x32xf32>
    tpu.vector_store %arg14[%c6_131, %c32_132], %284 {strides = array<i32>} : memref<8x64xf32, #tpu.memory_space<vmem>>, vector<1x32xf32>,
    %c2_133 = arith.constant 2 : index
    %c0_134 = arith.constant 0 : index
    %286 = vector.load %arg11[%c2_133, %c0_134] : memref<8x256xf32, #tpu.memory_space<vmem>>, vector<1x256xf32>
    %cst_135 = arith.constant dense<0.000000e+00> : vector<1x256xf32>
    %287 = tpu.matmul %281, %237, %cst_135 {dimension_numbers = #tpu.dot_dimension_numbers<[1], [0], [0], [1], [0, 0, 1, 1], [], []>} : vector<1x64xf32>, vector<64x256xf32>, vector<1x256xf32> -> vector<1x256xf32>
    %288 = arith.addf %286, %287 : vector<1x256xf32>
    %289 = vector.extract_strided_slice %288 {offsets = [0, 0], sizes = [1, 192], strides = [1, 1]} : vector<1x256xf32> to vector<1x192xf32>
    %290 = arith.negf %289 : vector<1x192xf32>
    %291 = math.exp %290 : vector<1x192xf32>
    %cst_136 = arith.constant 1.000000e+00 : f32
    %292 = vector.broadcast %cst_136 : f32 to vector<1x192xf32>
    %293 = arith.addf %292, %291 : vector<1x192xf32>
    %294 = arith.divf %292, %293 : vector<1x192xf32>
    %295 = vector.extract_strided_slice %294 {offsets = [0, 0], sizes = [1, 64], strides = [1, 1]} : vector<1x192xf32> to vector<1x64xf32>
    %296 = vector.extract_strided_slice %294 {offsets = [0, 64], sizes = [1, 64], strides = [1, 1]} : vector<1x192xf32> to vector<1x64xf32>
    %297 = vector.extract_strided_slice %294 {offsets = [0, 128], sizes = [1, 64], strides = [1, 1]} : vector<1x192xf32> to vector<1x64xf32>
    %298 = vector.extract_strided_slice %288 {offsets = [0, 192], sizes = [1, 64], strides = [1, 1]} : vector<1x256xf32> to vector<1x64xf32>
    %299 = math.tanh %298 : vector<1x64xf32>
    %300 = arith.mulf %296, %279 : vector<1x64xf32>
    %301 = arith.mulf %295, %299 : vector<1x64xf32>
    %302 = arith.addf %300, %301 : vector<1x64xf32>
    %303 = math.tanh %302 : vector<1x64xf32>
    %304 = arith.mulf %297, %303 : vector<1x64xf32>
    %305 = vector.extract_strided_slice %304 {offsets = [0, 0], sizes = [1, 32], strides = [1, 1]} : vector<1x64xf32> to vector<1x32xf32>
    %c2_137 = arith.constant 2 : index
    %c0_138 = arith.constant 0 : index
    %306 = vector.load %arg14[%c2_137, %c0_138] : memref<8x64xf32, #tpu.memory_space<vmem>>, vector<1x32xf32>
    tpu.vector_store %arg14[%c2_137, %c0_138], %305 {strides = array<i32>} : memref<8x64xf32, #tpu.memory_space<vmem>>, vector<1x32xf32>,
    %307 = vector.extract_strided_slice %304 {offsets = [0, 32], sizes = [1, 32], strides = [1, 1]} : vector<1x64xf32> to vector<1x32xf32>
    %c5_139 = arith.constant 5 : index
    %c32_140 = arith.constant 32 : index
    %308 = vector.load %arg14[%c5_139, %c32_140] : memref<8x64xf32, #tpu.memory_space<vmem>>, vector<1x32xf32>
    tpu.vector_store %arg14[%c5_139, %c32_140], %307 {strides = array<i32>} : memref<8x64xf32, #tpu.memory_space<vmem>>, vector<1x32xf32>,
    %c3_141 = arith.constant 3 : index
    %c0_142 = arith.constant 0 : index
    %309 = vector.load %arg11[%c3_141, %c0_142] : memref<8x256xf32, #tpu.memory_space<vmem>>, vector<1x256xf32>
    %cst_143 = arith.constant dense<0.000000e+00> : vector<1x256xf32>
    %310 = tpu.matmul %304, %237, %cst_143 {dimension_numbers = #tpu.dot_dimension_numbers<[1], [0], [0], [1], [0, 0, 1, 1], [], []>} : vector<1x64xf32>, vector<64x256xf32>, vector<1x256xf32> -> vector<1x256xf32>
    %311 = arith.addf %309, %310 : vector<1x256xf32>
    %312 = vector.extract_strided_slice %311 {offsets = [0, 0], sizes = [1, 192], strides = [1, 1]} : vector<1x256xf32> to vector<1x192xf32>
    %313 = arith.negf %312 : vector<1x192xf32>
    %314 = math.exp %313 : vector<1x192xf32>
    %cst_144 = arith.constant 1.000000e+00 : f32
    %315 = vector.broadcast %cst_144 : f32 to vector<1x192xf32>
    %316 = arith.addf %315, %314 : vector<1x192xf32>
    %317 = arith.divf %315, %316 : vector<1x192xf32>
    %318 = vector.extract_strided_slice %317 {offsets = [0, 0], sizes = [1, 64], strides = [1, 1]} : vector<1x192xf32> to vector<1x64xf32>
    %319 = vector.extract_strided_slice %317 {offsets = [0, 64], sizes = [1, 64], strides = [1, 1]} : vector<1x192xf32> to vector<1x64xf32>
    %320 = vector.extract_strided_slice %317 {offsets = [0, 128], sizes = [1, 64], strides = [1, 1]} : vector<1x192xf32> to vector<1x64xf32>
    %321 = vector.extract_strided_slice %311 {offsets = [0, 192], sizes = [1, 64], strides = [1, 1]} : vector<1x256xf32> to vector<1x64xf32>
    %322 = math.tanh %321 : vector<1x64xf32>
    %323 = arith.mulf %319, %302 : vector<1x64xf32>
    %324 = arith.mulf %318, %322 : vector<1x64xf32>
    %325 = arith.addf %323, %324 : vector<1x64xf32>
    %326 = math.tanh %325 : vector<1x64xf32>
    %327 = arith.mulf %320, %326 : vector<1x64xf32>
    %328 = vector.extract_strided_slice %327 {offsets = [0, 0], sizes = [1, 32], strides = [1, 1]} : vector<1x64xf32> to vector<1x32xf32>
    %c3_145 = arith.constant 3 : index
    %c0_146 = arith.constant 0 : index
    %329 = vector.load %arg14[%c3_145, %c0_146] : memref<8x64xf32, #tpu.memory_space<vmem>>, vector<1x32xf32>
    tpu.vector_store %arg14[%c3_145, %c0_146], %328 {strides = array<i32>} : memref<8x64xf32, #tpu.memory_space<vmem>>, vector<1x32xf32>,
    %330 = vector.extract_strided_slice %327 {offsets = [0, 32], sizes = [1, 32], strides = [1, 1]} : vector<1x64xf32> to vector<1x32xf32>
    %c4_147 = arith.constant 4 : index
    %c32_148 = arith.constant 32 : index
    %331 = vector.load %arg14[%c4_147, %c32_148] : memref<8x64xf32, #tpu.memory_space<vmem>>, vector<1x32xf32>
    tpu.vector_store %arg14[%c4_147, %c32_148], %330 {strides = array<i32>} : memref<8x64xf32, #tpu.memory_space<vmem>>, vector<1x32xf32>,
    %c4_149 = arith.constant 4 : index
    %c0_150 = arith.constant 0 : index
    %332 = vector.load %arg11[%c4_149, %c0_150] : memref<8x256xf32, #tpu.memory_space<vmem>>, vector<1x256xf32>
    %cst_151 = arith.constant dense<0.000000e+00> : vector<1x256xf32>
    %333 = tpu.matmul %327, %237, %cst_151 {dimension_numbers = #tpu.dot_dimension_numbers<[1], [0], [0], [1], [0, 0, 1, 1], [], []>} : vector<1x64xf32>, vector<64x256xf32>, vector<1x256xf32> -> vector<1x256xf32>
    %334 = arith.addf %332, %333 : vector<1x256xf32>
    %335 = vector.extract_strided_slice %334 {offsets = [0, 0], sizes = [1, 192], strides = [1, 1]} : vector<1x256xf32> to vector<1x192xf32>
    %336 = arith.negf %335 : vector<1x192xf32>
    %337 = math.exp %336 : vector<1x192xf32>
    %cst_152 = arith.constant 1.000000e+00 : f32
    %338 = vector.broadcast %cst_152 : f32 to vector<1x192xf32>
    %339 = arith.addf %338, %337 : vector<1x192xf32>
    %340 = arith.divf %338, %339 : vector<1x192xf32>
    %341 = vector.extract_strided_slice %340 {offsets = [0, 0], sizes = [1, 64], strides = [1, 1]} : vector<1x192xf32> to vector<1x64xf32>
    %342 = vector.extract_strided_slice %340 {offsets = [0, 64], sizes = [1, 64], strides = [1, 1]} : vector<1x192xf32> to vector<1x64xf32>
    %343 = vector.extract_strided_slice %340 {offsets = [0, 128], sizes = [1, 64], strides = [1, 1]} : vector<1x192xf32> to vector<1x64xf32>
    %344 = vector.extract_strided_slice %334 {offsets = [0, 192], sizes = [1, 64], strides = [1, 1]} : vector<1x256xf32> to vector<1x64xf32>
    %345 = math.tanh %344 : vector<1x64xf32>
    %346 = arith.mulf %342, %325 : vector<1x64xf32>
    %347 = arith.mulf %341, %345 : vector<1x64xf32>
    %348 = arith.addf %346, %347 : vector<1x64xf32>
    %349 = math.tanh %348 : vector<1x64xf32>
    %350 = arith.mulf %343, %349 : vector<1x64xf32>
    %351 = vector.extract_strided_slice %350 {offsets = [0, 0], sizes = [1, 32], strides = [1, 1]} : vector<1x64xf32> to vector<1x32xf32>
    %c4_153 = arith.constant 4 : index
    %c0_154 = arith.constant 0 : index
    %352 = vector.load %arg14[%c4_153, %c0_154] : memref<8x64xf32, #tpu.memory_space<vmem>>, vector<1x32xf32>
    tpu.vector_store %arg14[%c4_153, %c0_154], %351 {strides = array<i32>} : memref<8x64xf32, #tpu.memory_space<vmem>>, vector<1x32xf32>,
    %353 = vector.extract_strided_slice %350 {offsets = [0, 32], sizes = [1, 32], strides = [1, 1]} : vector<1x64xf32> to vector<1x32xf32>
    %c3_155 = arith.constant 3 : index
    %c32_156 = arith.constant 32 : index
    %354 = vector.load %arg14[%c3_155, %c32_156] : memref<8x64xf32, #tpu.memory_space<vmem>>, vector<1x32xf32>
    tpu.vector_store %arg14[%c3_155, %c32_156], %353 {strides = array<i32>} : memref<8x64xf32, #tpu.memory_space<vmem>>, vector<1x32xf32>,
    %c5_157 = arith.constant 5 : index
    %c0_158 = arith.constant 0 : index
    %355 = vector.load %arg11[%c5_157, %c0_158] : memref<8x256xf32, #tpu.memory_space<vmem>>, vector<1x256xf32>
    %cst_159 = arith.constant dense<0.000000e+00> : vector<1x256xf32>
    %356 = tpu.matmul %350, %237, %cst_159 {dimension_numbers = #tpu.dot_dimension_numbers<[1], [0], [0], [1], [0, 0, 1, 1], [], []>} : vector<1x64xf32>, vector<64x256xf32>, vector<1x256xf32> -> vector<1x256xf32>
    %357 = arith.addf %355, %356 : vector<1x256xf32>
    %358 = vector.extract_strided_slice %357 {offsets = [0, 0], sizes = [1, 192], strides = [1, 1]} : vector<1x256xf32> to vector<1x192xf32>
    %359 = arith.negf %358 : vector<1x192xf32>
    %360 = math.exp %359 : vector<1x192xf32>
    %cst_160 = arith.constant 1.000000e+00 : f32
    %361 = vector.broadcast %cst_160 : f32 to vector<1x192xf32>
    %362 = arith.addf %361, %360 : vector<1x192xf32>
    %363 = arith.divf %361, %362 : vector<1x192xf32>
    %364 = vector.extract_strided_slice %363 {offsets = [0, 0], sizes = [1, 64], strides = [1, 1]} : vector<1x192xf32> to vector<1x64xf32>
    %365 = vector.extract_strided_slice %363 {offsets = [0, 64], sizes = [1, 64], strides = [1, 1]} : vector<1x192xf32> to vector<1x64xf32>
    %366 = vector.extract_strided_slice %363 {offsets = [0, 128], sizes = [1, 64], strides = [1, 1]} : vector<1x192xf32> to vector<1x64xf32>
    %367 = vector.extract_strided_slice %357 {offsets = [0, 192], sizes = [1, 64], strides = [1, 1]} : vector<1x256xf32> to vector<1x64xf32>
    %368 = math.tanh %367 : vector<1x64xf32>
    %369 = arith.mulf %365, %348 : vector<1x64xf32>
    %370 = arith.mulf %364, %368 : vector<1x64xf32>
    %371 = arith.addf %369, %370 : vector<1x64xf32>
    %372 = math.tanh %371 : vector<1x64xf32>
    %373 = arith.mulf %366, %372 : vector<1x64xf32>
    %374 = vector.extract_strided_slice %373 {offsets = [0, 0], sizes = [1, 32], strides = [1, 1]} : vector<1x64xf32> to vector<1x32xf32>
    %c5_161 = arith.constant 5 : index
    %c0_162 = arith.constant 0 : index
    %375 = vector.load %arg14[%c5_161, %c0_162] : memref<8x64xf32, #tpu.memory_space<vmem>>, vector<1x32xf32>
    tpu.vector_store %arg14[%c5_161, %c0_162], %374 {strides = array<i32>} : memref<8x64xf32, #tpu.memory_space<vmem>>, vector<1x32xf32>,
    %376 = vector.extract_strided_slice %373 {offsets = [0, 32], sizes = [1, 32], strides = [1, 1]} : vector<1x64xf32> to vector<1x32xf32>
    %c2_163 = arith.constant 2 : index
    %c32_164 = arith.constant 32 : index
    %377 = vector.load %arg14[%c2_163, %c32_164] : memref<8x64xf32, #tpu.memory_space<vmem>>, vector<1x32xf32>
    tpu.vector_store %arg14[%c2_163, %c32_164], %376 {strides = array<i32>} : memref<8x64xf32, #tpu.memory_space<vmem>>, vector<1x32xf32>,
    %c6_165 = arith.constant 6 : index
    %c0_166 = arith.constant 0 : index
    %378 = vector.load %arg11[%c6_165, %c0_166] : memref<8x256xf32, #tpu.memory_space<vmem>>, vector<1x256xf32>
    %cst_167 = arith.constant dense<0.000000e+00> : vector<1x256xf32>
    %379 = tpu.matmul %373, %237, %cst_167 {dimension_numbers = #tpu.dot_dimension_numbers<[1], [0], [0], [1], [0, 0, 1, 1], [], []>} : vector<1x64xf32>, vector<64x256xf32>, vector<1x256xf32> -> vector<1x256xf32>
    %380 = arith.addf %378, %379 : vector<1x256xf32>
    %381 = vector.extract_strided_slice %380 {offsets = [0, 0], sizes = [1, 192], strides = [1, 1]} : vector<1x256xf32> to vector<1x192xf32>
    %382 = arith.negf %381 : vector<1x192xf32>
    %383 = math.exp %382 : vector<1x192xf32>
    %cst_168 = arith.constant 1.000000e+00 : f32
    %384 = vector.broadcast %cst_168 : f32 to vector<1x192xf32>
    %385 = arith.addf %384, %383 : vector<1x192xf32>
    %386 = arith.divf %384, %385 : vector<1x192xf32>
    %387 = vector.extract_strided_slice %386 {offsets = [0, 0], sizes = [1, 64], strides = [1, 1]} : vector<1x192xf32> to vector<1x64xf32>
    %388 = vector.extract_strided_slice %386 {offsets = [0, 64], sizes = [1, 64], strides = [1, 1]} : vector<1x192xf32> to vector<1x64xf32>
    %389 = vector.extract_strided_slice %386 {offsets = [0, 128], sizes = [1, 64], strides = [1, 1]} : vector<1x192xf32> to vector<1x64xf32>
    %390 = vector.extract_strided_slice %380 {offsets = [0, 192], sizes = [1, 64], strides = [1, 1]} : vector<1x256xf32> to vector<1x64xf32>
    %391 = math.tanh %390 : vector<1x64xf32>
    %392 = arith.mulf %388, %371 : vector<1x64xf32>
    %393 = arith.mulf %387, %391 : vector<1x64xf32>
    %394 = arith.addf %392, %393 : vector<1x64xf32>
    %395 = math.tanh %394 : vector<1x64xf32>
    %396 = arith.mulf %389, %395 : vector<1x64xf32>
    %397 = vector.extract_strided_slice %396 {offsets = [0, 0], sizes = [1, 32], strides = [1, 1]} : vector<1x64xf32> to vector<1x32xf32>
    %c6_169 = arith.constant 6 : index
    %c0_170 = arith.constant 0 : index
    %398 = vector.load %arg14[%c6_169, %c0_170] : memref<8x64xf32, #tpu.memory_space<vmem>>, vector<1x32xf32>
    tpu.vector_store %arg14[%c6_169, %c0_170], %397 {strides = array<i32>} : memref<8x64xf32, #tpu.memory_space<vmem>>, vector<1x32xf32>,
    %399 = vector.extract_strided_slice %396 {offsets = [0, 32], sizes = [1, 32], strides = [1, 1]} : vector<1x64xf32> to vector<1x32xf32>
    %c1_171 = arith.constant 1 : index
    %c32_172 = arith.constant 32 : index
    %400 = vector.load %arg14[%c1_171, %c32_172] : memref<8x64xf32, #tpu.memory_space<vmem>>, vector<1x32xf32>
    tpu.vector_store %arg14[%c1_171, %c32_172], %399 {strides = array<i32>} : memref<8x64xf32, #tpu.memory_space<vmem>>, vector<1x32xf32>,
    %c7_173 = arith.constant 7 : index
    %c0_174 = arith.constant 0 : index
    %401 = vector.load %arg11[%c7_173, %c0_174] : memref<8x256xf32, #tpu.memory_space<vmem>>, vector<1x256xf32>
    %cst_175 = arith.constant dense<0.000000e+00> : vector<1x256xf32>
    %402 = tpu.matmul %396, %237, %cst_175 {dimension_numbers = #tpu.dot_dimension_numbers<[1], [0], [0], [1], [0, 0, 1, 1], [], []>} : vector<1x64xf32>, vector<64x256xf32>, vector<1x256xf32> -> vector<1x256xf32>
    %403 = arith.addf %401, %402 : vector<1x256xf32>
    %404 = vector.extract_strided_slice %403 {offsets = [0, 0], sizes = [1, 192], strides = [1, 1]} : vector<1x256xf32> to vector<1x192xf32>
    %405 = arith.negf %404 : vector<1x192xf32>
    %406 = math.exp %405 : vector<1x192xf32>
    %cst_176 = arith.constant 1.000000e+00 : f32
    %407 = vector.broadcast %cst_176 : f32 to vector<1x192xf32>
    %408 = arith.addf %407, %406 : vector<1x192xf32>
    %409 = arith.divf %407, %408 : vector<1x192xf32>
    %410 = vector.extract_strided_slice %409 {offsets = [0, 0], sizes = [1, 64], strides = [1, 1]} : vector<1x192xf32> to vector<1x64xf32>
    %411 = vector.extract_strided_slice %409 {offsets = [0, 64], sizes = [1, 64], strides = [1, 1]} : vector<1x192xf32> to vector<1x64xf32>
    %412 = vector.extract_strided_slice %409 {offsets = [0, 128], sizes = [1, 64], strides = [1, 1]} : vector<1x192xf32> to vector<1x64xf32>
    %413 = vector.extract_strided_slice %403 {offsets = [0, 192], sizes = [1, 64], strides = [1, 1]} : vector<1x256xf32> to vector<1x64xf32>
    %414 = math.tanh %413 : vector<1x64xf32>
    %415 = arith.mulf %411, %394 : vector<1x64xf32>
    %416 = arith.mulf %410, %414 : vector<1x64xf32>
    %417 = arith.addf %415, %416 : vector<1x64xf32>
    %418 = math.tanh %417 : vector<1x64xf32>
    %419 = arith.mulf %412, %418 : vector<1x64xf32>
    %420 = vector.extract_strided_slice %419 {offsets = [0, 0], sizes = [1, 32], strides = [1, 1]} : vector<1x64xf32> to vector<1x32xf32>
    %c7_177 = arith.constant 7 : index
    %c0_178 = arith.constant 0 : index
    %421 = vector.load %arg14[%c7_177, %c0_178] : memref<8x64xf32, #tpu.memory_space<vmem>>, vector<1x32xf32>
    tpu.vector_store %arg14[%c7_177, %c0_178], %420 {strides = array<i32>} : memref<8x64xf32, #tpu.memory_space<vmem>>, vector<1x32xf32>,
    %422 = vector.extract_strided_slice %419 {offsets = [0, 32], sizes = [1, 32], strides = [1, 1]} : vector<1x64xf32> to vector<1x32xf32>
    %c0_179 = arith.constant 0 : index
    %c32_180 = arith.constant 32 : index
    %423 = vector.load %arg14[%c0_179, %c32_180] : memref<8x64xf32, #tpu.memory_space<vmem>>, vector<1x32xf32>
    tpu.vector_store %arg14[%c0_179, %c32_180], %422 {strides = array<i32>} : memref<8x64xf32, #tpu.memory_space<vmem>>, vector<1x32xf32>,
    %c0_181 = arith.constant 0 : index
    %c0_182 = arith.constant 0 : index
    %424 = vector.load %arg14[%c0_181, %c0_182] : memref<8x64xf32, #tpu.memory_space<vmem>>, vector<8x64xf32>
    %c0_183 = arith.constant 0 : index
    %c0_184 = arith.constant 0 : index
    %425 = vector.load %arg8[%c0_183, %c0_184] : memref<64x1xf32, #tpu.memory_space<vmem>>, vector<64x1xf32>
    %cst_185 = arith.constant dense<0.000000e+00> : vector<8x1xf32>
    %426 = tpu.matmul %424, %425, %cst_185 {dimension_numbers = #tpu.dot_dimension_numbers<[1], [0], [0], [1], [0, 0, 1, 1], [], []>} : vector<8x64xf32>, vector<64x1xf32>, vector<8x1xf32> -> vector<8x1xf32>
    %c0_186 = arith.constant 0 : index
    %c0_187 = arith.constant 0 : index
    %427 = vector.load %arg9[%c0_186, %c0_187] : memref<1x1xf32, #tpu.memory_space<vmem>>, vector<1x1xf32>
    %428 = vector.broadcast %427 : vector<1x1xf32> to vector<8x1xf32>
    %429 = arith.addf %426, %428 : vector<8x1xf32>
    %430 = arith.negf %429 : vector<8x1xf32>
    %431 = math.exp %430 : vector<8x1xf32>
    %cst_188 = arith.constant 1.000000e+00 : f32
    %432 = vector.broadcast %cst_188 : f32 to vector<8x1xf32>
    %433 = arith.addf %432, %431 : vector<8x1xf32>
    %434 = arith.divf %432, %433 : vector<8x1xf32>
    %c0_189 = arith.constant 0 : index
    %c0_190 = arith.constant 0 : index
    %435 = vector.load %arg10[%c0_189, %c0_190] : memref<8x1xf32, #tpu.memory_space<vmem>>, vector<8x1xf32>
    tpu.vector_store %arg10[%c0_189, %c0_190], %434 {strides = array<i32>} : memref<8x1xf32, #tpu.memory_space<vmem>>, vector<8x1xf32>,
    return
  }
}

</mosaic_0001>

<bundles_post_ra>
// kernel: tpu_custom_call.1
= control target key start
LH: loop header
LB: loop body
LE: loop exit
PB: predicated region body
PF: predicated region fallthrough
CT: control target
= control target key end

     0   :  { %s2853_s0 = inlined_call_operand.hbm [shape: f32[8,32], index: 0, kind: input, shape index: {}]   ;;  %s2854_s1 = inlined_call_operand.vmem [shape: f32[32,256], index: 1, kind: input, shape index: {}]   ;;  %s2855_s2 = inlined_call_operand.hbm [shape: f32[64,256], index: 2, kind: input, shape index: {}]   ;;  %s2856_s3 = inlined_call_operand.vmem [shape: f32[1,256], index: 3, kind: input, shape index: {}]   ;;  %s2857_s4 = inlined_call_operand.hbm [shape: f32[64,256], index: 4, kind: input, shape index: {}]   ;;  %s2858_s5 = inlined_call_operand.hbm [shape: f32[64,256], index: 5, kind: input, shape index: {}]   ;;  %s2859_s6 = inlined_call_operand.hbm [shape: f32[64,256], index: 6, kind: input, shape index: {}]   ;;  %s2860_s7 = inlined_call_operand.vmem [shape: f32[1,256], index: 7, kind: input, shape index: {}]   ;;  %s2861_s8 = inlined_call_operand.vmem [shape: f32[64,1], index: 8, kind: input, shape index: {}]   ;;  %s2862_s9 = inlined_call_operand.<no memory space> [shape: f32[1,1], index: 9, kind: input, shape index: {}]   ;;  %s2863_s10 = inlined_call_operand.vmem [shape: f32[8,1], index: 10, kind: output, shape index: {}]  }
   0x1   :  { %v15_v0 = vstv %s2862_s9 }
   0x2   :  { %16 = vst [vmem:[#allocation6] sm:$0x1] %v15_v0 }
   0x3   :  { %17 = vsyncpa [#allocation8], 0 }
   0x4   :  { %18 = vsyncpa [#allocation10], 0  ;;  %s37_s17 = sshll.u32 %s2855_s2, 4  ;;  %s38_s17 = int_to_ptr.hbm [resolvable:$true] %s37_s17 }
   0x5   :  { %19 = vsyncpa [#allocation13], 0  ;;  %s2232_s18 = smov [#allocation9]   ;;  %s65_s22 = sshll.u32 %s2858_s5, 4  ;;  %s66_s22 = int_to_ptr.hbm [resolvable:$true] %s65_s22 }
   0x6   :  { %s39_s19 = sshll.u32 %s2232_s18, 4  ;;  %s2233_s23 = smov 256   ;;  %s40_s19 = int_to_ptr.vmem [resolvable:$true] %s39_s19 }
   0x7   :  { %s2234_s24 = smov 16   ;;  %s2235_s9 = smov [#allocation12]  }
   0x8   :  { %45 = dma.hbm_to_vmem [thread:$0]  %s38_s17, 2048, %s40_s19, [#allocation10], %s2233_s23, %s2233_s23, %s2234_s24  }
   0x9   :  { %s67_s25 = sshll.u32 %s2235_s9, 4  ;;  %s25_s28 = sshll.u32 %s2853_s0, 4  ;;  %s68_s25 = int_to_ptr.vmem [resolvable:$true] %s67_s25  ;;  %s26_s28 = int_to_ptr.hbm [resolvable:$true] %s25_s28 }
   0xa   :  { %73 = dma.hbm_to_vmem [thread:$0]  %s66_s22, 2048, %s68_s25, [#allocation13], %s2233_s23, %s2233_s23, %s2234_s24  }
   0xb   :  { %s52_s30 = sshll.u32 %s2857_s4, 4  ;;  %s2236_s11 = smov [#allocation7]   ;;  %s53_s30 = int_to_ptr.hbm [resolvable:$true] %s52_s30 }
   0xc   :  { %s27_s12 = sshll.u32 %s2236_s11, 4  ;;  %s2237_s5 = smov [#allocation11]   ;;  %s28_s12 = int_to_ptr.vmem [resolvable:$true] %s27_s12 }
   0xd   :  { %30 = dma.hbm_to_vmem [thread:$0]  %s26_s28, 128, %s28_s12, [#allocation8]  }
   0xe   :  { %s54_s13 = sshll.u32 %s2237_s5, 4  ;;  %s78_s16 = sshll.u32 %s2859_s6, 4  ;;  %s55_s13 = int_to_ptr.vmem [resolvable:$true] %s54_s13  ;;  %s79_s16 = int_to_ptr.hbm [resolvable:$true] %s78_s16 }
   0xf   :  { %60 = dma.hbm_to_vmem [thread:$0]  %s53_s30, 2048, %s55_s13, [#allocation10], %s2233_s23, %s2233_s23, %s2234_s24  }
  0x10   :  { %s2238_s0 = smov [#allocation14]  }
  0x11   :  { %s80_s17 = sshll.u32 %s2238_s0, 4  ;;  %s81_s17 = int_to_ptr.vmem [resolvable:$true] %s80_s17 }
  0x12   :  { %86 = dma.hbm_to_vmem [thread:$0]  %s79_s16, 2048, %s81_s17, [#allocation13], %s2233_s23, %s2233_s23, %s2234_s24  }
  0x13   :  { %2226 = dma.done.wait [#allocation8], 128  }
  0x14   :  { %2227 = vsyncadd [#allocation8], 4294967168 }
  0x15   :  { %2228 = dma.done.wait [#allocation10], 4096  }
  0x16   :  { %2229 = vsyncadd [#allocation10], 4294963200 }
  0x17   :  { %2230 = dma.done.wait [#allocation13], 4096  }
  0x18   :  { %2231 = vsyncadd [#allocation13], 4294963200  ;;  %v2314_v1 = vld [vmem:[#allocation9 + $0x78] sm:$0xff]  ;;  %v2316_v2 = vld [vmem:[#allocation9 + $0x70] sm:$0xff]  ;;  %vm128_vm0 = vcmask 261120   ;;  %v2239_v26 = vmov 0.0  }
  0x19   :  { %v2318_v3 = vld [vmem:[#allocation9 + $0x68] sm:$0xff]  ;;  %223 = vmatpush.msra.mxu3 %v2314_v1  ;;  %203 = vmatpush.msra.mxu2 %v2316_v2  ;;  %v2322_v4 = vld [vmem:[#allocation9 + $0x60] sm:$0xff]  ;;  %v2324_v5 = vld [vmem:[#allocation9 + $0x58] sm:$0xff]  ;;  %vm238_vm1 = vcmask 1040384   ;;  %s2240_s11 = smov 64   ;;  %vm191_vm6 = vcmask 523264  }
  0x1a   :  { %v2326_v6 = vld [vmem:[#allocation9 + $0x50] sm:$0xff]  ;;  %v120_v7 = vld [vmem:[%s2854_s1 + $0x30] sm:$0xff]  ;;  %v121_v8 = vld [vmem:[%s2854_s1 + $0x38] sm:$0xff]  ;;  %vm283_vm7 = vcmask 253952   ;;  %vm285_vm8 = vcmask 516352  }
  0x1b   :  { %224 = vmatpush.msra.mxu3 %v2318_v3  ;;  %204 = vmatpush.msra.mxu2 %v2322_v4  ;;  %v118_v9 = vld [vmem:[%s2854_s1 + $0x20] sm:$0xff]  ;;  %v2341_v11 = vld [vmem:[#allocation9 + $0x40] sm:$0xff]  ;;  %v119_v12 = vld [vmem:[%s2854_s1 + $0x28] sm:$0xff] }
  0x1c   :  { %v2339_v10 = vld [vmem:[#allocation9 + $0x48] sm:$0xff]  ;;  %144 = vmatpush.msra.mxu0 %v120_v7  ;;  %164 = vmatpush.msra.mxu1 %v121_v8  ;;  %v116_v13 = vld [vmem:[%s2854_s1 + $0x10] sm:$0xff]  ;;  %v2356_v16 = vld [vmem:[#allocation9 + $0x30] sm:$0xff] }
  0x1d   :  { %225 = vmatpush.msra.mxu3 %v2324_v5  ;;  %205 = vmatpush.msra.mxu2 %v2326_v6  ;;  %v117_v14 = vld [vmem:[%s2854_s1 + $0x18] sm:$0xff]  ;;  %v2354_v15 = vld [vmem:[#allocation9 + $0x38] sm:$0xff]  ;;  %v114_v17 = vld [vmem:[%s2854_s1] sm:$0xff] }
  0x1e   :  { %145 = vmatpush.msra.mxu0 %v118_v9  ;;  %165 = vmatpush.msra.mxu1 %v119_v12  ;;  %v115_v18 = vld [vmem:[%s2854_s1 + $0x8] sm:$0xff]  ;;  %v2366_v19 = vld [vmem:[#allocation9 + $0x28] sm:$0xff]  ;;  %v2368_v20 = vld [vmem:[#allocation9 + $0x20] sm:$0xff] }
  0x1f   :  { %226 = vmatpush.msra.mxu3 %v2339_v10  ;;  %206 = vmatpush.msra.mxu2 %v2341_v11  ;;  %v113_v21 = vld [vmem:[#allocation7] sm:$0xff]  ;;  %v2374_v23 = vld [vmem:[#allocation9 + $0x10] sm:$0xff]  ;;  %v2378_v24 = vld [vmem:[#allocation9 + $0x8] sm:$0xff] }
  0x20   :  { %146 = vmatpush.msra.mxu0 %v116_v13  ;;  %166 = vmatpush.msra.mxu1 %v117_v14  ;;  %v2372_v22 = vld [vmem:[#allocation9 + $0x18] sm:$0xff]  ;;  %v2380_v25 = vld [vmem:[#allocation9] sm:$0xff]  ;;  %v122_v27 = vld [vmem:[%s2856_s3] sm:$0x3] }
  0x21   :  { %227 = vmatpush.msra.mxu3 %v2354_v15  ;;  %207 = vmatpush.msra.mxu2 %v2356_v16  ;;  %v124_v28 = vperm.slane %v122_v27, 0  ;;  %v125_v29 = vperm.slane %v122_v27, 1 }
  0x22   :  { %147 = vmatpush.msra.mxu0 %v114_v17  ;;  %167 = vmatpush.msra.mxu1 %v115_v18 }
  0x23   :  { %228 = vmatpush.msra.mxu3 %v2366_v19  ;;  %208 = vmatpush.msra.mxu2 %v2368_v20 }
  0x24   :  { %1912 = vmatmul.msk.f32.vlgmr.msra.gmra.mxu0 %vm128_vm0, %v113_v21  ;;  %1913 = vmatmul.msk.f32.vlgmr.msra.gmra.mxu1 %vm128_vm0, %v113_v21 }
  0x25   :  { %229 = vmatpush.msra.mxu3 %v2372_v22  ;;  %209 = vmatpush.msra.mxu2 %v2374_v23 }
  0x26   :  { %302 = vmatpush.msrb.mxu0 %v2316_v2  ;;  %322 = vmatpush.msrb.mxu1 %v2314_v1 }
  0x27   :  { %230 = vmatpush.msra.mxu3 %v2378_v24  ;;  %210 = vmatpush.msra.mxu2 %v2380_v25 }
  0x28   :  { %231 = vmatmul.f32.vlgmr.msra.gmra.mxu3 %v2239_v26  ;;  %211 = vmatmul.f32.vlgmr.msra.gmra.mxu2 %v2239_v26 }
  0x29   :  { %303 = vmatpush.msrb.mxu0 %v2322_v4  ;;  %323 = vmatpush.msrb.mxu1 %v2318_v3 }
  0x2a   :  { %398 = vmatpush.msrb.mxu2 %v2316_v2  ;;  %418 = vmatpush.msrb.mxu3 %v2314_v1 }
  0x2b   :  { %304 = vmatpush.msrb.mxu0 %v2326_v6  ;;  %324 = vmatpush.msrb.mxu1 %v2324_v5 }
  0x2c   :  { %399 = vmatpush.msrb.mxu2 %v2322_v4  ;;  %419 = vmatpush.msrb.mxu3 %v2318_v3 }
  0x2d   :  { %305 = vmatpush.msrb.mxu0 %v2341_v11  ;;  %325 = vmatpush.msrb.mxu1 %v2339_v10 }
  0x2e   :  { %400 = vmatpush.msrb.mxu2 %v2326_v6  ;;  %420 = vmatpush.msrb.mxu3 %v2324_v5 }
  0x2f   :  { %306 = vmatpush.msrb.mxu0 %v2356_v16  ;;  %326 = vmatpush.msrb.mxu1 %v2354_v15 }
  0x30   :  { %401 = vmatpush.msrb.mxu2 %v2341_v11  ;;  %421 = vmatpush.msrb.mxu3 %v2339_v10 }
  0x31   :  { %307 = vmatpush.msrb.mxu0 %v2368_v20  ;;  %327 = vmatpush.msrb.mxu1 %v2366_v19 }
  0x32   :  { %402 = vmatpush.msrb.mxu2 %v2356_v16  ;;  %422 = vmatpush.msrb.mxu3 %v2354_v15 }
  0x33   :  { %308 = vmatpush.msrb.mxu0 %v2374_v23  ;;  %328 = vmatpush.msrb.mxu1 %v2372_v22 }
  0x34   :  { %403 = vmatpush.msrb.mxu2 %v2368_v20  ;;  %423 = vmatpush.msrb.mxu3 %v2366_v19 }
  0x35   :  { %309 = vmatpush.msrb.mxu0 %v2380_v25  ;;  %329 = vmatpush.msrb.mxu1 %v2378_v24 }
  0x36   :  { %404 = vmatpush.msrb.mxu2 %v2374_v23  ;;  %424 = vmatpush.msrb.mxu3 %v2372_v22 }
  0x37   :  { %494 = vmatpush.msra.mxu0 %v2316_v2  ;;  %514 = vmatpush.msra.mxu1 %v2314_v1 }
  0x38   :  { %405 = vmatpush.msrb.mxu2 %v2380_v25  ;;  %425 = vmatpush.msrb.mxu3 %v2378_v24 }
  0x39   :  { %495 = vmatpush.msra.mxu0 %v2322_v4  ;;  %515 = vmatpush.msra.mxu1 %v2318_v3 }
  0x3a   :  { %590 = vmatpush.msra.mxu2 %v2316_v2  ;;  %610 = vmatpush.msra.mxu3 %v2314_v1 }
  0x3b   :  { %496 = vmatpush.msra.mxu0 %v2326_v6  ;;  %516 = vmatpush.msra.mxu1 %v2324_v5 }
  0x3c   :  { %591 = vmatpush.msra.mxu2 %v2322_v4  ;;  %611 = vmatpush.msra.mxu3 %v2318_v3 }
  0x3d   :  { %497 = vmatpush.msra.mxu0 %v2341_v11  ;;  %517 = vmatpush.msra.mxu1 %v2339_v10 }
  0x3e   :  { %592 = vmatpush.msra.mxu2 %v2326_v6  ;;  %612 = vmatpush.msra.mxu3 %v2324_v5 }
  0x3f   :  { %498 = vmatpush.msra.mxu0 %v2356_v16  ;;  %518 = vmatpush.msra.mxu1 %v2354_v15 }
  0x40   :  { %593 = vmatpush.msra.mxu2 %v2341_v11  ;;  %613 = vmatpush.msra.mxu3 %v2339_v10 }
  0x41   :  { %499 = vmatpush.msra.mxu0 %v2368_v20  ;;  %519 = vmatpush.msra.mxu1 %v2366_v19 }
  0x42   :  { %594 = vmatpush.msra.mxu2 %v2356_v16  ;;  %614 = vmatpush.msra.mxu3 %v2354_v15 }
  0x43   :  { %500 = vmatpush.msra.mxu0 %v2374_v23  ;;  %520 = vmatpush.msra.mxu1 %v2372_v22 }
  0x44   :  { %595 = vmatpush.msra.mxu2 %v2368_v20  ;;  %615 = vmatpush.msra.mxu3 %v2366_v19 }
  0x45   :  { %501 = vmatpush.msra.mxu0 %v2380_v25  ;;  %521 = vmatpush.msra.mxu1 %v2378_v24 }
  0x46   :  { %596 = vmatpush.msra.mxu2 %v2374_v23  ;;  %616 = vmatpush.msra.mxu3 %v2372_v22 }
  0x48   :  { %597 = vmatpush.msra.mxu2 %v2380_v25  ;;  %617 = vmatpush.msra.mxu3 %v2378_v24 }
  0xa1   :  { %v149_v30 = vpop.f32.mrf.mxu0  ;;  %v169_v31 = vpop.f32.mrf.mxu1 }
  0xa2   :  { %v150_v32 = vadd.f32 %v149_v30, %v124_v28  ;;  %v170_v33 = vadd.f32 %v169_v31, %v125_v29 }
  0xa4   :  { %172 = vst [vmem:[#allocation2] sm:$0xff] %v150_v32 }
  0xa5   :  { %173 = vst [vmem:[#allocation2 + $0x8] sm:$0xff] %v170_v33 }
  0xab   :  { %v232_v34 = vpop.f32.mrf.mxu3  ;;  %v212_v35 = vpop.f32.mrf.mxu2 }
  0xac   :  { %v237_v36 = vrot.slane %v232_v34, 7  ;;  %v190_v37 = vld [vmem:[#allocation2] ss:$8 sm:$0x3] }
  0xad   :  { %v290_v9 = vld [vmem:[#allocation2 + $0x1] ss:$8 sm:$0x3] }
  0xae   :  { %v239_v38 = vsel %vm238_vm1, %v212_v35, %v237_v36 }
  0xaf   :  { %v241_v39 = vadd.f32 %v239_v38, %v190_v37 }
  0xb1   :  { %262 = vrot.lane.b32.xlu0 %v241_v39, %s2240_s11  ;;  %v1914_v40 = vmul.f32 -1.442695, %v241_v39 }
  0xb3   :  { %1974 = vpow2.f32 %v1914_v40 }
  0xb9   :  { %v1975_v41 = vpop.eup %1974 }
  0xba   :  { %v245_v42 = vadd.f32 1.0, %v1975_v41 }
  0xbc   :  { %1976 = vrcp.f32 %v245_v42  ;;  %v257_v50 = vand.u32 2147483648, %v245_v42  ;;  %vm251_vm3 = vweird.f32 %v245_v42  ;;  %v255_v51 = vand.u32 2147483647, %v245_v42 }
  0xbe   :  { %v258_v53 = vor.u32 1.1754944e-38, %v257_v50  ;;  %vm256_vm5 = vcmp.eq.f32.partialorder %v255_v51, 8.507059e+37  ;;  %v386_v50 = vld [vmem:[#allocation2 + $0x2] ss:$8 sm:$0x3] }
  0xc2   :  { %v1977_v43 = vpop.eup %1976 }
  0xc3   :  { %v247_v44 = vmul.f32 %v1977_v43, %v245_v42  ;;  %vm252_vm2 = vweird.f32 %v1977_v43 }
  0xc4   :  { %vm253_vm4 = vmor %vm251_vm3, %vm252_vm2 }
  0xc5   :  { %v248_v45 = vsub.f32 1.0, %v247_v44 }
  0xc7   :  { %v249_v46 = vmul.f32 %v1977_v43, %v248_v45 }
  0xc9   :  { %v250_v49 = vadd.f32 %v1977_v43, %v249_v46 }
  0xcb   :  { %v254_v52 = vsel %vm253_vm4, %v1977_v43, %v250_v49 }
  0xcc   :  { %v259_v55 = vsel %vm256_vm5, %v258_v53, %v254_v52 }
  0xcd   :  { %v267_v57 = vmul.f32 0.0, %v259_v55  ;;  %v276_v61 = vrot.slane %v259_v55, 1 }
 0x123   :  { %v263_v47 = vpop.permute.xlu0 %262 }
 0x124   :  { %v264_v48 = vrot.slane %v263_v47, 1 }
 0x126   :  { %1978 = vtanh.f32 %v264_v48 }
 0x12c   :  { %v1979_v54 = vpop.eup %1978 }
 0x12d   :  { %v268_v56 = vmul.f32 %v1979_v54, %v259_v55 }
 0x12f   :  { %270 = vrot.lane.b32.xlu0 %v268_v56, %s2240_s11 }
 0x1a1   :  { %v271_v58 = vpop.permute.xlu0 %270 }
 0x1a2   :  { %v2458_v59 = vadd.f32 %v271_v58, %v267_v57 }
 0x1a4   :  { %1980 = vtanh.f32 %v2458_v59 }
 0x1aa   :  { %v1981_v60 = vpop.eup %1980 }
 0x1ab   :  { %279 = vrot.lane.b32.xlu1 %v1981_v60, %s2240_s11 }
 0x21d   :  { %v280_v62 = vpop.permute.xlu1 %279 }
 0x21e   :  { %v282_v63 = vmul.f32 %v280_v62, %v276_v61 }
 0x220   :  { %1915 = vmatmul.msk.f32.vlgmr.msrb.gmra.mxu0 %vm191_vm6, %v282_v63  ;;  %1916 = vmatmul.msk.f32.vlgmr.msrb.gmra.mxu1 %vm191_vm6, %v282_v63  ;;  %284 = vst.msk [vmem:[#allocation3] sm:$0x1] %vm283_vm7, %v282_v63 }
 0x221   :  { %286 = vst.msk [vmem:[#allocation3 + $0x7] sm:$0x1] %vm285_vm8, %v282_v63  ;;  %686 = vmatpush.msrb.mxu0 %v2316_v2  ;;  %706 = vmatpush.msrb.mxu1 %v2314_v1 }
 0x222   :  { %287 = vst.msk [vmem:[#allocation4 + $0x7] sm:$0x1] %vm283_vm7, %v282_v63 }
 0x223   :  { %288 = vst.msk [vmem:[#allocation4] sm:$0x1] %vm285_vm8, %v282_v63  ;;  %687 = vmatpush.msrb.mxu0 %v2322_v4  ;;  %707 = vmatpush.msrb.mxu1 %v2318_v3 }
 0x225   :  { %688 = vmatpush.msrb.mxu0 %v2326_v6  ;;  %708 = vmatpush.msrb.mxu1 %v2324_v5 }
 0x227   :  { %689 = vmatpush.msrb.mxu0 %v2341_v11  ;;  %709 = vmatpush.msrb.mxu1 %v2339_v10 }
 0x229   :  { %690 = vmatpush.msrb.mxu0 %v2356_v16  ;;  %710 = vmatpush.msrb.mxu1 %v2354_v15 }
 0x22b   :  { %691 = vmatpush.msrb.mxu0 %v2368_v20  ;;  %711 = vmatpush.msrb.mxu1 %v2366_v19 }
 0x22d   :  { %692 = vmatpush.msrb.mxu0 %v2374_v23  ;;  %712 = vmatpush.msrb.mxu1 %v2372_v22 }
 0x22f   :  { %693 = vmatpush.msrb.mxu0 %v2380_v25  ;;  %713 = vmatpush.msrb.mxu1 %v2378_v24 }
 0x29d   :  { %v331_v0 = vpop.f32.mrf.mxu1  ;;  %v311_v8 = vpop.f32.mrf.mxu0 }
 0x29e   :  { %v336_v7 = vrot.slane %v331_v0, 7 }
 0x2a0   :  { %v337_v12 = vsel %vm238_vm1, %v311_v8, %v336_v7 }
 0x2a1   :  { %v339_v13 = vadd.f32 %v337_v12, %v290_v9 }
 0x2a3   :  { %360 = vrot.lane.b32.xlu1 %v339_v13, %s2240_s11  ;;  %v1917_v14 = vmul.f32 -1.442695, %v339_v13 }
 0x2a5   :  { %1982 = vpow2.f32 %v1917_v14 }
 0x2ab   :  { %v1983_v17 = vpop.eup %1982 }
 0x2ac   :  { %v343_v18 = vadd.f32 1.0, %v1983_v17 }
 0x2ae   :  { %1984 = vrcp.f32 %v343_v18  ;;  %v355_v33 = vand.u32 2147483648, %v343_v18  ;;  %vm349_vm10 = vweird.f32 %v343_v18  ;;  %v353_v34 = vand.u32 2147483647, %v343_v18 }
 0x2b0   :  { %v356_v36 = vor.u32 1.1754944e-38, %v355_v33  ;;  %vm354_vm12 = vcmp.eq.f32.partialorder %v353_v34, 8.507059e+37 }
 0x2b4   :  { %v1985_v21 = vpop.eup %1984 }
 0x2b5   :  { %v345_v27 = vmul.f32 %v1985_v21, %v343_v18  ;;  %vm350_vm9 = vweird.f32 %v1985_v21 }
 0x2b6   :  { %vm351_vm11 = vmor %vm349_vm10, %vm350_vm9 }
 0x2b7   :  { %v346_v28 = vsub.f32 1.0, %v345_v27 }
 0x2b9   :  { %v347_v29 = vmul.f32 %v1985_v21, %v346_v28 }
 0x2bb   :  { %v348_v32 = vadd.f32 %v1985_v21, %v347_v29 }
 0x2bd   :  { %v352_v35 = vsel %vm351_vm11, %v1985_v21, %v348_v32 }
 0x2be   :  { %v357_v38 = vsel %vm354_vm12, %v356_v36, %v352_v35 }
 0x2bf   :  { %v365_v40 = vmul.f32 %v357_v38, %v2458_v59  ;;  %v374_v44 = vrot.slane %v357_v38, 1 }
 0x315   :  { %v361_v30 = vpop.permute.xlu1 %360 }
 0x316   :  { %v362_v31 = vrot.slane %v361_v30, 1 }
 0x318   :  { %1986 = vtanh.f32 %v362_v31 }
 0x31e   :  { %v1987_v37 = vpop.eup %1986 }
 0x31f   :  { %v366_v39 = vmul.f32 %v1987_v37, %v357_v38 }
 0x321   :  { %368 = vrot.lane.b32.xlu2 %v366_v39, %s2240_s11 }
 0x37b   :  { %v369_v41 = vpop.permute.xlu2 %368 }
 0x37c   :  { %v371_v42 = vadd.f32 %v369_v41, %v365_v40 }
 0x37e   :  { %1988 = vtanh.f32 %v371_v42 }
 0x384   :  { %v1989_v43 = vpop.eup %1988 }
 0x385   :  { %377 = vrot.lane.b32.xlu2 %v1989_v43, %s2240_s11 }
 0x3df   :  { %v378_v45 = vpop.permute.xlu2 %377 }
 0x3e0   :  { %v380_v46 = vmul.f32 %v378_v45, %v374_v44 }
 0x3e2   :  { %381 = vst.msk [vmem:[#allocation3 + $0x1] sm:$0x1] %vm283_vm7, %v380_v46  ;;  %1918 = vmatmul.msk.f32.vlgmr.msrb.gmra.mxu2 %vm191_vm6, %v380_v46  ;;  %1919 = vmatmul.msk.f32.vlgmr.msrb.gmra.mxu3 %vm191_vm6, %v380_v46 }
 0x3e3   :  { %382 = vst.msk [vmem:[#allocation3 + $0x6] sm:$0x1] %vm285_vm8, %v380_v46  ;;  %782 = vmatpush.msrb.mxu2 %v2316_v2  ;;  %802 = vmatpush.msrb.mxu3 %v2314_v1 }
 0x3e4   :  { %383 = vst.msk [vmem:[#allocation4 + $0x6] sm:$0x1] %vm283_vm7, %v380_v46 }
 0x3e5   :  { %384 = vst.msk [vmem:[#allocation4 + $0x1] sm:$0x1] %vm285_vm8, %v380_v46  ;;  %783 = vmatpush.msrb.mxu2 %v2322_v4  ;;  %803 = vmatpush.msrb.mxu3 %v2318_v3 }
 0x3e7   :  { %784 = vmatpush.msrb.mxu2 %v2326_v6  ;;  %804 = vmatpush.msrb.mxu3 %v2324_v5 }
 0x3e9   :  { %785 = vmatpush.msrb.mxu2 %v2341_v11  ;;  %805 = vmatpush.msrb.mxu3 %v2339_v10 }
 0x3eb   :  { %786 = vmatpush.msrb.mxu2 %v2356_v16  ;;  %806 = vmatpush.msrb.mxu3 %v2354_v15 }
 0x3ed   :  { %787 = vmatpush.msrb.mxu2 %v2368_v20  ;;  %807 = vmatpush.msrb.mxu3 %v2366_v19 }
 0x3ef   :  { %788 = vmatpush.msrb.mxu2 %v2374_v23  ;;  %808 = vmatpush.msrb.mxu3 %v2372_v22 }
 0x3f1   :  { %789 = vmatpush.msrb.mxu2 %v2380_v25  ;;  %809 = vmatpush.msrb.mxu3 %v2378_v24 }
 0x465   :  { %v427_v47 = vpop.f32.mrf.mxu3  ;;  %v407_v49 = vpop.f32.mrf.mxu2 }
 0x466   :  { %v432_v48 = vrot.slane %v427_v47, 7  ;;  %v578_v47 = vld [vmem:[#allocation2 + $0x4] ss:$8 sm:$0x3] }
 0x468   :  { %v433_v51 = vsel %vm238_vm1, %v407_v49, %v432_v48 }
 0x469   :  { %v435_v52 = vadd.f32 %v433_v51, %v386_v50 }
 0x46b   :  { %456 = vrot.lane.b32.xlu0 %v435_v52, %s2240_s11  ;;  %v1920_v53 = vmul.f32 -1.442695, %v435_v52 }
 0x46d   :  { %1990 = vpow2.f32 %v1920_v53 }
 0x473   :  { %v1991_v54 = vpop.eup %1990 }
 0x474   :  { %v439_v55 = vadd.f32 1.0, %v1991_v54 }
 0x476   :  { %1992 = vrcp.f32 %v439_v55  ;;  %v451_v63 = vand.u32 2147483648, %v439_v55  ;;  %vm445_vm14 = vweird.f32 %v439_v55  ;;  %v449_v0 = vand.u32 2147483647, %v439_v55 }
 0x478   :  { %v452_v8 = vor.u32 1.1754944e-38, %v451_v63  ;;  %vm450_vm0 = vcmp.eq.f32.partialorder %v449_v0, 8.507059e+37 }
 0x47c   :  { %v1993_v56 = vpop.eup %1992 }
 0x47d   :  { %v441_v57 = vmul.f32 %v1993_v56, %v439_v55  ;;  %vm446_vm13 = vweird.f32 %v1993_v56 }
 0x47e   :  { %vm447_vm15 = vmor %vm445_vm14, %vm446_vm13 }
 0x47f   :  { %v442_v58 = vsub.f32 1.0, %v441_v57 }
 0x481   :  { %v443_v59 = vmul.f32 %v1993_v56, %v442_v58 }
 0x483   :  { %v444_v62 = vadd.f32 %v1993_v56, %v443_v59 }
 0x485   :  { %v448_v7 = vsel %vm447_vm15, %v1993_v56, %v444_v62 }
 0x486   :  { %v453_v12 = vsel %vm450_vm0, %v452_v8, %v448_v7 }
 0x487   :  { %v461_v14 = vmul.f32 %v453_v12, %v371_v42  ;;  %v470_v27 = vrot.slane %v453_v12, 1 }
 0x4dd   :  { %v457_v60 = vpop.permute.xlu0 %456 }
 0x4de   :  { %v458_v61 = vrot.slane %v457_v60, 1 }
 0x4e0   :  { %1994 = vtanh.f32 %v458_v61 }
 0x4e6   :  { %v1995_v9 = vpop.eup %1994 }
 0x4e7   :  { %v462_v13 = vmul.f32 %v1995_v9, %v453_v12 }
 0x4e9   :  { %464 = vrot.lane.b32.xlu1 %v462_v13, %s2240_s11 }
 0x55b   :  { %v465_v17 = vpop.permute.xlu1 %464 }
 0x55c   :  { %v467_v18 = vadd.f32 %v465_v17, %v461_v14 }
 0x55e   :  { %1996 = vtanh.f32 %v467_v18 }
 0x564   :  { %v1997_v21 = vpop.eup %1996 }
 0x565   :  { %473 = vrot.lane.b32.xlu2 %v1997_v21, %s2240_s11 }
 0x5bf   :  { %v474_v28 = vpop.permute.xlu2 %473 }
 0x5c0   :  { %v476_v29 = vmul.f32 %v474_v28, %v470_v27 }
 0x5c2   :  { %477 = vst.msk [vmem:[#allocation3 + $0x2] sm:$0x1] %vm283_vm7, %v476_v29  ;;  %1921 = vmatmul.msk.f32.vlgmr.msra.gmra.mxu0 %vm191_vm6, %v476_v29  ;;  %1922 = vmatmul.msk.f32.vlgmr.msra.gmra.mxu1 %vm191_vm6, %v476_v29 }
 0x5c3   :  { %478 = vst.msk [vmem:[#allocation3 + $0x5] sm:$0x1] %vm285_vm8, %v476_v29  ;;  %878 = vmatpush.msra.mxu0 %v2316_v2  ;;  %898 = vmatpush.msra.mxu1 %v2314_v1 }
 0x5c4   :  { %479 = vst.msk [vmem:[#allocation4 + $0x5] sm:$0x1] %vm283_vm7, %v476_v29 }
 0x5c5   :  { %480 = vst.msk [vmem:[#allocation4 + $0x2] sm:$0x1] %vm285_vm8, %v476_v29  ;;  %879 = vmatpush.msra.mxu0 %v2322_v4  ;;  %899 = vmatpush.msra.mxu1 %v2318_v3  ;;  %v482_v4 = vld [vmem:[#allocation2 + $0x3] ss:$8 sm:$0x3] }
 0x5c7   :  { %880 = vmatpush.msra.mxu0 %v2326_v6  ;;  %900 = vmatpush.msra.mxu1 %v2324_v5 }
 0x5c9   :  { %881 = vmatpush.msra.mxu0 %v2341_v11  ;;  %901 = vmatpush.msra.mxu1 %v2339_v10 }
 0x5cb   :  { %882 = vmatpush.msra.mxu0 %v2356_v16  ;;  %902 = vmatpush.msra.mxu1 %v2354_v15 }
 0x5cd   :  { %883 = vmatpush.msra.mxu0 %v2368_v20  ;;  %903 = vmatpush.msra.mxu1 %v2366_v19 }
 0x5cf   :  { %884 = vmatpush.msra.mxu0 %v2374_v23  ;;  %904 = vmatpush.msra.mxu1 %v2372_v22 }
 0x5d1   :  { %885 = vmatpush.msra.mxu0 %v2380_v25  ;;  %905 = vmatpush.msra.mxu1 %v2378_v24 }
 0x63f   :  { %v523_v1 = vpop.f32.mrf.mxu1  ;;  %v503_v3 = vpop.f32.mrf.mxu0 }
 0x640   :  { %v528_v2 = vrot.slane %v523_v1, 7  ;;  %v674_v1 = vld [vmem:[#allocation2 + $0x5] ss:$8 sm:$0x3] }
 0x642   :  { %v529_v5 = vsel %vm238_vm1, %v503_v3, %v528_v2 }
 0x643   :  { %v531_v6 = vadd.f32 %v529_v5, %v482_v4 }
 0x645   :  { %552 = vrot.lane.b32.xlu0 %v531_v6, %s2240_s11  ;;  %v1923_v10 = vmul.f32 -1.442695, %v531_v6 }
 0x647   :  { %1998 = vpow2.f32 %v1923_v10 }
 0x64d   :  { %v1999_v11 = vpop.eup %1998 }
 0x64e   :  { %v535_v15 = vadd.f32 1.0, %v1999_v11 }
 0x650   :  { %2000 = vrcp.f32 %v535_v15  ;;  %v547_v30 = vand.u32 2147483648, %v535_v15  ;;  %vm541_vm3 = vweird.f32 %v535_v15  ;;  %v545_v31 = vand.u32 2147483647, %v535_v15 }
 0x652   :  { %v548_v33 = vor.u32 1.1754944e-38, %v547_v30  ;;  %vm546_vm5 = vcmp.eq.f32.partialorder %v545_v31, 8.507059e+37 }
 0x656   :  { %v2001_v16 = vpop.eup %2000 }
 0x657   :  { %v537_v19 = vmul.f32 %v2001_v16, %v535_v15  ;;  %vm542_vm2 = vweird.f32 %v2001_v16 }
 0x658   :  { %vm543_vm4 = vmor %vm541_vm3, %vm542_vm2 }
 0x659   :  { %v538_v20 = vsub.f32 1.0, %v537_v19 }
 0x65b   :  { %v539_v22 = vmul.f32 %v2001_v16, %v538_v20 }
 0x65d   :  { %v540_v25 = vadd.f32 %v2001_v16, %v539_v22 }
 0x65f   :  { %v544_v32 = vsel %vm543_vm4, %v2001_v16, %v540_v25 }
 0x660   :  { %v549_v35 = vsel %vm546_vm5, %v548_v33, %v544_v32 }
 0x661   :  { %v557_v37 = vmul.f32 %v549_v35, %v467_v18  ;;  %v566_v41 = vrot.slane %v549_v35, 1 }
 0x6b7   :  { %v553_v23 = vpop.permute.xlu0 %552 }
 0x6b8   :  { %v554_v24 = vrot.slane %v553_v23, 1 }
 0x6ba   :  { %2002 = vtanh.f32 %v554_v24 }
 0x6c0   :  { %v2003_v34 = vpop.eup %2002 }
 0x6c1   :  { %v558_v36 = vmul.f32 %v2003_v34, %v549_v35 }
 0x6c3   :  { %560 = vrot.lane.b32.xlu1 %v558_v36, %s2240_s11 }
 0x735   :  { %v561_v38 = vpop.permute.xlu1 %560 }
 0x736   :  { %v563_v39 = vadd.f32 %v561_v38, %v557_v37 }
 0x738   :  { %2004 = vtanh.f32 %v563_v39 }
 0x73e   :  { %v2005_v40 = vpop.eup %2004 }
 0x73f   :  { %569 = vrot.lane.b32.xlu2 %v2005_v40, %s2240_s11 }
 0x799   :  { %v570_v42 = vpop.permute.xlu2 %569 }
 0x79a   :  { %v572_v43 = vmul.f32 %v570_v42, %v566_v41 }
 0x79c   :  { %573 = vst.msk [vmem:[#allocation3 + $0x3] sm:$0x1] %vm283_vm7, %v572_v43  ;;  %1924 = vmatmul.msk.f32.vlgmr.msra.gmra.mxu2 %vm191_vm6, %v572_v43  ;;  %1925 = vmatmul.msk.f32.vlgmr.msra.gmra.mxu3 %vm191_vm6, %v572_v43 }
 0x79d   :  { %574 = vst.msk [vmem:[#allocation3 + $0x4] sm:$0x1] %vm285_vm8, %v572_v43 }
 0x79e   :  { %575 = vst.msk [vmem:[#allocation4 + $0x4] sm:$0x1] %vm283_vm7, %v572_v43 }
 0x79f   :  { %576 = vst.msk [vmem:[#allocation4 + $0x3] sm:$0x1] %vm285_vm8, %v572_v43 }
 0x81f   :  { %v619_v44 = vpop.f32.mrf.mxu3  ;;  %v599_v46 = vpop.f32.mrf.mxu2 }
 0x820   :  { %v624_v45 = vrot.slane %v619_v44, 7  ;;  %v770_v44 = vld [vmem:[#allocation2 + $0x6] ss:$8 sm:$0x3] }
 0x822   :  { %v625_v48 = vsel %vm238_vm1, %v599_v46, %v624_v45 }
 0x823   :  { %v627_v49 = vadd.f32 %v625_v48, %v578_v47 }
 0x825   :  { %648 = vrot.lane.b32.xlu0 %v627_v49, %s2240_s11  ;;  %v1926_v50 = vmul.f32 -1.442695, %v627_v49 }
 0x827   :  { %2006 = vpow2.f32 %v1926_v50 }
 0x82d   :  { %v2007_v51 = vpop.eup %2006 }
 0x82e   :  { %v631_v52 = vadd.f32 1.0, %v2007_v51 }
 0x830   :  { %2008 = vrcp.f32 %v631_v52  ;;  %v643_v60 = vand.u32 2147483648, %v631_v52  ;;  %vm637_vm10 = vweird.f32 %v631_v52  ;;  %v641_v61 = vand.u32 2147483647, %v631_v52 }
 0x832   :  { %v644_v63 = vor.u32 1.1754944e-38, %v643_v60  ;;  %vm642_vm12 = vcmp.eq.f32.partialorder %v641_v61, 8.507059e+37 }
 0x836   :  { %v2009_v53 = vpop.eup %2008 }
 0x837   :  { %v633_v54 = vmul.f32 %v2009_v53, %v631_v52  ;;  %vm638_vm9 = vweird.f32 %v2009_v53 }
 0x838   :  { %vm639_vm11 = vmor %vm637_vm10, %vm638_vm9 }
 0x839   :  { %v634_v55 = vsub.f32 1.0, %v633_v54 }
 0x83b   :  { %v635_v56 = vmul.f32 %v2009_v53, %v634_v55 }
 0x83d   :  { %v636_v59 = vadd.f32 %v2009_v53, %v635_v56 }
 0x83f   :  { %v640_v62 = vsel %vm639_vm11, %v2009_v53, %v636_v59 }
 0x840   :  { %v645_v7 = vsel %vm642_vm12, %v644_v63, %v640_v62 }
 0x841   :  { %v653_v9 = vmul.f32 %v645_v7, %v563_v39  ;;  %v662_v17 = vrot.slane %v645_v7, 1 }
 0x897   :  { %v649_v57 = vpop.permute.xlu0 %648 }
 0x898   :  { %v650_v58 = vrot.slane %v649_v57, 1 }
 0x89a   :  { %2010 = vtanh.f32 %v650_v58 }
 0x8a0   :  { %v2011_v0 = vpop.eup %2010 }
 0x8a1   :  { %v654_v8 = vmul.f32 %v2011_v0, %v645_v7 }
 0x8a3   :  { %656 = vrot.lane.b32.xlu1 %v654_v8, %s2240_s11 }
 0x915   :  { %v657_v12 = vpop.permute.xlu1 %656 }
 0x916   :  { %v659_v13 = vadd.f32 %v657_v12, %v653_v9 }
 0x918   :  { %2012 = vtanh.f32 %v659_v13 }
 0x91e   :  { %v2013_v14 = vpop.eup %2012 }
 0x91f   :  { %665 = vrot.lane.b32.xlu2 %v2013_v14, %s2240_s11 }
 0x979   :  { %v666_v18 = vpop.permute.xlu2 %665 }
 0x97a   :  { %v668_v21 = vmul.f32 %v666_v18, %v662_v17 }
 0x97c   :  { %669 = vst.msk [vmem:[#allocation3 + $0x4] sm:$0x1] %vm283_vm7, %v668_v21  ;;  %1927 = vmatmul.msk.f32.vlgmr.msrb.gmra.mxu0 %vm191_vm6, %v668_v21  ;;  %1928 = vmatmul.msk.f32.vlgmr.msrb.gmra.mxu1 %vm191_vm6, %v668_v21 }
 0x97d   :  { %670 = vst.msk [vmem:[#allocation3 + $0x3] sm:$0x1] %vm285_vm8, %v668_v21 }
 0x97e   :  { %671 = vst.msk [vmem:[#allocation4 + $0x3] sm:$0x1] %vm283_vm7, %v668_v21 }
 0x97f   :  { %672 = vst.msk [vmem:[#allocation4 + $0x4] sm:$0x1] %vm285_vm8, %v668_v21 }
 0x9f9   :  { %v715_v27 = vpop.f32.mrf.mxu1  ;;  %v695_v29 = vpop.f32.mrf.mxu0 }
 0x9fa   :  { %v720_v28 = vrot.slane %v715_v27, 7  ;;  %v866_v27 = vld [vmem:[#allocation2 + $0x7] ss:$8 sm:$0x3] }
 0x9fc   :  { %v721_v2 = vsel %vm238_vm1, %v695_v29, %v720_v28 }
 0x9fd   :  { %v723_v3 = vadd.f32 %v721_v2, %v674_v1 }
 0x9ff   :  { %744 = vrot.lane.b32.xlu0 %v723_v3, %s2240_s11  ;;  %v1929_v4 = vmul.f32 -1.442695, %v723_v3 }
 0xa01   :  { %2014 = vpow2.f32 %v1929_v4 }
 0xa07   :  { %v2015_v5 = vpop.eup %2014 }
 0xa08   :  { %v727_v6 = vadd.f32 1.0, %v2015_v5 }
 0xa0a   :  { %2016 = vrcp.f32 %v727_v6  ;;  %v739_v23 = vand.u32 2147483648, %v727_v6  ;;  %vm733_vm14 = vweird.f32 %v727_v6  ;;  %v737_v24 = vand.u32 2147483647, %v727_v6 }
 0xa0c   :  { %v740_v30 = vor.u32 1.1754944e-38, %v739_v23  ;;  %vm738_vm0 = vcmp.eq.f32.partialorder %v737_v24, 8.507059e+37 }
 0xa10   :  { %v2017_v10 = vpop.eup %2016 }
 0xa11   :  { %v729_v11 = vmul.f32 %v2017_v10, %v727_v6  ;;  %vm734_vm13 = vweird.f32 %v2017_v10 }
 0xa12   :  { %vm735_vm15 = vmor %vm733_vm14, %vm734_vm13 }
 0xa13   :  { %v730_v15 = vsub.f32 1.0, %v729_v11 }
 0xa15   :  { %v731_v16 = vmul.f32 %v2017_v10, %v730_v15 }
 0xa17   :  { %v732_v22 = vadd.f32 %v2017_v10, %v731_v16 }
 0xa19   :  { %v736_v25 = vsel %vm735_vm15, %v2017_v10, %v732_v22 }
 0xa1a   :  { %v741_v32 = vsel %vm738_vm0, %v740_v30, %v736_v25 }
 0xa1b   :  { %v749_v34 = vmul.f32 %v741_v32, %v659_v13  ;;  %v758_v38 = vrot.slane %v741_v32, 1 }
 0xa71   :  { %v745_v19 = vpop.permute.xlu0 %744 }
 0xa72   :  { %v746_v20 = vrot.slane %v745_v19, 1 }
 0xa74   :  { %2018 = vtanh.f32 %v746_v20 }
 0xa7a   :  { %v2019_v31 = vpop.eup %2018 }
 0xa7b   :  { %v750_v33 = vmul.f32 %v2019_v31, %v741_v32  ;;  %v994_v31 = vld [vmem:[#allocation12 + $0x78] sm:$0xff]  ;;  %v993_v32 = vld [vmem:[#allocation12 + $0x70] sm:$0xff] }
 0xa7c   :  { %1026 = vmatpush.msra.mxu3 %v994_v31  ;;  %1006 = vmatpush.msra.mxu2 %v993_v32 }
 0xa7d   :  { %752 = vrot.lane.b32.xlu1 %v750_v33, %s2240_s11  ;;  %v992_v33 = vld [vmem:[#allocation12 + $0x68] sm:$0xff] }
 0xa7e   :  { %1027 = vmatpush.msra.mxu3 %v992_v33 }
 0xaef   :  { %v753_v35 = vpop.permute.xlu1 %752 }
 0xaf0   :  { %v755_v36 = vadd.f32 %v753_v35, %v749_v34  ;;  %v991_v34 = vld [vmem:[#allocation12 + $0x60] sm:$0xff]  ;;  %v990_v35 = vld [vmem:[#allocation12 + $0x58] sm:$0xff] }
 0xaf1   :  { %1007 = vmatpush.msra.mxu2 %v991_v34  ;;  %1028 = vmatpush.msra.mxu3 %v990_v35 }
 0xaf2   :  { %2020 = vtanh.f32 %v755_v36 }
 0xaf8   :  { %v2021_v37 = vpop.eup %2020 }
 0xaf9   :  { %761 = vrot.lane.b32.xlu2 %v2021_v37, %s2240_s11  ;;  %v976_v37 = vld [vmem:[#allocation11 + $0x70] sm:$0xff] }
 0xafa   :  { %1049 = vmatpush.msrb.mxu0 %v976_v37 }
 0xb53   :  { %v762_v39 = vpop.permute.xlu2 %761 }
 0xb54   :  { %v764_v40 = vmul.f32 %v762_v39, %v758_v38  ;;  %v977_v38 = vld [vmem:[#allocation11 + $0x78] sm:$0xff]  ;;  %v974_v39 = vld [vmem:[#allocation11 + $0x60] sm:$0xff] }
 0xb55   :  { %1069 = vmatpush.msrb.mxu1 %v977_v38  ;;  %1050 = vmatpush.msrb.mxu0 %v974_v39 }
 0xb56   :  { %765 = vst.msk [vmem:[#allocation3 + $0x5] sm:$0x1] %vm283_vm7, %v764_v40  ;;  %1930 = vmatmul.msk.f32.vlgmr.msrb.gmra.mxu2 %vm191_vm6, %v764_v40  ;;  %1931 = vmatmul.msk.f32.vlgmr.msrb.gmra.mxu3 %vm191_vm6, %v764_v40 }
 0xb57   :  { %766 = vst.msk [vmem:[#allocation3 + $0x2] sm:$0x1] %vm285_vm8, %v764_v40 }
 0xb58   :  { %767 = vst.msk [vmem:[#allocation4 + $0x2] sm:$0x1] %vm283_vm7, %v764_v40 }
 0xb59   :  { %768 = vst.msk [vmem:[#allocation4 + $0x5] sm:$0x1] %vm285_vm8, %v764_v40  ;;  %v988_v40 = vld [vmem:[#allocation12 + $0x48] sm:$0xff] }
 0xb5a   :  { %1029 = vmatpush.msra.mxu3 %v988_v40 }
 0xbd9   :  { %v811_v41 = vpop.f32.mrf.mxu3  ;;  %v791_v43 = vpop.f32.mrf.mxu2 }
 0xbda   :  { %v816_v42 = vrot.slane %v811_v41, 7  ;;  %v987_v41 = vld [vmem:[#allocation12 + $0x40] sm:$0xff] }
 0xbdc   :  { %v817_v45 = vsel %vm238_vm1, %v791_v43, %v816_v42  ;;  %v975_v42 = vld [vmem:[#allocation11 + $0x68] sm:$0xff]  ;;  %v972_v43 = vld [vmem:[#allocation11 + $0x50] sm:$0xff] }
 0xbdd   :  { %v819_v46 = vadd.f32 %v817_v45, %v770_v44  ;;  %v973_v44 = vld [vmem:[#allocation11 + $0x58] sm:$0xff]  ;;  %1070 = vmatpush.msrb.mxu1 %v975_v42  ;;  %1051 = vmatpush.msrb.mxu0 %v972_v43 }
 0xbde   :  { %v986_v45 = vld [vmem:[#allocation12 + $0x38] sm:$0xff] }
 0xbdf   :  { %840 = vrot.lane.b32.xlu0 %v819_v46, %s2240_s11  ;;  %v1932_v47 = vmul.f32 -1.442695, %v819_v46  ;;  %v985_v46 = vld [vmem:[#allocation12 + $0x30] sm:$0xff]  ;;  %1071 = vmatpush.msrb.mxu1 %v973_v44 }
 0xbe0   :  { %1030 = vmatpush.msra.mxu3 %v986_v45 }
 0xbe1   :  { %2022 = vpow2.f32 %v1932_v47  ;;  %v984_v47 = vld [vmem:[#allocation12 + $0x28] sm:$0xff] }
 0xbe2   :  { %1031 = vmatpush.msra.mxu3 %v984_v47 }
 0xbe7   :  { %v2023_v48 = vpop.eup %2022 }
 0xbe8   :  { %v823_v49 = vadd.f32 1.0, %v2023_v48 }
 0xbea   :  { %2024 = vrcp.f32 %v823_v49  ;;  %v835_v57 = vand.u32 2147483648, %v823_v49  ;;  %vm829_vm3 = vweird.f32 %v823_v49  ;;  %v833_v58 = vand.u32 2147483647, %v823_v49 }
 0xbec   :  { %v836_v60 = vor.u32 1.1754944e-38, %v835_v57  ;;  %vm834_vm5 = vcmp.eq.f32.partialorder %v833_v58, 8.507059e+37  ;;  %v980_v57 = vld [vmem:[#allocation12 + $0x8] sm:$0xff]  ;;  %v968_v58 = vld [vmem:[#allocation11 + $0x30] sm:$0xff] }
 0xbf0   :  { %v2025_v50 = vpop.eup %2024 }
 0xbf1   :  { %v825_v51 = vmul.f32 %v2025_v50, %v823_v49  ;;  %vm830_vm2 = vweird.f32 %v2025_v50 }
 0xbf2   :  { %vm831_vm4 = vmor %vm829_vm3, %vm830_vm2 }
 0xbf3   :  { %v826_v52 = vsub.f32 1.0, %v825_v51 }
 0xbf5   :  { %v827_v53 = vmul.f32 %v2025_v50, %v826_v52  ;;  %v983_v52 = vld [vmem:[#allocation12 + $0x20] sm:$0xff] }
 0xbf7   :  { %v828_v56 = vadd.f32 %v2025_v50, %v827_v53  ;;  %v982_v53 = vld [vmem:[#allocation12 + $0x18] sm:$0xff] }
 0xbf8   :  { %1032 = vmatpush.msra.mxu3 %v982_v53 }
 0xbf9   :  { %v832_v59 = vsel %vm831_vm4, %v2025_v50, %v828_v56  ;;  %v981_v56 = vld [vmem:[#allocation12 + $0x10] sm:$0xff] }
 0xbfa   :  { %v837_v62 = vsel %vm834_vm5, %v836_v60, %v832_v59  ;;  %1033 = vmatpush.msra.mxu3 %v980_v57  ;;  %v969_v59 = vld [vmem:[#allocation11 + $0x38] sm:$0xff] }
 0xbfb   :  { %v845_v0 = vmul.f32 %v837_v62, %v755_v36  ;;  %v854_v12 = vrot.slane %v837_v62, 1  ;;  %v989_v36 = vld [vmem:[#allocation12 + $0x50] sm:$0xff]  ;;  %v2589_v60 = vld [vmem:[#allocation14 + $0x78] sm:$0xff] }
 0xbfc   :  { %1008 = vmatpush.msra.mxu2 %v989_v36  ;;  %1136 = vmatpush.msrb.mxu3 %v2589_v60 }
 0xbfe   :  { %1009 = vmatpush.msra.mxu2 %v987_v41 }
 0xc00   :  { %1010 = vmatpush.msra.mxu2 %v985_v46 }
 0xc02   :  { %1011 = vmatpush.msra.mxu2 %v983_v52 }
 0xc04   :  { %1012 = vmatpush.msra.mxu2 %v981_v56 }
 0xc51   :  { %v841_v54 = vpop.permute.xlu0 %840 }
 0xc52   :  { %v842_v55 = vrot.slane %v841_v54, 1  ;;  %v970_v54 = vld [vmem:[#allocation11 + $0x40] sm:$0xff] }
 0xc53   :  { %1052 = vmatpush.msrb.mxu0 %v970_v54 }
 0xc54   :  { %2026 = vtanh.f32 %v842_v55  ;;  %v971_v55 = vld [vmem:[#allocation11 + $0x48] sm:$0xff] }
 0xc55   :  { %1072 = vmatpush.msrb.mxu1 %v971_v55  ;;  %1053 = vmatpush.msrb.mxu0 %v968_v58 }
 0xc57   :  { %1073 = vmatpush.msrb.mxu1 %v969_v59 }
 0xc5a   :  { %v2027_v61 = vpop.eup %2026 }
 0xc5b   :  { %v846_v63 = vmul.f32 %v2027_v61, %v837_v62  ;;  %v979_v61 = vld [vmem:[#allocation12] sm:$0xff] }
 0xc5c   :  { %v966_v62 = vld [vmem:[#allocation11 + $0x20] sm:$0xff]  ;;  %1013 = vmatpush.msra.mxu2 %v979_v61 }
 0xc5d   :  { %848 = vrot.lane.b32.xlu1 %v846_v63, %s2240_s11  ;;  %v967_v63 = vld [vmem:[#allocation11 + $0x28] sm:$0xff]  ;;  %1054 = vmatpush.msrb.mxu0 %v966_v62 }
 0xc5e   :  { %1074 = vmatpush.msrb.mxu1 %v967_v63 }
 0xccf   :  { %v849_v7 = vpop.permute.xlu1 %848 }
 0xcd0   :  { %v2570_v8 = vadd.f32 %v849_v7, %v845_v0  ;;  %v2591_v0 = vld [vmem:[#allocation14 + $0x70] sm:$0xff]  ;;  %v2594_v7 = vld [vmem:[#allocation14 + $0x68] sm:$0xff] }
 0xcd1   :  { %1116 = vmatpush.msrb.mxu2 %v2591_v0  ;;  %1137 = vmatpush.msrb.mxu3 %v2594_v7 }
 0xcd2   :  { %2028 = vtanh.f32 %v2570_v8 }
 0xcd8   :  { %v2029_v9 = vpop.eup %2028 }
 0xcd9   :  { %857 = vrot.lane.b32.xlu2 %v2029_v9, %s2240_s11  ;;  %v965_v9 = vld [vmem:[#allocation11 + $0x18] sm:$0xff] }
 0xcda   :  { %1075 = vmatpush.msrb.mxu1 %v965_v9 }
 0xd33   :  { %v858_v13 = vpop.permute.xlu2 %857 }
 0xd34   :  { %v860_v14 = vmul.f32 %v858_v13, %v854_v12  ;;  %v2596_v12 = vld [vmem:[#allocation14 + $0x60] sm:$0xff]  ;;  %v2598_v13 = vld [vmem:[#allocation14 + $0x58] sm:$0xff] }
 0xd35   :  { %1117 = vmatpush.msrb.mxu2 %v2596_v12  ;;  %1138 = vmatpush.msrb.mxu3 %v2598_v13 }
 0xd36   :  { %861 = vst.msk [vmem:[#allocation3 + $0x6] sm:$0x1] %vm283_vm7, %v860_v14  ;;  %1933 = vmatmul.msk.f32.vlgmr.msra.gmra.mxu0 %vm191_vm6, %v860_v14  ;;  %1934 = vmatmul.msk.f32.vlgmr.msra.gmra.mxu1 %vm191_vm6, %v860_v14 }
 0xd37   :  { %862 = vst.msk [vmem:[#allocation3 + $0x1] sm:$0x1] %vm285_vm8, %v860_v14 }
 0xd38   :  { %863 = vst.msk [vmem:[#allocation4 + $0x1] sm:$0x1] %vm283_vm7, %v860_v14 }
 0xd39   :  { %864 = vst.msk [vmem:[#allocation4 + $0x6] sm:$0x1] %vm285_vm8, %v860_v14  ;;  %v962_v14 = vld [vmem:[#allocation11] sm:$0xff] }
 0xdb3   :  { %v907_v17 = vpop.f32.mrf.mxu1  ;;  %v887_v21 = vpop.f32.mrf.mxu0 }
 0xdb4   :  { %v912_v18 = vrot.slane %v907_v17, 7  ;;  %v963_v17 = vld [vmem:[#allocation11 + $0x8] sm:$0xff] }
 0xdb5   :  { %1076 = vmatpush.msrb.mxu1 %v963_v17 }
 0xdb6   :  { %v913_v28 = vsel %vm238_vm1, %v887_v21, %v912_v18  ;;  %v2604_v18 = vld [vmem:[#allocation14 + $0x50] sm:$0xff]  ;;  %v2606_v21 = vld [vmem:[#allocation14 + $0x48] sm:$0xff] }
 0xdb7   :  { %v915_v29 = vadd.f32 %v913_v28, %v866_v27  ;;  %v2608_v27 = vld [vmem:[#allocation14 + $0x40] sm:$0xff]  ;;  %v2610_v28 = vld [vmem:[#allocation14 + $0x38] sm:$0xff]  ;;  %1118 = vmatpush.msrb.mxu2 %v2604_v18  ;;  %1139 = vmatpush.msrb.mxu3 %v2606_v21 }
 0xdb8   :  { %1229 = vmatpush.msra.mxu1 %v2589_v60 }
 0xdb9   :  { %936 = vrot.lane.b32.xlu0 %v915_v29, %s2240_s11  ;;  %v1935_v1 = vmul.f32 -1.442695, %v915_v29  ;;  %v2614_v29 = vld [vmem:[#allocation14 + $0x30] sm:$0xff]  ;;  %1119 = vmatpush.msrb.mxu2 %v2608_v27 }
 0xdba   :  { %1140 = vmatpush.msrb.mxu3 %v2610_v28  ;;  %1230 = vmatpush.msra.mxu1 %v2594_v7 }
 0xdbb   :  { %2030 = vpow2.f32 %v1935_v1  ;;  %v2616_v1 = vld [vmem:[#allocation14 + $0x28] sm:$0xff]  ;;  %1120 = vmatpush.msrb.mxu2 %v2614_v29 }
 0xdbc   :  { %1141 = vmatpush.msrb.mxu3 %v2616_v1  ;;  %1231 = vmatpush.msra.mxu1 %v2598_v13 }
 0xdbe   :  { %1232 = vmatpush.msra.mxu1 %v2606_v21 }
 0xdc0   :  { %1233 = vmatpush.msra.mxu1 %v2610_v28 }
 0xdc1   :  { %v2031_v2 = vpop.eup %2030 }
 0xdc2   :  { %v919_v3 = vadd.f32 1.0, %v2031_v2  ;;  %v2622_v2 = vld [vmem:[#allocation14 + $0x20] sm:$0xff]  ;;  %1234 = vmatpush.msra.mxu1 %v2616_v1 }
 0xdc3   :  { %1121 = vmatpush.msrb.mxu2 %v2622_v2 }
 0xdc4   :  { %2032 = vrcp.f32 %v919_v3  ;;  %v931_v19 = vand.u32 2147483648, %v919_v3  ;;  %vm925_vm10 = vweird.f32 %v919_v3  ;;  %v929_v20 = vand.u32 2147483647, %v919_v3 }
 0xdc6   :  { %v932_v23 = vor.u32 1.1754944e-38, %v931_v19  ;;  %vm930_vm12 = vcmp.eq.f32.partialorder %v929_v20, 8.507059e+37 }
 0xdca   :  { %v2033_v4 = vpop.eup %2032 }
 0xdcb   :  { %v921_v5 = vmul.f32 %v2033_v4, %v919_v3  ;;  %vm926_vm9 = vweird.f32 %v2033_v4  ;;  %v2624_v3 = vld [vmem:[#allocation14 + $0x18] sm:$0xff] }
 0xdcc   :  { %vm927_vm11 = vmor %vm925_vm10, %vm926_vm9  ;;  %1142 = vmatpush.msrb.mxu3 %v2624_v3  ;;  %1235 = vmatpush.msra.mxu1 %v2624_v3 }
 0xdcd   :  { %v922_v6 = vsub.f32 1.0, %v921_v5  ;;  %v2632_v5 = vld [vmem:[#allocation14 + $0x8] sm:$0xff] }
 0xdce   :  { %1143 = vmatpush.msrb.mxu3 %v2632_v5  ;;  %1236 = vmatpush.msra.mxu1 %v2632_v5 }
 0xdcf   :  { %v923_v10 = vmul.f32 %v2033_v4, %v922_v6  ;;  %v2638_v6 = vld [vmem:[#allocation14] sm:$0xff] }
 0xdd1   :  { %v924_v16 = vadd.f32 %v2033_v4, %v923_v10 }
 0xdd3   :  { %v928_v22 = vsel %vm927_vm11, %v2033_v4, %v924_v16  ;;  %v2630_v4 = vld [vmem:[#allocation14 + $0x10] sm:$0xff] }
 0xdd4   :  { %v2582_v25 = vsel %vm930_vm12, %v932_v23, %v928_v22  ;;  %1122 = vmatpush.msrb.mxu2 %v2630_v4 }
 0xdd5   :  { %v941_v48 = vmul.f32 %v2582_v25, %v2570_v8  ;;  %v964_v8 = vld [vmem:[#allocation11 + $0x10] sm:$0xff]  ;;  %v950_v10 = vrot.slane %v2582_v25, 1 }
 0xdd6   :  { %1055 = vmatpush.msrb.mxu0 %v964_v8  ;;  %1123 = vmatpush.msrb.mxu2 %v2638_v6 }
 0xdd8   :  { %1056 = vmatpush.msrb.mxu0 %v962_v14 }
 0xdda   :  { %1209 = vmatpush.msra.mxu0 %v2591_v0 }
 0xddc   :  { %1210 = vmatpush.msra.mxu0 %v2596_v12 }
 0xdde   :  { %1211 = vmatpush.msra.mxu0 %v2604_v18 }
 0xde0   :  { %1212 = vmatpush.msra.mxu0 %v2608_v27 }
 0xde2   :  { %1213 = vmatpush.msra.mxu0 %v2614_v29 }
 0xde4   :  { %1214 = vmatpush.msra.mxu0 %v2622_v2 }
 0xde6   :  { %1215 = vmatpush.msra.mxu0 %v2630_v4 }
 0xde8   :  { %1216 = vmatpush.msra.mxu0 %v2638_v6 }
 0xe2b   :  { %v937_v11 = vpop.permute.xlu0 %936 }
 0xe2c   :  { %v938_v15 = vrot.slane %v937_v11, 1 }
 0xe2e   :  { %2034 = vtanh.f32 %v938_v15 }
 0xe34   :  { %v2035_v24 = vpop.eup %2034 }
 0xe35   :  { %v942_v30 = vmul.f32 %v2035_v24, %v2582_v25 }
 0xe37   :  { %944 = vrot.lane.b32.xlu1 %v942_v30, %s2240_s11 }
 0xea9   :  { %v945_v49 = vpop.permute.xlu1 %944 }
 0xeaa   :  { %v947_v50 = vadd.f32 %v945_v49, %v941_v48 }
 0xeac   :  { %2036 = vtanh.f32 %v947_v50 }
 0xeb2   :  { %v2037_v51 = vpop.eup %2036 }
 0xeb3   :  { %953 = vrot.lane.b32.xlu2 %v2037_v51, %s2240_s11 }
 0xf0d   :  { %v954_v11 = vpop.permute.xlu2 %953 }
 0xf0e   :  { %v956_v15 = vmul.f32 %v954_v11, %v950_v10 }
 0xf10   :  { %957 = vst.msk [vmem:[#allocation3 + $0x7] sm:$0x1] %vm283_vm7, %v956_v15 }
 0xf11   :  { %958 = vst.msk [vmem:[#allocation3] sm:$0x1] %vm285_vm8, %v956_v15 }
 0xf12   :  { %959 = vst.msk [vmem:[#allocation4] sm:$0x1] %vm283_vm7, %v956_v15 }
 0xf13   :  { %960 = vst.msk [vmem:[#allocation4 + $0x7] sm:$0x1] %vm285_vm8, %v956_v15 }
 0xf18   :  { %v961_v16 = vld [vmem:[#allocation3] sm:$0xff] }
 0xf19   :  { %1938 = vmatmul.msk.f32.vlgmr.msrb.gmra.mxu0 %vm191_vm6, %v961_v16  ;;  %1939 = vmatmul.msk.f32.vlgmr.msrb.gmra.mxu1 %vm191_vm6, %v961_v16 }
 0xf1a   :  { %v978_v19 = vld [vmem:[#allocation4] sm:$0xff]  ;;  %1395 = vmatpush.msrb.mxu0 %v2591_v0  ;;  %1415 = vmatpush.msrb.mxu1 %v2589_v60 }
 0xf1b   :  { %1936 = vmatmul.msk.f32.vlgmr.msra.gmra.mxu2 %vm191_vm6, %v978_v19  ;;  %1937 = vmatmul.msk.f32.vlgmr.msra.gmra.mxu3 %vm191_vm6, %v978_v19 }
 0xf1c   :  { %1302 = vmatpush.msra.mxu2 %v2591_v0  ;;  %1322 = vmatpush.msra.mxu3 %v2589_v60 }
 0xf1d   :  { %1396 = vmatpush.msrb.mxu0 %v2596_v12  ;;  %1416 = vmatpush.msrb.mxu1 %v2594_v7 }
 0xf1e   :  { %1303 = vmatpush.msra.mxu2 %v2596_v12  ;;  %1323 = vmatpush.msra.mxu3 %v2594_v7 }
 0xf1f   :  { %1397 = vmatpush.msrb.mxu0 %v2604_v18  ;;  %1417 = vmatpush.msrb.mxu1 %v2598_v13 }
 0xf20   :  { %1304 = vmatpush.msra.mxu2 %v2604_v18  ;;  %1324 = vmatpush.msra.mxu3 %v2598_v13 }
 0xf21   :  { %1398 = vmatpush.msrb.mxu0 %v2608_v27  ;;  %1418 = vmatpush.msrb.mxu1 %v2606_v21 }
 0xf22   :  { %1305 = vmatpush.msra.mxu2 %v2608_v27  ;;  %1325 = vmatpush.msra.mxu3 %v2606_v21 }
 0xf23   :  { %1144 = vmatmul.f32.vlgmr.msrb.gmra.mxu3 %v2239_v26  ;;  %1124 = vmatmul.f32.vlgmr.msrb.gmra.mxu2 %v2239_v26  ;;  %v1081_v26 = vld [vmem:[%s2860_s7] sm:$0x3] }
 0xf24   :  { %1306 = vmatpush.msra.mxu2 %v2614_v29  ;;  %1326 = vmatpush.msra.mxu3 %v2610_v28  ;;  %v1083_v23 = vperm.slane %v1081_v26, 0  ;;  %v1084_v24 = vperm.slane %v1081_v26, 1 }
 0xf25   :  { %1399 = vmatpush.msrb.mxu0 %v2614_v29  ;;  %1419 = vmatpush.msrb.mxu1 %v2610_v28 }
 0xf26   :  { %1307 = vmatpush.msra.mxu2 %v2622_v2  ;;  %1327 = vmatpush.msra.mxu3 %v2616_v1 }
 0xf27   :  { %1400 = vmatpush.msrb.mxu0 %v2622_v2  ;;  %1420 = vmatpush.msrb.mxu1 %v2616_v1 }
 0xf28   :  { %1308 = vmatpush.msra.mxu2 %v2630_v4  ;;  %1328 = vmatpush.msra.mxu3 %v2624_v3 }
 0xf29   :  { %1401 = vmatpush.msrb.mxu0 %v2630_v4  ;;  %1421 = vmatpush.msrb.mxu1 %v2624_v3 }
 0xf2a   :  { %1309 = vmatpush.msra.mxu2 %v2638_v6  ;;  %1329 = vmatpush.msra.mxu3 %v2632_v5 }
 0xf2b   :  { %1402 = vmatpush.msrb.mxu0 %v2638_v6  ;;  %1422 = vmatpush.msrb.mxu1 %v2632_v5 }
 0xf2c   :  { %1488 = vmatpush.msrb.mxu2 %v2591_v0  ;;  %1508 = vmatpush.msrb.mxu3 %v2589_v60 }
 0xf2e   :  { %1489 = vmatpush.msrb.mxu2 %v2596_v12  ;;  %1509 = vmatpush.msrb.mxu3 %v2594_v7 }
 0xf30   :  { %1490 = vmatpush.msrb.mxu2 %v2604_v18  ;;  %1510 = vmatpush.msrb.mxu3 %v2598_v13 }
 0xf32   :  { %1491 = vmatpush.msrb.mxu2 %v2608_v27  ;;  %1511 = vmatpush.msrb.mxu3 %v2606_v21 }
 0xf34   :  { %1492 = vmatpush.msrb.mxu2 %v2614_v29  ;;  %1512 = vmatpush.msrb.mxu3 %v2610_v28 }
 0xf36   :  { %1493 = vmatpush.msrb.mxu2 %v2622_v2  ;;  %1513 = vmatpush.msrb.mxu3 %v2616_v1 }
 0xf38   :  { %1494 = vmatpush.msrb.mxu2 %v2630_v4  ;;  %1514 = vmatpush.msrb.mxu3 %v2624_v3 }
 0xf3a   :  { %1495 = vmatpush.msrb.mxu2 %v2638_v6  ;;  %1515 = vmatpush.msrb.mxu3 %v2632_v5 }
 0xf96   :  { %v1058_v20 = vpop.f32.mrf.mxu0  ;;  %v1078_v22 = vpop.f32.mrf.mxu1 }
 0xf9e   :  { %v1015_v25 = vpop.f32.mrf.mxu2  ;;  %v1035_v30 = vpop.f32.mrf.mxu3 }
 0xf9f   :  { %v1059_v31 = vadd.f32 %v1058_v20, %v1015_v25  ;;  %v1079_v32 = vadd.f32 %v1078_v22, %v1035_v30 }
 0xfa1   :  { %v1087_v33 = vadd.f32 %v1083_v23, %v1059_v31  ;;  %v1088_v34 = vadd.f32 %v1084_v24, %v1079_v32 }
 0xfa3   :  { %1089 = vst [vmem:[#allocation2] sm:$0xff] %v1087_v33 }
 0xfa4   :  { %1090 = vst [vmem:[#allocation2 + $0x8] sm:$0xff] %v1088_v34 }
 0xfa6   :  { %v1145_v35 = vpop.f32.mrf.mxu3  ;;  %v1125_v36 = vpop.f32.mrf.mxu2 }
 0xfa7   :  { %v1150_v37 = vrot.slane %v1145_v35, 7 }
 0xfa9   :  { %v1151_v38 = vsel %vm238_vm1, %v1125_v36, %v1150_v37 }
 0xfab   :  { %v1107_v39 = vld [vmem:[#allocation2] ss:$8 sm:$0x3]  ;;  %v1197_v11 = vld [vmem:[#allocation2 + $0x1] ss:$8 sm:$0x3] }
 0xfac   :  { %v1153_v40 = vadd.f32 %v1151_v38, %v1107_v39 }
 0xfae   :  { %1174 = vrot.lane.b32.xlu0 %v1153_v40, %s2240_s11  ;;  %v1940_v41 = vmul.f32 -1.442695, %v1153_v40 }
 0xfb0   :  { %2038 = vpow2.f32 %v1940_v41 }
 0xfb6   :  { %v2039_v42 = vpop.eup %2038 }
 0xfb7   :  { %v1157_v43 = vadd.f32 1.0, %v2039_v42 }
 0xfb9   :  { %2040 = vrcp.f32 %v1157_v43  ;;  %v1169_v51 = vand.u32 2147483648, %v1157_v43  ;;  %vm1163_vm14 = vweird.f32 %v1157_v43  ;;  %v1167_v52 = vand.u32 2147483647, %v1157_v43 }
 0xfbb   :  { %v1170_v54 = vor.u32 1.1754944e-38, %v1169_v51  ;;  %vm1168_vm0 = vcmp.eq.f32.partialorder %v1167_v52, 8.507059e+37 }
 0xfbf   :  { %v2041_v44 = vpop.eup %2040 }
 0xfc0   :  { %v1159_v45 = vmul.f32 %v2041_v44, %v1157_v43  ;;  %vm1164_vm13 = vweird.f32 %v2041_v44 }
 0xfc1   :  { %vm1165_vm15 = vmor %vm1163_vm14, %vm1164_vm13 }
 0xfc2   :  { %v1160_v46 = vsub.f32 1.0, %v1159_v45 }
 0xfc4   :  { %v1161_v47 = vmul.f32 %v2041_v44, %v1160_v46 }
 0xfc6   :  { %v1162_v50 = vadd.f32 %v2041_v44, %v1161_v47 }
 0xfc8   :  { %v1166_v53 = vsel %vm1165_vm15, %v2041_v44, %v1162_v50  ;;  %v1290_v50 = vld [vmem:[#allocation2 + $0x2] ss:$8 sm:$0x3] }
 0xfc9   :  { %v1171_v56 = vsel %vm1168_vm0, %v1170_v54, %v1166_v53 }
 0xfca   :  { %v1179_v58 = vmul.f32 0.0, %v1171_v56  ;;  %v1188_v63 = vrot.slane %v1171_v56, 1 }
0x1020   :  { %v1175_v48 = vpop.permute.xlu0 %1174 }
0x1021   :  { %v1176_v49 = vrot.slane %v1175_v48, 1 }
0x1023   :  { %2042 = vtanh.f32 %v1176_v49 }
0x1029   :  { %v2043_v55 = vpop.eup %2042 }
0x102a   :  { %v1180_v57 = vmul.f32 %v2043_v55, %v1171_v56 }
0x102c   :  { %1182 = vrot.lane.b32.xlu1 %v1180_v57, %s2240_s11 }
0x109e   :  { %v1183_v59 = vpop.permute.xlu1 %1182 }
0x109f   :  { %v1185_v61 = vadd.f32 %v1183_v59, %v1179_v58 }
0x10a1   :  { %2044 = vtanh.f32 %v1185_v61 }
0x10a7   :  { %v2045_v62 = vpop.eup %2044 }
0x10a8   :  { %1191 = vrot.lane.b32.xlu2 %v2045_v62, %s2240_s11 }
0x1102   :  { %v1192_v8 = vpop.permute.xlu2 %1191 }
0x1103   :  { %v1194_v9 = vmul.f32 %v1192_v8, %v1188_v63 }
0x1105   :  { %1195 = vst.msk [vmem:[#allocation5] sm:$0x1] %vm283_vm7, %v1194_v9  ;;  %1941 = vmatmul.msk.f32.vlgmr.msra.gmra.mxu0 %vm191_vm6, %v1194_v9  ;;  %1942 = vmatmul.msk.f32.vlgmr.msra.gmra.mxu1 %vm191_vm6, %v1194_v9 }
0x1106   :  { %1196 = vst.msk [vmem:[#allocation5 + $0x7] sm:$0x1] %vm285_vm8, %v1194_v9  ;;  %1581 = vmatpush.msra.mxu0 %v2591_v0  ;;  %1601 = vmatpush.msra.mxu1 %v2589_v60 }
0x1108   :  { %1582 = vmatpush.msra.mxu0 %v2596_v12  ;;  %1602 = vmatpush.msra.mxu1 %v2594_v7 }
0x110a   :  { %1583 = vmatpush.msra.mxu0 %v2604_v18  ;;  %1603 = vmatpush.msra.mxu1 %v2598_v13 }
0x110c   :  { %1584 = vmatpush.msra.mxu0 %v2608_v27  ;;  %1604 = vmatpush.msra.mxu1 %v2606_v21 }
0x110e   :  { %1585 = vmatpush.msra.mxu0 %v2614_v29  ;;  %1605 = vmatpush.msra.mxu1 %v2610_v28 }
0x1110   :  { %1586 = vmatpush.msra.mxu0 %v2622_v2  ;;  %1606 = vmatpush.msra.mxu1 %v2616_v1 }
0x1112   :  { %1587 = vmatpush.msra.mxu0 %v2630_v4  ;;  %1607 = vmatpush.msra.mxu1 %v2624_v3 }
0x1114   :  { %1588 = vmatpush.msra.mxu0 %v2638_v6  ;;  %1608 = vmatpush.msra.mxu1 %v2632_v5 }
0x1182   :  { %v1238_v14 = vpop.f32.mrf.mxu1  ;;  %v1218_v10 = vpop.f32.mrf.mxu0 }
0x1183   :  { %v1243_v17 = vrot.slane %v1238_v14, 7 }
0x1185   :  { %v1244_v15 = vsel %vm238_vm1, %v1218_v10, %v1243_v17 }
0x1186   :  { %v1246_v16 = vadd.f32 %v1244_v15, %v1197_v11 }
0x1188   :  { %1267 = vrot.lane.b32.xlu0 %v1246_v16, %s2240_s11  ;;  %v1943_v19 = vmul.f32 -1.442695, %v1246_v16 }
0x118a   :  { %2046 = vpow2.f32 %v1943_v19 }
0x1190   :  { %v2047_v26 = vpop.eup %2046 }
0x1191   :  { %v1250_v20 = vadd.f32 1.0, %v2047_v26 }
0x1193   :  { %2048 = vrcp.f32 %v1250_v20  ;;  %v1262_v33 = vand.u32 2147483648, %v1250_v20  ;;  %vm1256_vm3 = vweird.f32 %v1250_v20  ;;  %v1260_v34 = vand.u32 2147483647, %v1250_v20 }
0x1195   :  { %v1263_v36 = vor.u32 1.1754944e-38, %v1262_v33  ;;  %vm1261_vm5 = vcmp.eq.f32.partialorder %v1260_v34, 8.507059e+37 }
0x1199   :  { %v2049_v22 = vpop.eup %2048 }
0x119a   :  { %v1252_v23 = vmul.f32 %v2049_v22, %v1250_v20  ;;  %vm1257_vm2 = vweird.f32 %v2049_v22 }
0x119b   :  { %vm1258_vm4 = vmor %vm1256_vm3, %vm1257_vm2 }
0x119c   :  { %v1253_v24 = vsub.f32 1.0, %v1252_v23 }
0x119e   :  { %v1254_v25 = vmul.f32 %v2049_v22, %v1253_v24 }
0x11a0   :  { %v1255_v32 = vadd.f32 %v2049_v22, %v1254_v25 }
0x11a2   :  { %v1259_v35 = vsel %vm1258_vm4, %v2049_v22, %v1255_v32 }
0x11a3   :  { %v1264_v38 = vsel %vm1261_vm5, %v1263_v36, %v1259_v35 }
0x11a4   :  { %v1272_v40 = vmul.f32 %v1264_v38, %v1185_v61  ;;  %v1281_v44 = vrot.slane %v1264_v38, 1 }
0x11fa   :  { %v1268_v30 = vpop.permute.xlu0 %1267 }
0x11fb   :  { %v1269_v31 = vrot.slane %v1268_v30, 1 }
0x11fd   :  { %2050 = vtanh.f32 %v1269_v31 }
0x1203   :  { %v2051_v37 = vpop.eup %2050 }
0x1204   :  { %v1273_v39 = vmul.f32 %v2051_v37, %v1264_v38 }
0x1206   :  { %1275 = vrot.lane.b32.xlu1 %v1273_v39, %s2240_s11 }
0x1278   :  { %v1276_v41 = vpop.permute.xlu1 %1275 }
0x1279   :  { %v1278_v42 = vadd.f32 %v1276_v41, %v1272_v40 }
0x127b   :  { %2052 = vtanh.f32 %v1278_v42 }
0x1281   :  { %v2053_v43 = vpop.eup %2052 }
0x1282   :  { %1284 = vrot.lane.b32.xlu2 %v2053_v43, %s2240_s11 }
0x12dc   :  { %v1285_v45 = vpop.permute.xlu2 %1284 }
0x12dd   :  { %v1287_v46 = vmul.f32 %v1285_v45, %v1281_v44 }
0x12df   :  { %1288 = vst.msk [vmem:[#allocation5 + $0x1] sm:$0x1] %vm283_vm7, %v1287_v46  ;;  %1944 = vmatmul.msk.f32.vlgmr.msra.gmra.mxu2 %vm191_vm6, %v1287_v46  ;;  %1945 = vmatmul.msk.f32.vlgmr.msra.gmra.mxu3 %vm191_vm6, %v1287_v46 }
0x12e0   :  { %1289 = vst.msk [vmem:[#allocation5 + $0x6] sm:$0x1] %vm285_vm8, %v1287_v46  ;;  %1674 = vmatpush.msra.mxu2 %v2591_v0  ;;  %1694 = vmatpush.msra.mxu3 %v2589_v60  ;;  %v1476_v46 = vld [vmem:[#allocation2 + $0x4] ss:$8 sm:$0x3] }
0x12e2   :  { %1675 = vmatpush.msra.mxu2 %v2596_v12  ;;  %1695 = vmatpush.msra.mxu3 %v2594_v7 }
0x12e4   :  { %1676 = vmatpush.msra.mxu2 %v2604_v18  ;;  %1696 = vmatpush.msra.mxu3 %v2598_v13 }
0x12e6   :  { %1677 = vmatpush.msra.mxu2 %v2608_v27  ;;  %1697 = vmatpush.msra.mxu3 %v2606_v21 }
0x12e8   :  { %1678 = vmatpush.msra.mxu2 %v2614_v29  ;;  %1698 = vmatpush.msra.mxu3 %v2610_v28 }
0x12ea   :  { %1679 = vmatpush.msra.mxu2 %v2622_v2  ;;  %1699 = vmatpush.msra.mxu3 %v2616_v1 }
0x12ec   :  { %1680 = vmatpush.msra.mxu2 %v2630_v4  ;;  %1700 = vmatpush.msra.mxu3 %v2624_v3 }
0x12ee   :  { %1681 = vmatpush.msra.mxu2 %v2638_v6  ;;  %1701 = vmatpush.msra.mxu3 %v2632_v5 }
0x1362   :  { %v1331_v47 = vpop.f32.mrf.mxu3  ;;  %v1311_v49 = vpop.f32.mrf.mxu2 }
0x1363   :  { %v1336_v48 = vrot.slane %v1331_v47, 7 }
0x1365   :  { %v1337_v51 = vsel %vm238_vm1, %v1311_v49, %v1336_v48 }
0x1366   :  { %v1339_v52 = vadd.f32 %v1337_v51, %v1290_v50 }
0x1368   :  { %1360 = vrot.lane.b32.xlu0 %v1339_v52, %s2240_s11  ;;  %v1946_v53 = vmul.f32 -1.442695, %v1339_v52 }
0x136a   :  { %2054 = vpow2.f32 %v1946_v53 }
0x1370   :  { %v2055_v54 = vpop.eup %2054 }
0x1371   :  { %v1343_v55 = vadd.f32 1.0, %v2055_v54 }
0x1373   :  { %2056 = vrcp.f32 %v1343_v55  ;;  %v1355_v8 = vand.u32 2147483648, %v1343_v55  ;;  %vm1349_vm10 = vweird.f32 %v1343_v55  ;;  %v1353_v9 = vand.u32 2147483647, %v1343_v55 }
0x1375   :  { %v1356_v17 = vor.u32 1.1754944e-38, %v1355_v8  ;;  %vm1354_vm12 = vcmp.eq.f32.partialorder %v1353_v9, 8.507059e+37 }
0x1379   :  { %v2057_v56 = vpop.eup %2056 }
0x137a   :  { %v1345_v57 = vmul.f32 %v2057_v56, %v1343_v55  ;;  %vm1350_vm9 = vweird.f32 %v2057_v56 }
0x137b   :  { %vm1351_vm11 = vmor %vm1349_vm10, %vm1350_vm9 }
0x137c   :  { %v1346_v58 = vsub.f32 1.0, %v1345_v57 }
0x137e   :  { %v1347_v59 = vmul.f32 %v2057_v56, %v1346_v58 }
0x1380   :  { %v1348_v63 = vadd.f32 %v2057_v56, %v1347_v59 }
0x1382   :  { %v1352_v14 = vsel %vm1351_vm11, %v2057_v56, %v1348_v63 }
0x1383   :  { %v1357_v11 = vsel %vm1354_vm12, %v1356_v17, %v1352_v14 }
0x1384   :  { %v1365_v16 = vmul.f32 %v1357_v11, %v1278_v42  ;;  %v1374_v22 = vrot.slane %v1357_v11, 1 }
0x13da   :  { %v1361_v61 = vpop.permute.xlu0 %1360 }
0x13db   :  { %v1362_v62 = vrot.slane %v1361_v61, 1 }
0x13dd   :  { %2058 = vtanh.f32 %v1362_v62 }
0x13e3   :  { %v2059_v10 = vpop.eup %2058 }
0x13e4   :  { %v1366_v15 = vmul.f32 %v2059_v10, %v1357_v11 }
0x13e6   :  { %1368 = vrot.lane.b32.xlu1 %v1366_v15, %s2240_s11 }
0x1458   :  { %v1369_v19 = vpop.permute.xlu1 %1368 }
0x1459   :  { %v1371_v26 = vadd.f32 %v1369_v19, %v1365_v16 }
0x145b   :  { %2060 = vtanh.f32 %v1371_v26 }
0x1461   :  { %v2061_v20 = vpop.eup %2060 }
0x1462   :  { %1377 = vrot.lane.b32.xlu2 %v2061_v20, %s2240_s11 }
0x14bc   :  { %v1378_v23 = vpop.permute.xlu2 %1377 }
0x14bd   :  { %v1380_v24 = vmul.f32 %v1378_v23, %v1374_v22 }
0x14bf   :  { %1381 = vst.msk [vmem:[#allocation5 + $0x2] sm:$0x1] %vm283_vm7, %v1380_v24  ;;  %1947 = vmatmul.msk.f32.vlgmr.msrb.gmra.mxu0 %vm191_vm6, %v1380_v24  ;;  %1948 = vmatmul.msk.f32.vlgmr.msrb.gmra.mxu1 %vm191_vm6, %v1380_v24 }
0x14c0   :  { %1382 = vst.msk [vmem:[#allocation5 + $0x5] sm:$0x1] %vm285_vm8, %v1380_v24  ;;  %1767 = vmatpush.msrb.mxu0 %v2591_v0  ;;  %1787 = vmatpush.msrb.mxu1 %v2589_v60  ;;  %v1569_v24 = vld [vmem:[#allocation2 + $0x5] ss:$8 sm:$0x3] }
0x14c2   :  { %1768 = vmatpush.msrb.mxu0 %v2596_v12  ;;  %1788 = vmatpush.msrb.mxu1 %v2594_v7  ;;  %v1383_v12 = vld [vmem:[#allocation2 + $0x3] ss:$8 sm:$0x3] }
0x14c4   :  { %1769 = vmatpush.msrb.mxu0 %v2604_v18  ;;  %1789 = vmatpush.msrb.mxu1 %v2598_v13 }
0x14c6   :  { %1770 = vmatpush.msrb.mxu0 %v2608_v27  ;;  %1790 = vmatpush.msrb.mxu1 %v2606_v21 }
0x14c8   :  { %1771 = vmatpush.msrb.mxu0 %v2614_v29  ;;  %1791 = vmatpush.msrb.mxu1 %v2610_v28 }
0x14ca   :  { %1772 = vmatpush.msrb.mxu0 %v2622_v2  ;;  %1792 = vmatpush.msrb.mxu1 %v2616_v1 }
0x14cc   :  { %1773 = vmatpush.msrb.mxu0 %v2630_v4  ;;  %1793 = vmatpush.msrb.mxu1 %v2624_v3 }
0x14ce   :  { %1774 = vmatpush.msrb.mxu0 %v2638_v6  ;;  %1794 = vmatpush.msrb.mxu1 %v2632_v5 }
0x153c   :  { %v1424_v60 = vpop.f32.mrf.mxu1  ;;  %v1404_v7 = vpop.f32.mrf.mxu0 }
0x153d   :  { %v1429_v0 = vrot.slane %v1424_v60, 7 }
0x153f   :  { %v1430_v13 = vsel %vm238_vm1, %v1404_v7, %v1429_v0 }
0x1540   :  { %v1432_v18 = vadd.f32 %v1430_v13, %v1383_v12 }
0x1542   :  { %1453 = vrot.lane.b32.xlu0 %v1432_v18, %s2240_s11  ;;  %v1949_v21 = vmul.f32 -1.442695, %v1432_v18 }
0x1544   :  { %2062 = vpow2.f32 %v1949_v21 }
0x154a   :  { %v2063_v27 = vpop.eup %2062 }
0x154b   :  { %v1436_v28 = vadd.f32 1.0, %v2063_v27 }
0x154d   :  { %2064 = vrcp.f32 %v1436_v28  ;;  %v1448_v25 = vand.u32 2147483648, %v1436_v28  ;;  %vm1442_vm14 = vweird.f32 %v1436_v28  ;;  %v1446_v30 = vand.u32 2147483647, %v1436_v28 }
0x154f   :  { %v1449_v32 = vor.u32 1.1754944e-38, %v1448_v25  ;;  %vm1447_vm0 = vcmp.eq.f32.partialorder %v1446_v30, 8.507059e+37 }
0x1553   :  { %v2065_v29 = vpop.eup %2064 }
0x1554   :  { %v1438_v1 = vmul.f32 %v2065_v29, %v1436_v28  ;;  %vm1443_vm13 = vweird.f32 %v2065_v29 }
0x1555   :  { %vm1444_vm15 = vmor %vm1442_vm14, %vm1443_vm13 }
0x1556   :  { %v1439_v2 = vsub.f32 1.0, %v1438_v1 }
0x1558   :  { %v1440_v3 = vmul.f32 %v2065_v29, %v1439_v2 }
0x155a   :  { %v1441_v6 = vadd.f32 %v2065_v29, %v1440_v3 }
0x155c   :  { %v1445_v31 = vsel %vm1444_vm15, %v2065_v29, %v1441_v6 }
0x155d   :  { %v1450_v34 = vsel %vm1447_vm0, %v1449_v32, %v1445_v31 }
0x155e   :  { %v1458_v36 = vmul.f32 %v1450_v34, %v1371_v26  ;;  %v1467_v40 = vrot.slane %v1450_v34, 1 }
0x15b4   :  { %v1454_v4 = vpop.permute.xlu0 %1453 }
0x15b5   :  { %v1455_v5 = vrot.slane %v1454_v4, 1 }
0x15b7   :  { %2066 = vtanh.f32 %v1455_v5 }
0x15bd   :  { %v2067_v33 = vpop.eup %2066 }
0x15be   :  { %v1459_v35 = vmul.f32 %v2067_v33, %v1450_v34 }
0x15c0   :  { %1461 = vrot.lane.b32.xlu1 %v1459_v35, %s2240_s11 }
0x1632   :  { %v1462_v37 = vpop.permute.xlu1 %1461 }
0x1633   :  { %v1464_v38 = vadd.f32 %v1462_v37, %v1458_v36 }
0x1635   :  { %2068 = vtanh.f32 %v1464_v38 }
0x163b   :  { %v2069_v39 = vpop.eup %2068 }
0x163c   :  { %1470 = vrot.lane.b32.xlu2 %v2069_v39, %s2240_s11 }
0x1696   :  { %v1471_v41 = vpop.permute.xlu2 %1470 }
0x1697   :  { %v1473_v42 = vmul.f32 %v1471_v41, %v1467_v40 }
0x1699   :  { %1474 = vst.msk [vmem:[#allocation5 + $0x3] sm:$0x1] %vm283_vm7, %v1473_v42  ;;  %1950 = vmatmul.msk.f32.vlgmr.msrb.gmra.mxu2 %vm191_vm6, %v1473_v42  ;;  %1951 = vmatmul.msk.f32.vlgmr.msrb.gmra.mxu3 %vm191_vm6, %v1473_v42 }
0x169a   :  { %1475 = vst.msk [vmem:[#allocation5 + $0x4] sm:$0x1] %vm285_vm8, %v1473_v42 }
0x171c   :  { %v1517_v43 = vpop.f32.mrf.mxu3  ;;  %v1497_v45 = vpop.f32.mrf.mxu2 }
0x171d   :  { %v1522_v44 = vrot.slane %v1517_v43, 7  ;;  %v1662_v43 = vld [vmem:[#allocation2 + $0x6] ss:$8 sm:$0x3] }
0x171f   :  { %v1523_v47 = vsel %vm238_vm1, %v1497_v45, %v1522_v44 }
0x1720   :  { %v1525_v48 = vadd.f32 %v1523_v47, %v1476_v46 }
0x1722   :  { %1546 = vrot.lane.b32.xlu0 %v1525_v48, %s2240_s11  ;;  %v1952_v49 = vmul.f32 -1.442695, %v1525_v48 }
0x1724   :  { %2070 = vpow2.f32 %v1952_v49 }
0x172a   :  { %v2071_v50 = vpop.eup %2070 }
0x172b   :  { %v1529_v51 = vadd.f32 1.0, %v2071_v50 }
0x172d   :  { %2072 = vrcp.f32 %v1529_v51  ;;  %v1541_v59 = vand.u32 2147483648, %v1529_v51  ;;  %vm1535_vm3 = vweird.f32 %v1529_v51  ;;  %v1539_v61 = vand.u32 2147483647, %v1529_v51 }
0x172f   :  { %v1542_v63 = vor.u32 1.1754944e-38, %v1541_v59  ;;  %vm1540_vm5 = vcmp.eq.f32.partialorder %v1539_v61, 8.507059e+37 }
0x1733   :  { %v2073_v52 = vpop.eup %2072 }
0x1734   :  { %v1531_v53 = vmul.f32 %v2073_v52, %v1529_v51  ;;  %vm1536_vm2 = vweird.f32 %v2073_v52 }
0x1735   :  { %vm1537_vm4 = vmor %vm1535_vm3, %vm1536_vm2 }
0x1736   :  { %v1532_v54 = vsub.f32 1.0, %v1531_v53 }
0x1738   :  { %v1533_v55 = vmul.f32 %v2073_v52, %v1532_v54 }
0x173a   :  { %v1534_v58 = vadd.f32 %v2073_v52, %v1533_v55 }
0x173c   :  { %v1538_v62 = vsel %vm1537_vm4, %v2073_v52, %v1534_v58 }
0x173d   :  { %v1543_v9 = vsel %vm1540_vm5, %v1542_v63, %v1538_v62 }
0x173e   :  { %v1551_v17 = vmul.f32 %v1543_v9, %v1464_v38  ;;  %v1560_v16 = vrot.slane %v1543_v9, 1 }
0x1794   :  { %v1547_v56 = vpop.permute.xlu0 %1546 }
0x1795   :  { %v1548_v57 = vrot.slane %v1547_v56, 1 }
0x1797   :  { %2074 = vtanh.f32 %v1548_v57 }
0x179d   :  { %v2075_v8 = vpop.eup %2074 }
0x179e   :  { %v1552_v14 = vmul.f32 %v2075_v8, %v1543_v9 }
0x17a0   :  { %1554 = vrot.lane.b32.xlu1 %v1552_v14, %s2240_s11 }
0x1812   :  { %v1555_v10 = vpop.permute.xlu1 %1554 }
0x1813   :  { %v1557_v11 = vadd.f32 %v1555_v10, %v1551_v17 }
0x1815   :  { %2076 = vtanh.f32 %v1557_v11 }
0x181b   :  { %v2077_v15 = vpop.eup %2076 }
0x181c   :  { %1563 = vrot.lane.b32.xlu2 %v2077_v15, %s2240_s11 }
0x1876   :  { %v1564_v19 = vpop.permute.xlu2 %1563 }
0x1877   :  { %v1566_v26 = vmul.f32 %v1564_v19, %v1560_v16 }
0x1879   :  { %1567 = vst.msk [vmem:[#allocation5 + $0x4] sm:$0x1] %vm283_vm7, %v1566_v26  ;;  %1953 = vmatmul.msk.f32.vlgmr.msra.gmra.mxu0 %vm191_vm6, %v1566_v26  ;;  %1954 = vmatmul.msk.f32.vlgmr.msra.gmra.mxu1 %vm191_vm6, %v1566_v26 }
0x187a   :  { %1568 = vst.msk [vmem:[#allocation5 + $0x3] sm:$0x1] %vm285_vm8, %v1566_v26 }
0x18f6   :  { %v1610_v20 = vpop.f32.mrf.mxu1  ;;  %v1590_v23 = vpop.f32.mrf.mxu0 }
0x18f7   :  { %v1615_v22 = vrot.slane %v1610_v20, 7  ;;  %v1755_v20 = vld [vmem:[#allocation2 + $0x7] ss:$8 sm:$0x3] }
0x18f9   :  { %v1616_v60 = vsel %vm238_vm1, %v1590_v23, %v1615_v22 }
0x18fa   :  { %v1618_v0 = vadd.f32 %v1616_v60, %v1569_v24 }
0x18fc   :  { %1639 = vrot.lane.b32.xlu0 %v1618_v0, %s2240_s11  ;;  %v1955_v7 = vmul.f32 -1.442695, %v1618_v0 }
0x18fe   :  { %2078 = vpow2.f32 %v1955_v7 }
0x1904   :  { %v2079_v12 = vpop.eup %2078 }
0x1905   :  { %v1622_v13 = vadd.f32 1.0, %v2079_v12 }
0x1907   :  { %2080 = vrcp.f32 %v1622_v13  ;;  %v1634_v3 = vand.u32 2147483648, %v1622_v13  ;;  %vm1628_vm10 = vweird.f32 %v1622_v13  ;;  %v1632_v4 = vand.u32 2147483647, %v1622_v13 }
0x1909   :  { %v1635_v6 = vor.u32 1.1754944e-38, %v1634_v3  ;;  %vm1633_vm12 = vcmp.eq.f32.partialorder %v1632_v4, 8.507059e+37 }
0x190d   :  { %v2081_v18 = vpop.eup %2080 }
0x190e   :  { %v1624_v21 = vmul.f32 %v2081_v18, %v1622_v13  ;;  %vm1629_vm9 = vweird.f32 %v2081_v18 }
0x190f   :  { %vm1630_vm11 = vmor %vm1628_vm10, %vm1629_vm9 }
0x1910   :  { %v1625_v27 = vsub.f32 1.0, %v1624_v21 }
0x1912   :  { %v1626_v28 = vmul.f32 %v2081_v18, %v1625_v27 }
0x1914   :  { %v1627_v2 = vadd.f32 %v2081_v18, %v1626_v28 }
0x1916   :  { %v1631_v5 = vsel %vm1630_vm11, %v2081_v18, %v1627_v2 }
0x1917   :  { %v1636_v30 = vsel %vm1633_vm12, %v1635_v6, %v1631_v5  ;;  %v1856_v6 = vld [vmem:[%s2861_s8 + $0x38] sm:$0xff] }
0x1918   :  { %v1644_v32 = vmul.f32 %v1636_v30, %v1557_v11  ;;  %v1653_v36 = vrot.slane %v1636_v30, 1  ;;  %1872 = vmatpush.msrb.mxu2 %v1856_v6 }
0x196e   :  { %v1640_v29 = vpop.permute.xlu0 %1639 }
0x196f   :  { %v1641_v1 = vrot.slane %v1640_v29, 1 }
0x1971   :  { %2082 = vtanh.f32 %v1641_v1 }
0x1977   :  { %v2083_v25 = vpop.eup %2082 }
0x1978   :  { %v1645_v31 = vmul.f32 %v2083_v25, %v1636_v30  ;;  %v1855_v25 = vld [vmem:[%s2861_s8 + $0x30] sm:$0xff]  ;;  %v1854_v30 = vld [vmem:[%s2861_s8 + $0x28] sm:$0xff] }
0x1979   :  { %1873 = vmatpush.msrb.mxu2 %v1855_v25 }
0x197a   :  { %1647 = vrot.lane.b32.xlu1 %v1645_v31, %s2240_s11 }
0x197b   :  { %1874 = vmatpush.msrb.mxu2 %v1854_v30 }
0x19ec   :  { %v1648_v33 = vpop.permute.xlu1 %1647 }
0x19ed   :  { %v1650_v34 = vadd.f32 %v1648_v33, %v1644_v32 }
0x19ef   :  { %2084 = vtanh.f32 %v1650_v34 }
0x19f5   :  { %v2085_v35 = vpop.eup %2084 }
0x19f6   :  { %1656 = vrot.lane.b32.xlu2 %v2085_v35, %s2240_s11  ;;  %v1853_v35 = vld [vmem:[%s2861_s8 + $0x20] sm:$0xff] }
0x19f7   :  { %1875 = vmatpush.msrb.mxu2 %v1853_v35 }
0x1a50   :  { %v1657_v37 = vpop.permute.xlu2 %1656 }
0x1a51   :  { %v1659_v38 = vmul.f32 %v1657_v37, %v1653_v36  ;;  %v1852_v36 = vld [vmem:[%s2861_s8 + $0x18] sm:$0xff]  ;;  %v1851_v37 = vld [vmem:[%s2861_s8 + $0x10] sm:$0xff] }
0x1a52   :  { %1876 = vmatpush.msrb.mxu2 %v1852_v36 }
0x1a53   :  { %1660 = vst.msk [vmem:[#allocation5 + $0x5] sm:$0x1] %vm283_vm7, %v1659_v38  ;;  %1956 = vmatmul.msk.f32.vlgmr.msra.gmra.mxu2 %vm191_vm6, %v1659_v38  ;;  %1957 = vmatmul.msk.f32.vlgmr.msra.gmra.mxu3 %vm191_vm6, %v1659_v38 }
0x1a54   :  { %1661 = vst.msk [vmem:[#allocation5 + $0x2] sm:$0x1] %vm285_vm8, %v1659_v38  ;;  %v1850_v38 = vld [vmem:[%s2861_s8 + $0x8] sm:$0xff]  ;;  %1877 = vmatpush.msrb.mxu2 %v1851_v37 }
0x1a56   :  { %1878 = vmatpush.msrb.mxu2 %v1850_v38 }
0x1ad6   :  { %v1703_v39 = vpop.f32.mrf.mxu3  ;;  %v1683_v41 = vpop.f32.mrf.mxu2 }
0x1ad7   :  { %v1708_v40 = vrot.slane %v1703_v39, 7  ;;  %v1849_v39 = vld [vmem:[%s2861_s8] sm:$0xff] }
0x1ad8   :  { %1879 = vmatpush.msrb.mxu2 %v1849_v39 }
0x1ad9   :  { %v1709_v42 = vsel %vm238_vm1, %v1683_v41, %v1708_v40 }
0x1ada   :  { %v1711_v44 = vadd.f32 %v1709_v42, %v1662_v43 }
0x1adc   :  { %1732 = vrot.lane.b32.xlu0 %v1711_v44, %s2240_s11  ;;  %v1958_v45 = vmul.f32 -1.442695, %v1711_v44  ;;  %v1973_v44 = vld [vmem:[#allocation6] ss:$0 sm:$0xff] }
0x1ade   :  { %2086 = vpow2.f32 %v1958_v45 }
0x1ae4   :  { %v2087_v46 = vpop.eup %2086 }
0x1ae5   :  { %v1715_v47 = vadd.f32 1.0, %v2087_v46 }
0x1ae7   :  { %2088 = vrcp.f32 %v1715_v47  ;;  %v1727_v55 = vand.u32 2147483648, %v1715_v47  ;;  %vm1721_vm14 = vweird.f32 %v1715_v47  ;;  %v1725_v56 = vand.u32 2147483647, %v1715_v47 }
0x1ae9   :  { %v1728_v58 = vor.u32 1.1754944e-38, %v1727_v55  ;;  %vm1726_vm0 = vcmp.eq.f32.partialorder %v1725_v56, 8.507059e+37 }
0x1aed   :  { %v2089_v48 = vpop.eup %2088 }
0x1aee   :  { %v1717_v49 = vmul.f32 %v2089_v48, %v1715_v47  ;;  %vm1722_vm13 = vweird.f32 %v2089_v48 }
0x1aef   :  { %vm1723_vm15 = vmor %vm1721_vm14, %vm1722_vm13 }
0x1af0   :  { %v1718_v50 = vsub.f32 1.0, %v1717_v49 }
0x1af2   :  { %v1719_v51 = vmul.f32 %v2089_v48, %v1718_v50 }
0x1af4   :  { %v1720_v54 = vadd.f32 %v2089_v48, %v1719_v51 }
0x1af6   :  { %v1724_v57 = vsel %vm1723_vm15, %v2089_v48, %v1720_v54 }
0x1af7   :  { %v1729_v61 = vsel %vm1726_vm0, %v1728_v58, %v1724_v57 }
0x1af8   :  { %v1737_v63 = vmul.f32 %v1729_v61, %v1650_v34  ;;  %v1746_v17 = vrot.slane %v1729_v61, 1 }
0x1b4e   :  { %v1733_v52 = vpop.permute.xlu0 %1732 }
0x1b4f   :  { %v1734_v53 = vrot.slane %v1733_v52, 1 }
0x1b51   :  { %2090 = vtanh.f32 %v1734_v53 }
0x1b57   :  { %v2091_v59 = vpop.eup %2090 }
0x1b58   :  { %v1738_v62 = vmul.f32 %v2091_v59, %v1729_v61 }
0x1b5a   :  { %1740 = vrot.lane.b32.xlu1 %v1738_v62, %s2240_s11 }
0x1bcc   :  { %v1741_v8 = vpop.permute.xlu1 %1740 }
0x1bcd   :  { %v1743_v9 = vadd.f32 %v1741_v8, %v1737_v63 }
0x1bcf   :  { %2092 = vtanh.f32 %v1743_v9 }
0x1bd5   :  { %v2093_v14 = vpop.eup %2092 }
0x1bd6   :  { %1749 = vrot.lane.b32.xlu2 %v2093_v14, %s2240_s11 }
0x1c30   :  { %v1750_v10 = vpop.permute.xlu2 %1749 }
0x1c31   :  { %v1752_v11 = vmul.f32 %v1750_v10, %v1746_v17 }
0x1c33   :  { %1753 = vst.msk [vmem:[#allocation5 + $0x6] sm:$0x1] %vm283_vm7, %v1752_v11  ;;  %1959 = vmatmul.msk.f32.vlgmr.msrb.gmra.mxu0 %vm191_vm6, %v1752_v11  ;;  %1960 = vmatmul.msk.f32.vlgmr.msrb.gmra.mxu1 %vm191_vm6, %v1752_v11 }
0x1c34   :  { %1754 = vst.msk [vmem:[#allocation5 + $0x1] sm:$0x1] %vm285_vm8, %v1752_v11 }
0x1cb0   :  { %v1796_v15 = vpop.f32.mrf.mxu1  ;;  %v1776_v19 = vpop.f32.mrf.mxu0 }
0x1cb1   :  { %v1801_v16 = vrot.slane %v1796_v15, 7 }
0x1cb3   :  { %v1802_v26 = vsel %vm238_vm1, %v1776_v19, %v1801_v16 }
0x1cb4   :  { %v1804_v22 = vadd.f32 %v1802_v26, %v1755_v20 }
0x1cb6   :  { %1825 = vrot.lane.b32.xlu0 %v1804_v22, %s2240_s11  ;;  %v1961_v23 = vmul.f32 -1.442695, %v1804_v22 }
0x1cb8   :  { %2094 = vpow2.f32 %v1961_v23 }
0x1cbe   :  { %v2095_v24 = vpop.eup %2094 }
0x1cbf   :  { %v1808_v60 = vadd.f32 1.0, %v2095_v24 }
0x1cc1   :  { %2096 = vrcp.f32 %v1808_v60  ;;  %v1820_v28 = vand.u32 2147483648, %v1808_v60  ;;  %vm1814_vm1 = vweird.f32 %v1808_v60  ;;  %v1818_v29 = vand.u32 2147483647, %v1808_v60 }
0x1cc3   :  { %v1821_v2 = vor.u32 1.1754944e-38, %v1820_v28  ;;  %vm1819_vm4 = vcmp.eq.f32.partialorder %v1818_v29, 8.507059e+37 }
0x1cc7   :  { %v2097_v0 = vpop.eup %2096 }
0x1cc8   :  { %v1810_v7 = vmul.f32 %v2097_v0, %v1808_v60  ;;  %vm1815_vm2 = vweird.f32 %v2097_v0 }
0x1cc9   :  { %vm1816_vm3 = vmor %vm1814_vm1, %vm1815_vm2 }
0x1cca   :  { %v1811_v12 = vsub.f32 1.0, %v1810_v7 }
0x1ccc   :  { %v1812_v13 = vmul.f32 %v2097_v0, %v1811_v12 }
0x1cce   :  { %v1813_v27 = vadd.f32 %v2097_v0, %v1812_v13 }
0x1cd0   :  { %v1817_v1 = vsel %vm1816_vm3, %v2097_v0, %v1813_v27 }
0x1cd1   :  { %v1822_v4 = vsel %vm1819_vm4, %v1821_v2, %v1817_v1 }
0x1cd2   :  { %v1830_v31 = vmul.f32 %v1822_v4, %v1743_v9  ;;  %v1839_v40 = vrot.slane %v1822_v4, 1 }
0x1d28   :  { %v1826_v18 = vpop.permute.xlu0 %1825 }
0x1d29   :  { %v1827_v21 = vrot.slane %v1826_v18, 1 }
0x1d2b   :  { %2098 = vtanh.f32 %v1827_v21 }
0x1d31   :  { %v2099_v3 = vpop.eup %2098 }
0x1d32   :  { %v1831_v5 = vmul.f32 %v2099_v3, %v1822_v4 }
0x1d34   :  { %1833 = vrot.lane.b32.xlu1 %v1831_v5, %s2240_s11 }
0x1da6   :  { %v1834_v32 = vpop.permute.xlu1 %1833 }
0x1da7   :  { %v1836_v33 = vadd.f32 %v1834_v32, %v1830_v31 }
0x1da9   :  { %2100 = vtanh.f32 %v1836_v33 }
0x1daf   :  { %v2101_v34 = vpop.eup %2100 }
0x1db0   :  { %1842 = vrot.lane.b32.xlu2 %v2101_v34, %s2240_s11 }
0x1e0a   :  { %v1843_v41 = vpop.permute.xlu2 %1842 }
0x1e0b   :  { %v1845_v42 = vmul.f32 %v1843_v41, %v1839_v40 }
0x1e0d   :  { %1846 = vst.msk [vmem:[#allocation5 + $0x7] sm:$0x1] %vm283_vm7, %v1845_v42 }
0x1e0e   :  { %1847 = vst.msk [vmem:[#allocation5] sm:$0x1] %vm285_vm8, %v1845_v42 }
0x1e15   :  { %v1848_v43 = vld [vmem:[#allocation5] sm:$0xff] }
0x1e16   :  { %1962 = vmatmul.msk.f32.vlgmr.msrb.gmra.mxu2 %vm191_vm6, %v1848_v43  ;;  %vm1903_vm6 = vcmask 7168  }
0x1e99   :  { %v1881_v45 = vpop.f32.mrf.mxu2 }
0x1e9a   :  { %v1882_v46 = vadd.f32 %v1973_v44, %v1881_v45 }
0x1e9c   :  { %v1963_v47 = vmul.f32 -1.442695, %v1882_v46 }
0x1e9e   :  { %2102 = vpow2.f32 %v1963_v47 }
0x1ea4   :  { %v2103_v48 = vpop.eup %2102 }
0x1ea5   :  { %v1887_v49 = vadd.f32 1.0, %v2103_v48 }
0x1ea7   :  { %2104 = vrcp.f32 %v1887_v49  ;;  %v1899_v53 = vand.u32 2147483648, %v1887_v49  ;;  %v1897_v55 = vand.u32 2147483647, %v1887_v49  ;;  %vm1893_vm7 = vweird.f32 %v1887_v49 }
0x1ea9   :  { %v1900_v57 = vor.u32 1.1754944e-38, %v1899_v53  ;;  %vm1898_vm9 = vcmp.eq.f32.partialorder %v1897_v55, 8.507059e+37 }
0x1ead   :  { %v2105_v50 = vpop.eup %2104 }
0x1eae   :  { %v1889_v51 = vmul.f32 %v2105_v50, %v1887_v49  ;;  %vm1894_vm5 = vweird.f32 %v2105_v50 }
0x1eaf   :  { %vm1895_vm8 = vmor %vm1893_vm7, %vm1894_vm5 }
0x1eb0   :  { %v1890_v52 = vsub.f32 1.0, %v1889_v51 }
0x1eb2   :  { %v1891_v54 = vmul.f32 %v2105_v50, %v1890_v52 }
0x1eb4   :  { %v1892_v56 = vadd.f32 %v2105_v50, %v1891_v54 }
0x1eb6   :  { %v1896_v58 = vsel %vm1895_vm8, %v2105_v50, %v1892_v56 }
0x1eb7   :  { %v1901_v59 = vsel %vm1898_vm9, %v1900_v57, %v1896_v58 }
0x1eb8   :  { %1904 = vst.msk [vmem:[%s2863_s10] sm:$0xff] %vm1903_vm6, %v1901_v59 }
0x1eb9   :  { %1909 = vsyncpa [#allocation8], 1 }
0x1eba   :  { %1910 = vsyncpa [#allocation10], 1 }
0x1ebb   :  { %1911 = vsyncpa [#allocation13], 1 }

</bundles_post_ra>
